<compile_context>
chip_gen: v7x
topology: tpu7x:2x2x1
jax: 0.10.0
libtpu: 0.0.40
codegen_flags: <defaults>
</compile_context>

<pallas_src>
import functools

import jax
import jax.numpy as jnp
from jax import lax
from jax.experimental import pallas as pl
from jax.experimental.pallas import tpu as pltpu

NEG_INF = -1e30  # stand-in for float('-inf') key_padding_mask fill


# --------------------------------------------------------------------------------------
# Tiled linear kernel with optional fused epilogues (activation / residual / LN / mask)
# --------------------------------------------------------------------------------------
def _tile(dim, cap, quantum):
    """Largest tile <= cap that is a multiple of `quantum` and divides `dim`; else full."""
    if dim <= cap:
        return dim
    t = (cap // quantum) * quantum
    while t >= quantum:
        if dim % t == 0:
            return t
        t -= quantum
    return dim


def _linear_kernel(x_ref, w_ref, b_ref, *rest, activation, eps, has_res, has_ln, has_scale):
    idx = 0
    res_ref = None
    g_ref = beta_ref = scale_ref = None
    if has_res:
        res_ref = rest[idx]; idx += 1
    if has_ln:
        g_ref, beta_ref = rest[idx], rest[idx + 1]; idx += 2
    if has_scale:
        scale_ref = rest[idx]; idx += 1
    o_ref = rest[idx]
    acc_ref = rest[idx + 1]

    @pl.when(pl.program_id(2) == 0)
    def _():
        acc_ref[...] = jnp.zeros_like(acc_ref)

    acc_ref[...] += jnp.dot(x_ref[...].astype(jnp.bfloat16), w_ref[...],
                            preferred_element_type=jnp.float32)

    @pl.when(pl.program_id(2) == pl.num_programs(2) - 1)
    def _():
        y = acc_ref[...] + b_ref[...]
        if activation == "relu":
            y = jnp.maximum(y, 0.0)
        elif activation == "tanh":
            y = jnp.tanh(y)
        if has_res:
            y = y + res_ref[...]
        if has_ln:
            mean = jnp.mean(y, axis=-1, keepdims=True)
            var = jnp.mean((y - mean) ** 2, axis=-1, keepdims=True)
            y = (y - mean) * lax.rsqrt(var + eps) * g_ref[...] + beta_ref[...]
        if has_scale:
            y = y * scale_ref[...]
        o_ref[...] = y


def linear(x, w, b, activation="none", residual=None, ln=None, row_scale=None,
           tm_cap=256, tn_cap=512, tk_cap=512):
    """y = act(x @ w + b) [+ residual] [-> layernorm(g, beta)] [* row_scale]

    x: (M, K) f32, w: (K, N) (cast to bf16), b: (N,). Tiled over (M, N, K) with an f32
    accumulator; residual/ln/row_scale are fused into the final-K epilogue.
    """
    M, K = x.shape
    N = w.shape[1]
    has_res = residual is not None
    has_ln = ln is not None
    has_scale = row_scale is not None

    tm = _tile(M, tm_cap, 8)
    tn = N if has_ln else _tile(N, tn_cap, 128)   # LN needs the full row per block
    tk = _tile(K, tk_cap, 128)
    gm, gn, gk = M // tm, N // tn, K // tk

    inputs = [x, w.astype(jnp.bfloat16), b.reshape(1, N).astype(jnp.float32)]
    in_specs = [
        pl.BlockSpec((tm, tk), lambda i, j, k: (i, k)),
        pl.BlockSpec((tk, tn), lambda i, j, k: (k, j)),
        pl.BlockSpec((1, tn), lambda i, j, k: (0, j)),
    ]
    if has_res:
        inputs.append(residual)
        in_specs.append(pl.BlockSpec((tm, tn), lambda i, j, k: (i, j)))
    if has_ln:
        g, beta = ln
        inputs += [g.reshape(1, N), beta.reshape(1, N)]
        in_specs += [pl.BlockSpec((1, tn), lambda i, j, k: (0, j)),
                     pl.BlockSpec((1, tn), lambda i, j, k: (0, j))]
    if has_scale:
        inputs.append(row_scale.reshape(M, 1))
        in_specs.append(pl.BlockSpec((tm, 1), lambda i, j, k: (i, 0)))

    kernel = functools.partial(_linear_kernel, activation=activation, eps=1e-5,
                               has_res=has_res, has_ln=has_ln, has_scale=has_scale)
    return pl.pallas_call(
        kernel,
        grid=(gm, gn, gk),
        in_specs=in_specs,
        out_specs=pl.BlockSpec((tm, tn), lambda i, j, k: (i, j)),
        out_shape=jax.ShapeDtypeStruct((M, N), jnp.float32),
        scratch_shapes=[pltpu.VMEM((tm, tn), jnp.float32)],
        compiler_params=pltpu.CompilerParams(
            dimension_semantics=("parallel", "parallel", "arbitrary")),
    )(*inputs)


# --------------------------------------------------------------------------------------
# Multi-head attention: one grid step per batch element, all heads batched per step
# --------------------------------------------------------------------------------------
def _attn_kernel(q_ref, k_ref, v_ref, bias_ref, o_ref, *, scale):
    q = q_ref[0].astype(jnp.bfloat16)   # (nh, S, dh)
    k = k_ref[0].astype(jnp.bfloat16)
    v = v_ref[0].astype(jnp.bfloat16)
    bias = bias_ref[0]                  # (1, S) additive key-padding bias

    s = jnp.einsum("hqd,hkd->hqk", q, k, preferred_element_type=jnp.float32) * scale
    s = s + bias[None, :, :]
    s = s - jnp.max(s, axis=-1, keepdims=True)
    p = jnp.exp(s)
    p = p * pl.reciprocal(jnp.sum(p, axis=-1, keepdims=True), approx=True)
    o_ref[0] = jnp.einsum("hqk,hkd->hqd", p.astype(jnp.bfloat16), v,
                          preferred_element_type=jnp.float32)


def attention(q, k, v, bias):
    """q,k,v: (B, nhead, S, dh) f32; bias: (B, 1, S) additive (-1e30 for padded keys)."""
    B, nh, S, dh = q.shape
    return pl.pallas_call(
        functools.partial(_attn_kernel, scale=1.0 / (dh ** 0.5)),
        grid=(B,),
        in_specs=[pl.BlockSpec((1, nh, S, dh), lambda b: (b, 0, 0, 0))] * 3
        + [pl.BlockSpec((1, 1, S), lambda b: (b, 0, 0))],
        out_specs=pl.BlockSpec((1, nh, S, dh), lambda b: (b, 0, 0, 0)),
        out_shape=jax.ShapeDtypeStruct((B, nh, S, dh), jnp.float32),
        compiler_params=pltpu.CompilerParams(dimension_semantics=("parallel",)),
    )(q, k, v, bias)


# --------------------------------------------------------------------------------------
# Fused graph branch: TCN -> DG MLPs -> edge weights -> dense GCN -> residual combine
# One grid step per batch element.
# --------------------------------------------------------------------------------------
def _graph_kernel(enc_ref, mcol_ref, mrow_ref,
                  cw1_ref, cb1_ref, cw2_ref, cb2_ref, dw_ref, db_ref,
                  w1c_ref, b1c_ref,
                  w1b_ref, b1b_ref, w2b_ref, b2b_ref, wfb_ref, bfb_ref,
                  gw1_ref, gb1_ref, gw2_ref, gb2_ref,
                  o_ref):
    f32 = jnp.float32
    bf16 = jnp.bfloat16

    enc = enc_ref[0]          # (S, H) f32, rows already masked
    mcol = mcol_ref[0]        # (S, 1)
    mrow = mrow_ref[0]        # (1, S)
    S, H = enc.shape
    H4 = 4 * H
    K = cw1_ref.shape[0]

    row2 = lax.broadcasted_iota(jnp.int32, (S, S), 0)
    col2 = lax.broadcasted_iota(jnp.int32, (S, S), 1)

    def causal_conv(inp, w_ref_, b_ref_):
        # Conv1d(pad=(K-1)) + Chomp(K-1): y[t] = sum_k x[t-(K-1-k)] @ W[k] + b, zeros before t=0.
        inp_b = inp.astype(bf16)
        acc = jnp.dot(inp_b, w_ref_[K - 1], preferred_element_type=f32)
        for kk in range(K - 1):
            shift = K - 1 - kk
            smat = (row2 == col2 + shift).astype(f32)      # smat[t, t-shift] = 1
            z = jnp.dot(inp_b, w_ref_[kk], preferred_element_type=f32)
            acc = acc + jnp.dot(smat, z, preferred_element_type=f32)
        return jnp.maximum(acc + b_ref_[...], 0.0)

    # ---- TemporalConvNet (single TemporalBlock, eval mode: dropout = identity) ----
    h = causal_conv(enc, cw1_ref, cb1_ref)
    h = causal_conv(h, cw2_ref, cb2_ref)
    res = jnp.dot(enc.astype(bf16), dw_ref[...], preferred_element_type=f32) + db_ref[...]
    tcn = jnp.maximum(h + res, 0.0) * mcol                 # (S, 2H), masked rows

    # ---- DynamicGraphLearner MLPs: the 3 first layers fused into one (2H, 12H) matmul ----
    tcn_b = tcn.astype(bf16)
    h_all = jnp.maximum(
        jnp.dot(tcn_b, w1c_ref[...], preferred_element_type=f32) + b1c_ref[...], 0.0)
    h1 = h_all[:, 0:H4].astype(bf16)
    h2 = h_all[:, H4:2 * H4].astype(bf16)
    hf = h_all[:, 2 * H4:3 * H4].astype(bf16)
    m1 = jnp.tanh(jnp.dot(h1, w1b_ref[...], preferred_element_type=f32) + b1b_ref[...])
    m2 = jnp.tanh(jnp.dot(h2, w2b_ref[...], preferred_element_type=f32) + b2b_ref[...])
    ef = (jnp.dot(hf, wfb_ref[...], preferred_element_type=f32) + bfb_ref[...]) * mcol

    # ---- edge weights: relu(tanh(m1 m2^T - m2 m1^T)), masked; d is antisymmetric so
    #      relu(-d) is the exact transpose of relu(d) (used below to avoid transposes) ----
    dn = (((1,), (1,)), ((), ()))
    a12 = lax.dot_general(m1, m2, dn, preferred_element_type=f32)
    a21 = lax.dot_general(m2, m1, dn, preferred_element_type=f32)
    d = jnp.tanh(a12 - a21)
    mm = mcol * mrow
    ew = jnp.maximum(d, 0.0) * mm          # edge_weights (what PyTorch produces)
    ewT = jnp.maximum(-d, 0.0) * mm        # its exact transpose

    # ---- dense GCN (PyG GCNConv x2, symmetric norm with self loops, eval dropout) ----
    eye = (row2 == col2).astype(f32)
    A = ew + eye                           # A_hat
    A_t = ewT + eye                        # A_hat^T  (diag(ew) == 0 exactly)
    dinv_c = lax.rsqrt(jnp.sum(A_t, axis=1, keepdims=True))   # (S,1) col-degree^-1/2
    dinv_r = lax.rsqrt(jnp.sum(A, axis=0, keepdims=True))     # (1,S) same values
    Nt = dinv_c * A_t * dinv_r             # N^T = D^-1/2 A_hat^T D^-1/2

    agg1 = jnp.dot(Nt, ef, preferred_element_type=f32)
    g1 = jnp.maximum(jnp.dot(agg1.astype(bf16), gw1_ref[...],
                             preferred_element_type=f32) + gb1_ref[...], 0.0)
    agg2 = jnp.dot(Nt, g1, preferred_element_type=f32)
    g2 = jnp.maximum(jnp.dot(agg2.astype(bf16), gw2_ref[...],
                             preferred_element_type=f32) + gb2_ref[...], 0.0)

    # combined = encoder_output + gcn_output * mask
    o_ref[0] = enc + g2 * mcol


def graph_module(enc, mask_f, dgp, gcnp):
    B, S, H = enc.shape
    mcol = mask_f[:, :, None]   # (B, S, 1)
    mrow = mask_f[:, None, :]   # (B, 1, S)

    bf = lambda a: a.astype(jnp.bfloat16)
    row1 = lambda a: a.reshape(1, -1)

    inputs = [
        enc, mcol, mrow,
        bf(dgp["conv1_w"]), row1(dgp["conv1_b"]),
        bf(dgp["conv2_w"]), row1(dgp["conv2_b"]),
        bf(dgp["down_w"]), row1(dgp["down_b"]),
        bf(dgp["w1_cat"]), row1(dgp["b1_cat"]),
        bf(dgp["w1_l2"]), row1(dgp["b1_l2"]),
        bf(dgp["w2_l2"]), row1(dgp["b2_l2"]),
        bf(dgp["wf_l2"]), row1(dgp["bf_l2"]),
        bf(gcnp["w1"]), row1(gcnp["b1"]),
        bf(gcnp["w2"]), row1(gcnp["b2"]),
    ]

    def _const_spec(a):
        zeros = (0,) * a.ndim
        return pl.BlockSpec(a.shape, lambda b, z=zeros: z)

    in_specs = [
        pl.BlockSpec((1, S, H), lambda b: (b, 0, 0)),
        pl.BlockSpec((1, S, 1), lambda b: (b, 0, 0)),
        pl.BlockSpec((1, 1, S), lambda b: (b, 0, 0)),
    ] + [_const_spec(a) for a in inputs[3:]]

    return pl.pallas_call(
        _graph_kernel,
        grid=(B,),
        in_specs=in_specs,
        out_specs=pl.BlockSpec((1, S, H), lambda b: (b, 0, 0)),
        out_shape=jax.ShapeDtypeStruct((B, S, H), jnp.float32),
        compiler_params=pltpu.CompilerParams(dimension_semantics=("parallel",)),
    )(*inputs)


# --------------------------------------------------------------------------------------
# Model pieces (thin JAX glue around the Pallas kernels)
# --------------------------------------------------------------------------------------
def positional_encoding(num_pos, embed_dim):
    # Reproduces the (intentionally quirky) PyTorch PositionalEncoding formula.
    pos = jnp.arange(num_pos, dtype=jnp.float32)[:, None]
    idx = jnp.arange(embed_dim, dtype=jnp.float32)[None, :]
    enc = pos / jnp.power(10000.0, idx / embed_dim)
    even = (jnp.arange(embed_dim) % 2 == 0)[None, :]
    return jnp.where(even, jnp.sin(enc), jnp.cos(enc))


def transformer_stack(x, mask_bool, layers, nhead, out_row_scale=None):
    """nn.TransformerEncoder of post-norm nn.TransformerEncoderLayer (batch_first,
    dim_feedforward=2048, relu, eval-mode dropout), src_key_padding_mask = ~mask.
    out_row_scale (if given) is fused into the last layer's final-LN epilogue."""
    B, S, H = x.shape
    dh = H // nhead
    bias = jnp.where(mask_bool, 0.0, NEG_INF).astype(jnp.float32)[:, None, :]  # (B,1,S)
    n = len(layers)
    for li, p in enumerate(layers):
        xf = x.reshape(B * S, H)
        qkv = linear(xf, p["w_qkv"], p["b_qkv"])                        # (BS, 3H)
        qkv = qkv.reshape(B, S, 3, nhead, dh).transpose(2, 0, 3, 1, 4)   # (3,B,nh,S,dh)
        o = attention(qkv[0], qkv[1], qkv[2], bias)                     # (B,nh,S,dh)
        o = o.transpose(0, 2, 1, 3).reshape(B * S, H)
        h = linear(o, p["w_out"], p["b_out"], residual=xf,
                   ln=(p["ln1_g"], p["ln1_b"]))                         # LN1(x + attn)
        ff = linear(h, p["w_ff1"], p["b_ff1"], activation="relu")
        scale = out_row_scale if li == n - 1 else None
        x = linear(ff, p["w_ff2"], p["b_ff2"], residual=h,
                   ln=(p["ln2_g"], p["ln2_b"]), row_scale=scale).reshape(B, S, H)
    return x


def pretrain_forward(params, x, mask, *, nhead, patch_size, is_pretraining=True):
    B, L, F = x.shape
    H = params["pe_w"].shape[1]
    S = L // patch_size
    mask_f = mask.astype(jnp.float32)
    mask_flat = mask_f.reshape(B * S, 1)

    # PatchEmbedding + PositionalEncoding
    xp = x.reshape(B * S, patch_size * F)
    emb = linear(xp, params["pe_w"], params["pe_b"]).reshape(B, S, H)
    emb = emb + positional_encoding(S, H)[None]

    # Transformer encoder; the trailing "* mask" is fused into the last layer's LN.
    enc = transformer_stack(emb, mask, params["encoder"], nhead, out_row_scale=mask_flat)

    # DynamicGraphLearner + GCN + residual combine (single fused per-batch kernel).
    combined = graph_module(enc, mask_f, params["dg"], params["gcn"])

    if not is_pretraining:
        return combined

    dec = transformer_stack(combined, mask, params["decoder"], nhead, out_row_scale=mask_flat)
    return linear(dec.reshape(B * S, H), params["out_w"], params["out_b"])


# --------------------------------------------------------------------------------------
# Deterministic parameter initialization (PyTorch-style uniform fan-in init)
# --------------------------------------------------------------------------------------
def _init_linear(key, fan_in, fan_out):
    k1, k2 = jax.random.split(key)
    lim = 1.0 / (fan_in ** 0.5)
    w = jax.random.uniform(k1, (fan_in, fan_out), minval=-lim, maxval=lim, dtype=jnp.float32)
    b = jax.random.uniform(k2, (fan_out,), minval=-lim, maxval=lim, dtype=jnp.float32)
    return w, b


def _init_conv1d(key, cin, cout, k):
    k1, k2 = jax.random.split(key)
    lim = 1.0 / ((cin * k) ** 0.5)
    w = jax.random.uniform(k1, (cout, cin, k), minval=-lim, maxval=lim, dtype=jnp.float32)
    b = jax.random.uniform(k2, (cout,), minval=-lim, maxval=lim, dtype=jnp.float32)
    return w, b


def init_params(key, feature_dim, seq_len, hidden_dim, num_layers, patch_size, dim_ff=2048):
    H = hidden_dim
    S = seq_len // patch_size
    keys = iter(jax.random.split(key, 256))

    def lin(fi, fo):
        return _init_linear(next(keys), fi, fo)

    def enc_layer():
        p = {}
        p["w_qkv"], p["b_qkv"] = lin(H, 3 * H)
        p["w_out"], p["b_out"] = lin(H, H)
        p["w_ff1"], p["b_ff1"] = lin(H, dim_ff)
        p["w_ff2"], p["b_ff2"] = lin(dim_ff, H)
        p["ln1_g"] = jnp.ones((H,), jnp.float32); p["ln1_b"] = jnp.zeros((H,), jnp.float32)
        p["ln2_g"] = jnp.ones((H,), jnp.float32); p["ln2_b"] = jnp.zeros((H,), jnp.float32)
        return p

    params = {}
    params["pe_w"], params["pe_b"] = lin(patch_size * feature_dim, H)
    params["encoder"] = [enc_layer() for _ in range(num_layers)]
    params["decoder"] = [enc_layer() for _ in range(num_layers)]

    # DynamicGraphLearner(feature_dim=H, hidden_dim=2H, out_feature_dim=H, seq_len=S)
    dg = {}
    w, b = _init_conv1d(next(keys), H, 2 * H, 3)
    dg["conv1_w"] = jnp.transpose(w, (2, 1, 0)); dg["conv1_b"] = b      # (K, Cin, Cout)
    w, b = _init_conv1d(next(keys), 2 * H, 2 * H, 3)
    dg["conv2_w"] = jnp.transpose(w, (2, 1, 0)); dg["conv2_b"] = b
    w, b = _init_conv1d(next(keys), H, 2 * H, 1)
    dg["down_w"] = jnp.transpose(w[:, :, 0]); dg["down_b"] = b          # (H, 2H)

    w1a, b1a = lin(2 * H, 4 * H)   # mlp_weight1 layer 1
    w2a, b2a = lin(2 * H, 4 * H)   # mlp_weight2 layer 1
    wfa, bfa = lin(2 * H, 4 * H)   # mlp_features layer 1
    dg["w1_cat"] = jnp.concatenate([w1a, w2a, wfa], axis=1)             # (2H, 12H) fused
    dg["b1_cat"] = jnp.concatenate([b1a, b2a, bfa], axis=0)             # (12H,)
    dg["w1_l2"], dg["b1_l2"] = lin(4 * H, S)
    dg["w2_l2"], dg["b2_l2"] = lin(4 * H, S)
    dg["wf_l2"], dg["bf_l2"] = lin(4 * H, H)
    params["dg"] = dg

    gcn = {}
    gcn["w1"], gcn["b1"] = lin(H, 2 * H)
    gcn["w2"], gcn["b2"] = lin(2 * H, H)
    params["gcn"] = gcn

    params["out_w"], params["out_b"] = lin(H, feature_dim)
    return params


# --------------------------------------------------------------------------------------
if __name__ == "__main__":
    feature_dim = 4
    seq_len = 16
    hidden_dim = 32       # must be divisible by nhead=8
    num_layers = 1
    patch_size = 2
    nhead = 8
    B = 2
    S = seq_len // patch_size

    key = jax.random.PRNGKey(0)
    kx, kp = jax.random.split(key)
    x = jax.random.normal(kx, (B, seq_len, feature_dim), dtype=jnp.float32)
    # boolean validity mask over patches (True = valid); at least one valid per row
    mask = jnp.array([[True] * S, [True] * (S - 2) + [False] * 2], dtype=bool)

    params = init_params(kp, feature_dim, seq_len, hidden_dim, num_layers, patch_size)

    fwd = jax.jit(functools.partial(pretrain_forward, nhead=nhead, patch_size=patch_size))
    out = fwd(params, x, mask)
    jax.block_until_ready(out)

    assert out.shape == (B * S, feature_dim), out.shape
    assert bool(jnp.all(jnp.isfinite(out)))
    print("KERNEL_OK")
</pallas_src>

<mosaic_0001>
module attributes {stable_mosaic.version = 11 : i64} {
  func.func @_linear_kernel(%arg0: i32, %arg1: i32, %arg2: i32, %arg3: memref<16x8xf32, #tpu.memory_space<vmem>>, %arg4: memref<8x32xbf16, #tpu.memory_space<vmem>>, %arg5: memref<1x32xf32, #tpu.memory_space<vmem>>, %arg6: memref<16x32xf32, #tpu.memory_space<vmem>>, %arg7: memref<16x32xf32, #tpu.memory_space<vmem>>) attributes {dimension_semantics = [#tpu.dimension_semantics<parallel>, #tpu.dimension_semantics<parallel>, #tpu.dimension_semantics<arbitrary>], iteration_bounds = array<i64: 1, 1, 1>, scalar_prefetch = 0 : i64, scratch_operands = 1 : i64, tpu.core_type = #tpu.core_type<tc>, window_params = [{transform_indices = @transform_0, window_bounds = array<i64: 16, 8>}, {transform_indices = @transform_1, window_bounds = array<i64: 8, 32>}, {transform_indices = @transform_2, window_bounds = array<i64: 1, 32>}, {transform_indices = @transform_3, window_bounds = array<i64: 16, 32>}]} {
    %c0_i32 = arith.constant 0 : i32
    %0 = arith.cmpi eq, %arg2, %c0_i32 : i32
    %1 = arith.extui %0 : i1 to i32
    %c0_i32_0 = arith.constant 0 : i32
    %2 = arith.cmpi ne, %1, %c0_i32_0 : i32
    scf.if %2 {
      %cst_10 = arith.constant 0.000000e+00 : f32
      %13 = vector.broadcast %cst_10 : f32 to vector<16x32xf32>
      %c0_11 = arith.constant 0 : index
      %c0_12 = arith.constant 0 : index
      %14 = vector.load %arg7[%c0_11, %c0_12] : memref<16x32xf32, #tpu.memory_space<vmem>>, vector<16x32xf32>
      tpu.vector_store %arg7[%c0_11, %c0_12], %13 {strides = array<i32>} : memref<16x32xf32, #tpu.memory_space<vmem>>, vector<16x32xf32>,
    } else {
    }
    %c0 = arith.constant 0 : index
    %c0_1 = arith.constant 0 : index
    %3 = vector.load %arg7[%c0, %c0_1] : memref<16x32xf32, #tpu.memory_space<vmem>>, vector<16x32xf32>
    %c0_2 = arith.constant 0 : index
    %c0_3 = arith.constant 0 : index
    %4 = vector.load %arg3[%c0_2, %c0_3] : memref<16x8xf32, #tpu.memory_space<vmem>>, vector<16x8xf32>
    %5 = arith.truncf %4 : vector<16x8xf32> to vector<16x8xbf16>
    %c0_4 = arith.constant 0 : index
    %c0_5 = arith.constant 0 : index
    %6 = vector.load %arg4[%c0_4, %c0_5] : memref<8x32xbf16, #tpu.memory_space<vmem>>, vector<8x32xbf16>
    %cst = arith.constant dense<0.000000e+00> : vector<16x32xf32>
    %7 = tpu.matmul %5, %6, %cst {dimension_numbers = #tpu.dot_dimension_numbers<[1], [0], [0], [1], [0, 0, 1, 1], [], []>} : vector<16x8xbf16>, vector<8x32xbf16>, vector<16x32xf32> -> vector<16x32xf32>
    %8 = arith.addf %3, %7 : vector<16x32xf32>
    %c0_6 = arith.constant 0 : index
    %c0_7 = arith.constant 0 : index
    %9 = vector.load %arg7[%c0_6, %c0_7] : memref<16x32xf32, #tpu.memory_space<vmem>>, vector<16x32xf32>
    tpu.vector_store %arg7[%c0_6, %c0_7], %8 {strides = array<i32>} : memref<16x32xf32, #tpu.memory_space<vmem>>, vector<16x32xf32>,
    %c0_i32_8 = arith.constant 0 : i32
    %10 = arith.cmpi eq, %arg2, %c0_i32_8 : i32
    %11 = arith.extui %10 : i1 to i32
    %c0_i32_9 = arith.constant 0 : i32
    %12 = arith.cmpi ne, %11, %c0_i32_9 : i32
    scf.if %12 {
      %c0_10 = arith.constant 0 : index
      %c0_11 = arith.constant 0 : index
      %13 = vector.load %arg7[%c0_10, %c0_11] : memref<16x32xf32, #tpu.memory_space<vmem>>, vector<16x32xf32>
      %c0_12 = arith.constant 0 : index
      %c0_13 = arith.constant 0 : index
      %14 = vector.load %arg5[%c0_12, %c0_13] : memref<1x32xf32, #tpu.memory_space<vmem>>, vector<1x32xf32>
      %15 = vector.broadcast %14 : vector<1x32xf32> to vector<16x32xf32>
      %16 = arith.addf %13, %15 : vector<16x32xf32>
      %c0_14 = arith.constant 0 : index
      %c0_15 = arith.constant 0 : index
      %17 = vector.load %arg6[%c0_14, %c0_15] : memref<16x32xf32, #tpu.memory_space<vmem>>, vector<16x32xf32>
      tpu.vector_store %arg6[%c0_14, %c0_15], %16 {strides = array<i32>} : memref<16x32xf32, #tpu.memory_space<vmem>>, vector<16x32xf32>,
    } else {
    }
    return
  }
  func.func @transform_0(%arg0: i32, %arg1: i32, %arg2: i32) -> (i32, i32) {
    %c0_i32 = arith.constant 0 : i32
    return %arg0, %arg2 : i32, i32
  }
  func.func @transform_1(%arg0: i32, %arg1: i32, %arg2: i32) -> (i32, i32) {
    %c0_i32 = arith.constant 0 : i32
    return %arg2, %arg1 : i32, i32
  }
  func.func @transform_2(%arg0: i32, %arg1: i32, %arg2: i32) -> (i32, i32) {
    %c0_i32 = arith.constant 0 : i32
    %c0_i32_0 = arith.constant 0 : i32
    return %c0_i32, %arg1 : i32, i32
  }
  func.func @transform_3(%arg0: i32, %arg1: i32, %arg2: i32) -> (i32, i32) {
    %c0_i32 = arith.constant 0 : i32
    return %arg0, %arg1 : i32, i32
  }
}

module attributes {stable_mosaic.version = 11 : i64} {
  func.func @_linear_kernel(%arg0: i32, %arg1: i32, %arg2: i32, %arg3: memref<16x32xf32, #tpu.memory_space<vmem>>, %arg4: memref<32x96xbf16, #tpu.memory_space<vmem>>, %arg5: memref<1x96xf32, #tpu.memory_space<vmem>>, %arg6: memref<16x96xf32, #tpu.memory_space<vmem>>, %arg7: memref<16x96xf32, #tpu.memory_space<vmem>>) attributes {dimension_semantics = [#tpu.dimension_semantics<parallel>, #tpu.dimension_semantics<parallel>, #tpu.dimension_semantics<arbitrary>], iteration_bounds = array<i64: 1, 1, 1>, scalar_prefetch = 0 : i64, scratch_operands = 1 : i64, tpu.core_type = #tpu.core_type<tc>, window_params = [{transform_indices = @transform_0, window_bounds = array<i64: 16, 32>}, {transform_indices = @transform_1, window_bounds = array<i64: 32, 96>}, {transform_indices = @transform_2, window_bounds = array<i64: 1, 96>}, {transform_indices = @transform_3, window_bounds = array<i64: 16, 96>}]} {
    %c0_i32 = arith.constant 0 : i32
    %0 = arith.cmpi eq, %arg2, %c0_i32 : i32
    %1 = arith.extui %0 : i1 to i32
    %c0_i32_0 = arith.constant 0 : i32
    %2 = arith.cmpi ne, %1, %c0_i32_0 : i32
    scf.if %2 {
      %cst_10 = arith.constant 0.000000e+00 : f32
      %13 = vector.broadcast %cst_10 : f32 to vector<16x96xf32>
      %c0_11 = arith.constant 0 : index
      %c0_12 = arith.constant 0 : index
      %14 = vector.load %arg7[%c0_11, %c0_12] : memref<16x96xf32, #tpu.memory_space<vmem>>, vector<16x96xf32>
      tpu.vector_store %arg7[%c0_11, %c0_12], %13 {strides = array<i32>} : memref<16x96xf32, #tpu.memory_space<vmem>>, vector<16x96xf32>,
    } else {
    }
    %c0 = arith.constant 0 : index
    %c0_1 = arith.constant 0 : index
    %3 = vector.load %arg7[%c0, %c0_1] : memref<16x96xf32, #tpu.memory_space<vmem>>, vector<16x96xf32>
    %c0_2 = arith.constant 0 : index
    %c0_3 = arith.constant 0 : index
    %4 = vector.load %arg3[%c0_2, %c0_3] : memref<16x32xf32, #tpu.memory_space<vmem>>, vector<16x32xf32>
    %5 = arith.truncf %4 : vector<16x32xf32> to vector<16x32xbf16>
    %c0_4 = arith.constant 0 : index
    %c0_5 = arith.constant 0 : index
    %6 = vector.load %arg4[%c0_4, %c0_5] : memref<32x96xbf16, #tpu.memory_space<vmem>>, vector<32x96xbf16>
    %cst = arith.constant dense<0.000000e+00> : vector<16x96xf32>
    %7 = tpu.matmul %5, %6, %cst {dimension_numbers = #tpu.dot_dimension_numbers<[1], [0], [0], [1], [0, 0, 1, 1], [], []>} : vector<16x32xbf16>, vector<32x96xbf16>, vector<16x96xf32> -> vector<16x96xf32>
    %8 = arith.addf %3, %7 : vector<16x96xf32>
    %c0_6 = arith.constant 0 : index
    %c0_7 = arith.constant 0 : index
    %9 = vector.load %arg7[%c0_6, %c0_7] : memref<16x96xf32, #tpu.memory_space<vmem>>, vector<16x96xf32>
    tpu.vector_store %arg7[%c0_6, %c0_7], %8 {strides = array<i32>} : memref<16x96xf32, #tpu.memory_space<vmem>>, vector<16x96xf32>,
    %c0_i32_8 = arith.constant 0 : i32
    %10 = arith.cmpi eq, %arg2, %c0_i32_8 : i32
    %11 = arith.extui %10 : i1 to i32
    %c0_i32_9 = arith.constant 0 : i32
    %12 = arith.cmpi ne, %11, %c0_i32_9 : i32
    scf.if %12 {
      %c0_10 = arith.constant 0 : index
      %c0_11 = arith.constant 0 : index
      %13 = vector.load %arg7[%c0_10, %c0_11] : memref<16x96xf32, #tpu.memory_space<vmem>>, vector<16x96xf32>
      %c0_12 = arith.constant 0 : index
      %c0_13 = arith.constant 0 : index
      %14 = vector.load %arg5[%c0_12, %c0_13] : memref<1x96xf32, #tpu.memory_space<vmem>>, vector<1x96xf32>
      %15 = vector.broadcast %14 : vector<1x96xf32> to vector<16x96xf32>
      %16 = arith.addf %13, %15 : vector<16x96xf32>
      %c0_14 = arith.constant 0 : index
      %c0_15 = arith.constant 0 : index
      %17 = vector.load %arg6[%c0_14, %c0_15] : memref<16x96xf32, #tpu.memory_space<vmem>>, vector<16x96xf32>
      tpu.vector_store %arg6[%c0_14, %c0_15], %16 {strides = array<i32>} : memref<16x96xf32, #tpu.memory_space<vmem>>, vector<16x96xf32>,
    } else {
    }
    return
  }
  func.func @transform_0(%arg0: i32, %arg1: i32, %arg2: i32) -> (i32, i32) {
    %c0_i32 = arith.constant 0 : i32
    return %arg0, %arg2 : i32, i32
  }
  func.func @transform_1(%arg0: i32, %arg1: i32, %arg2: i32) -> (i32, i32) {
    %c0_i32 = arith.constant 0 : i32
    return %arg2, %arg1 : i32, i32
  }
  func.func @transform_2(%arg0: i32, %arg1: i32, %arg2: i32) -> (i32, i32) {
    %c0_i32 = arith.constant 0 : i32
    %c0_i32_0 = arith.constant 0 : i32
    return %c0_i32, %arg1 : i32, i32
  }
  func.func @transform_3(%arg0: i32, %arg1: i32, %arg2: i32) -> (i32, i32) {
    %c0_i32 = arith.constant 0 : i32
    return %arg0, %arg1 : i32, i32
  }
}

module attributes {stable_mosaic.version = 11 : i64} {
  func.func @_attn_kernel(%arg0: i32, %arg1: memref<1x8x8x4xf32, #tpu.memory_space<vmem>>, %arg2: memref<1x8x8x4xf32, #tpu.memory_space<vmem>>, %arg3: memref<1x8x8x4xf32, #tpu.memory_space<vmem>>, %arg4: memref<1x1x8xf32, #tpu.memory_space<vmem>>, %arg5: memref<1x8x8x4xf32, #tpu.memory_space<vmem>>) attributes {dimension_semantics = [#tpu.dimension_semantics<parallel>], iteration_bounds = array<i64: 2>, scalar_prefetch = 0 : i64, scratch_operands = 0 : i64, tpu.core_type = #tpu.core_type<tc>, window_params = [{transform_indices = @transform_0, window_bounds = array<i64: 1, 8, 8, 4>}, {transform_indices = @transform_1, window_bounds = array<i64: 1, 8, 8, 4>}, {transform_indices = @transform_2, window_bounds = array<i64: 1, 8, 8, 4>}, {transform_indices = @transform_3, window_bounds = array<i64: 1, 1, 8>}, {transform_indices = @transform_4, window_bounds = array<i64: 1, 8, 8, 4>}]} {
    %c0 = arith.constant 0 : index
    %c0_0 = arith.constant 0 : index
    %c0_1 = arith.constant 0 : index
    %c0_2 = arith.constant 0 : index
    %0 = vector.load %arg1[%c0, %c0_0, %c0_1, %c0_2] : memref<1x8x8x4xf32, #tpu.memory_space<vmem>>, vector<1x8x8x4xf32>
    %1 = vector.shape_cast %0 : vector<1x8x8x4xf32> to vector<8x8x4xf32>
    %2 = arith.truncf %1 : vector<8x8x4xf32> to vector<8x8x4xbf16>
    %c0_3 = arith.constant 0 : index
    %c0_4 = arith.constant 0 : index
    %c0_5 = arith.constant 0 : index
    %c0_6 = arith.constant 0 : index
    %3 = vector.load %arg2[%c0_3, %c0_4, %c0_5, %c0_6] : memref<1x8x8x4xf32, #tpu.memory_space<vmem>>, vector<1x8x8x4xf32>
    %4 = vector.shape_cast %3 : vector<1x8x8x4xf32> to vector<8x8x4xf32>
    %5 = arith.truncf %4 : vector<8x8x4xf32> to vector<8x8x4xbf16>
    %c0_7 = arith.constant 0 : index
    %c0_8 = arith.constant 0 : index
    %c0_9 = arith.constant 0 : index
    %c0_10 = arith.constant 0 : index
    %6 = vector.load %arg3[%c0_7, %c0_8, %c0_9, %c0_10] : memref<1x8x8x4xf32, #tpu.memory_space<vmem>>, vector<1x8x8x4xf32>
    %7 = vector.shape_cast %6 : vector<1x8x8x4xf32> to vector<8x8x4xf32>
    %8 = arith.truncf %7 : vector<8x8x4xf32> to vector<8x8x4xbf16>
    %c0_11 = arith.constant 0 : index
    %c0_12 = arith.constant 0 : index
    %c0_13 = arith.constant 0 : index
    %9 = vector.load %arg4[%c0_11, %c0_12, %c0_13] : memref<1x1x8xf32, #tpu.memory_space<vmem>>, vector<1x1x8xf32>
    %10 = vector.shape_cast %9 : vector<1x1x8xf32> to vector<1x8xf32>
    "tpu.trace_start"() <{level = 10 : i32, message = "hqd,hkd->hqk"}> : () -> ()
    %cst = arith.constant dense<0.000000e+00> : vector<8x8x8xf32>
    %11 = tpu.matmul %2, %5, %cst {dimension_numbers = #tpu.dot_dimension_numbers<[2], [2], [1], [1], [0, 0, 0, 1, 1, 1], [0], [0]>} : vector<8x8x4xbf16>, vector<8x8x4xbf16>, vector<8x8x8xf32> -> vector<8x8x8xf32>
    "tpu.trace_stop"() : () -> ()
    %cst_14 = arith.constant 5.000000e-01 : f32
    %12 = vector.broadcast %cst_14 : f32 to vector<8x8x8xf32>
    %13 = arith.mulf %11, %12 : vector<8x8x8xf32>
    %14 = vector.shape_cast %10 : vector<1x8xf32> to vector<1x1x8xf32>
    %15 = vector.broadcast %14 : vector<1x1x8xf32> to vector<8x8x8xf32>
    %16 = arith.addf %13, %15 : vector<8x8x8xf32>
    %cst_15 = arith.constant dense<0xFF800000> : vector<8x8xf32>
    %17 = vector.multi_reduction <maximumf>, %16, %cst_15 [2] : vector<8x8x8xf32> to vector<8x8xf32>
    %18 = vector.shape_cast %17 : vector<8x8xf32> to vector<8x8x1xf32>
    %19 = vector.broadcast %18 : vector<8x8x1xf32> to vector<8x8x8xf32>
    %20 = arith.subf %16, %19 : vector<8x8x8xf32>
    %21 = math.exp %20 : vector<8x8x8xf32>
    %cst_16 = arith.constant dense<0.000000e+00> : vector<8x8xf32>
    %22 = vector.multi_reduction <add>, %21, %cst_16 [2] : vector<8x8x8xf32> to vector<8x8xf32>
    %23 = vector.shape_cast %22 : vector<8x8xf32> to vector<8x8x1xf32>
    %24 = tpu.reciprocal %23 {approx = true} : vector<8x8x1xf32> -> vector<8x8x1xf32>
    %25 = vector.broadcast %24 : vector<8x8x1xf32> to vector<8x8x8xf32>
    %26 = arith.mulf %21, %25 : vector<8x8x8xf32>
    %27 = arith.truncf %26 : vector<8x8x8xf32> to vector<8x8x8xbf16>
    "tpu.trace_start"() <{level = 10 : i32, message = "hqk,hkd->hqd"}> : () -> ()
    %cst_17 = arith.constant dense<0.000000e+00> : vector<8x8x4xf32>
    %28 = tpu.matmul %27, %8, %cst_17 {dimension_numbers = #tpu.dot_dimension_numbers<[2], [1], [1], [2], [0, 0, 0, 1, 1, 2], [0], [0]>} : vector<8x8x8xbf16>, vector<8x8x4xbf16>, vector<8x8x4xf32> -> vector<8x8x4xf32>
    "tpu.trace_stop"() : () -> ()
    %c0_18 = arith.constant 0 : index
    %c0_19 = arith.constant 0 : index
    %c0_20 = arith.constant 0 : index
    %c0_21 = arith.constant 0 : index
    %29 = vector.load %arg5[%c0_18, %c0_19, %c0_20, %c0_21] : memref<1x8x8x4xf32, #tpu.memory_space<vmem>>, vector<1x8x8x4xf32>
    %30 = vector.shape_cast %29 : vector<1x8x8x4xf32> to vector<8x8x4xf32>
    %31 = vector.shape_cast %28 : vector<8x8x4xf32> to vector<1x8x8x4xf32>
    tpu.vector_store %arg5[%c0_18, %c0_19, %c0_20, %c0_21], %31 {strides = array<i32>} : memref<1x8x8x4xf32, #tpu.memory_space<vmem>>, vector<1x8x8x4xf32>,
    return
  }
  func.func @transform_0(%arg0: i32) -> (i32, i32, i32, i32) {
    %c0_i32 = arith.constant 0 : i32
    %c0_i32_0 = arith.constant 0 : i32
    %c0_i32_1 = arith.constant 0 : i32
    %c0_i32_2 = arith.constant 0 : i32
    return %arg0, %c0_i32, %c0_i32_0, %c0_i32_1 : i32, i32, i32, i32
  }
  func.func @transform_1(%arg0: i32) -> (i32, i32, i32, i32) {
    %c0_i32 = arith.constant 0 : i32
    %c0_i32_0 = arith.constant 0 : i32
    %c0_i32_1 = arith.constant 0 : i32
    %c0_i32_2 = arith.constant 0 : i32
    return %arg0, %c0_i32, %c0_i32_0, %c0_i32_1 : i32, i32, i32, i32
  }
  func.func @transform_2(%arg0: i32) -> (i32, i32, i32, i32) {
    %c0_i32 = arith.constant 0 : i32
    %c0_i32_0 = arith.constant 0 : i32
    %c0_i32_1 = arith.constant 0 : i32
    %c0_i32_2 = arith.constant 0 : i32
    return %arg0, %c0_i32, %c0_i32_0, %c0_i32_1 : i32, i32, i32, i32
  }
  func.func @transform_3(%arg0: i32) -> (i32, i32, i32) {
    %c0_i32 = arith.constant 0 : i32
    %c0_i32_0 = arith.constant 0 : i32
    %c0_i32_1 = arith.constant 0 : i32
    return %arg0, %c0_i32, %c0_i32_0 : i32, i32, i32
  }
  func.func @transform_4(%arg0: i32) -> (i32, i32, i32, i32) {
    %c0_i32 = arith.constant 0 : i32
    %c0_i32_0 = arith.constant 0 : i32
    %c0_i32_1 = arith.constant 0 : i32
    %c0_i32_2 = arith.constant 0 : i32
    return %arg0, %c0_i32, %c0_i32_0, %c0_i32_1 : i32, i32, i32, i32
  }
}

module attributes {stable_mosaic.version = 11 : i64} {
  func.func @_linear_kernel(%arg0: i32, %arg1: i32, %arg2: i32, %arg3: memref<16x32xf32, #tpu.memory_space<vmem>>, %arg4: memref<32x32xbf16, #tpu.memory_space<vmem>>, %arg5: memref<1x32xf32, #tpu.memory_space<vmem>>, %arg6: memref<16x32xf32, #tpu.memory_space<vmem>>, %arg7: memref<1x32xf32, #tpu.memory_space<vmem>>, %arg8: memref<1x32xf32, #tpu.memory_space<vmem>>, %arg9: memref<16x32xf32, #tpu.memory_space<vmem>>, %arg10: memref<16x32xf32, #tpu.memory_space<vmem>>) attributes {dimension_semantics = [#tpu.dimension_semantics<parallel>, #tpu.dimension_semantics<parallel>, #tpu.dimension_semantics<arbitrary>], iteration_bounds = array<i64: 1, 1, 1>, scalar_prefetch = 0 : i64, scratch_operands = 1 : i64, tpu.core_type = #tpu.core_type<tc>, window_params = [{transform_indices = @transform_0, window_bounds = array<i64: 16, 32>}, {transform_indices = @transform_1, window_bounds = array<i64: 32, 32>}, {transform_indices = @transform_2, window_bounds = array<i64: 1, 32>}, {transform_indices = @transform_3, window_bounds = array<i64: 16, 32>}, {transform_indices = @transform_4, window_bounds = array<i64: 1, 32>}, {transform_indices = @transform_5, window_bounds = array<i64: 1, 32>}, {transform_indices = @transform_6, window_bounds = array<i64: 16, 32>}]} {
    %c0_i32 = arith.constant 0 : i32
    %0 = arith.cmpi eq, %arg2, %c0_i32 : i32
    %1 = arith.extui %0 : i1 to i32
    %c0_i32_0 = arith.constant 0 : i32
    %2 = arith.cmpi ne, %1, %c0_i32_0 : i32
    scf.if %2 {
      %cst_10 = arith.constant 0.000000e+00 : f32
      %13 = vector.broadcast %cst_10 : f32 to vector<16x32xf32>
      %c0_11 = arith.constant 0 : index
      %c0_12 = arith.constant 0 : index
      %14 = vector.load %arg10[%c0_11, %c0_12] : memref<16x32xf32, #tpu.memory_space<vmem>>, vector<16x32xf32>
      tpu.vector_store %arg10[%c0_11, %c0_12], %13 {strides = array<i32>} : memref<16x32xf32, #tpu.memory_space<vmem>>, vector<16x32xf32>,
    } else {
    }
    %c0 = arith.constant 0 : index
    %c0_1 = arith.constant 0 : index
    %3 = vector.load %arg10[%c0, %c0_1] : memref<16x32xf32, #tpu.memory_space<vmem>>, vector<16x32xf32>
    %c0_2 = arith.constant 0 : index
    %c0_3 = arith.constant 0 : index
    %4 = vector.load %arg3[%c0_2, %c0_3] : memref<16x32xf32, #tpu.memory_space<vmem>>, vector<16x32xf32>
    %5 = arith.truncf %4 : vector<16x32xf32> to vector<16x32xbf16>
    %c0_4 = arith.constant 0 : index
    %c0_5 = arith.constant 0 : index
    %6 = vector.load %arg4[%c0_4, %c0_5] : memref<32x32xbf16, #tpu.memory_space<vmem>>, vector<32x32xbf16>
    %cst = arith.constant dense<0.000000e+00> : vector<16x32xf32>
    %7 = tpu.matmul %5, %6, %cst {dimension_numbers = #tpu.dot_dimension_numbers<[1], [0], [0], [1], [0, 0, 1, 1], [], []>} : vector<16x32xbf16>, vector<32x32xbf16>, vector<16x32xf32> -> vector<16x32xf32>
    %8 = arith.addf %3, %7 : vector<16x32xf32>
    %c0_6 = arith.constant 0 : index
    %c0_7 = arith.constant 0 : index
    %9 = vector.load %arg10[%c0_6, %c0_7] : memref<16x32xf32, #tpu.memory_space<vmem>>, vector<16x32xf32>
    tpu.vector_store %arg10[%c0_6, %c0_7], %8 {strides = array<i32>} : memref<16x32xf32, #tpu.memory_space<vmem>>, vector<16x32xf32>,
    %c0_i32_8 = arith.constant 0 : i32
    %10 = arith.cmpi eq, %arg2, %c0_i32_8 : i32
    %11 = arith.extui %10 : i1 to i32
    %c0_i32_9 = arith.constant 0 : i32
    %12 = arith.cmpi ne, %11, %c0_i32_9 : i32
    scf.if %12 {
      %c0_10 = arith.constant 0 : index
      %c0_11 = arith.constant 0 : index
      %13 = vector.load %arg10[%c0_10, %c0_11] : memref<16x32xf32, #tpu.memory_space<vmem>>, vector<16x32xf32>
      %c0_12 = arith.constant 0 : index
      %c0_13 = arith.constant 0 : index
      %14 = vector.load %arg5[%c0_12, %c0_13] : memref<1x32xf32, #tpu.memory_space<vmem>>, vector<1x32xf32>
      %15 = vector.broadcast %14 : vector<1x32xf32> to vector<16x32xf32>
      %16 = arith.addf %13, %15 : vector<16x32xf32>
      %c0_14 = arith.constant 0 : index
      %c0_15 = arith.constant 0 : index
      %17 = vector.load %arg6[%c0_14, %c0_15] : memref<16x32xf32, #tpu.memory_space<vmem>>, vector<16x32xf32>
      %18 = arith.addf %16, %17 : vector<16x32xf32>
      %cst_16 = arith.constant dense<0.000000e+00> : vector<16xf32>
      %19 = vector.multi_reduction <add>, %18, %cst_16 [1] : vector<16x32xf32> to vector<16xf32>
      %20 = vector.shape_cast %19 : vector<16xf32> to vector<16x1xf32>
      %cst_17 = arith.constant 3.200000e+01 : f32
      %21 = vector.broadcast %cst_17 : f32 to vector<16x1xf32>
      %22 = arith.divf %20, %21 : vector<16x1xf32>
      %23 = vector.broadcast %22 : vector<16x1xf32> to vector<16x32xf32>
      %24 = arith.subf %18, %23 : vector<16x32xf32>
      %25 = arith.mulf %24, %24 : vector<16x32xf32>
      %cst_18 = arith.constant dense<0.000000e+00> : vector<16xf32>
      %26 = vector.multi_reduction <add>, %25, %cst_18 [1] : vector<16x32xf32> to vector<16xf32>
      %27 = vector.shape_cast %26 : vector<16xf32> to vector<16x1xf32>
      %cst_19 = arith.constant 3.200000e+01 : f32
      %28 = vector.broadcast %cst_19 : f32 to vector<16x1xf32>
      %29 = arith.divf %27, %28 : vector<16x1xf32>
      %30 = vector.broadcast %22 : vector<16x1xf32> to vector<16x32xf32>
      %31 = arith.subf %18, %30 : vector<16x32xf32>
      %cst_20 = arith.constant 9.99999974E-6 : f32
      %32 = vector.broadcast %cst_20 : f32 to vector<16x1xf32>
      %33 = arith.addf %29, %32 : vector<16x1xf32>
      %34 = math.rsqrt %33 : vector<16x1xf32>
      %35 = vector.broadcast %34 : vector<16x1xf32> to vector<16x32xf32>
      %36 = arith.mulf %31, %35 : vector<16x32xf32>
      %c0_21 = arith.constant 0 : index
      %c0_22 = arith.constant 0 : index
      %37 = vector.load %arg7[%c0_21, %c0_22] : memref<1x32xf32, #tpu.memory_space<vmem>>, vector<1x32xf32>
      %38 = vector.broadcast %37 : vector<1x32xf32> to vector<16x32xf32>
      %39 = arith.mulf %36, %38 : vector<16x32xf32>
      %c0_23 = arith.constant 0 : index
      %c0_24 = arith.constant 0 : index
      %40 = vector.load %arg8[%c0_23, %c0_24] : memref<1x32xf32, #tpu.memory_space<vmem>>, vector<1x32xf32>
      %41 = vector.broadcast %40 : vector<1x32xf32> to vector<16x32xf32>
      %42 = arith.addf %39, %41 : vector<16x32xf32>
      %c0_25 = arith.constant 0 : index
      %c0_26 = arith.constant 0 : index
      %43 = vector.load %arg9[%c0_25, %c0_26] : memref<16x32xf32, #tpu.memory_space<vmem>>, vector<16x32xf32>
      tpu.vector_store %arg9[%c0_25, %c0_26], %42 {strides = array<i32>} : memref<16x32xf32, #tpu.memory_space<vmem>>, vector<16x32xf32>,
    } else {
    }
    return
  }
  func.func @transform_0(%arg0: i32, %arg1: i32, %arg2: i32) -> (i32, i32) {
    %c0_i32 = arith.constant 0 : i32
    return %arg0, %arg2 : i32, i32
  }
  func.func @transform_1(%arg0: i32, %arg1: i32, %arg2: i32) -> (i32, i32) {
    %c0_i32 = arith.constant 0 : i32
    return %arg2, %arg1 : i32, i32
  }
  func.func @transform_2(%arg0: i32, %arg1: i32, %arg2: i32) -> (i32, i32) {
    %c0_i32 = arith.constant 0 : i32
    %c0_i32_0 = arith.constant 0 : i32
    return %c0_i32, %arg1 : i32, i32
  }
  func.func @transform_3(%arg0: i32, %arg1: i32, %arg2: i32) -> (i32, i32) {
    %c0_i32 = arith.constant 0 : i32
    return %arg0, %arg1 : i32, i32
  }
  func.func @transform_4(%arg0: i32, %arg1: i32, %arg2: i32) -> (i32, i32) {
    %c0_i32 = arith.constant 0 : i32
    %c0_i32_0 = arith.constant 0 : i32
    return %c0_i32, %arg1 : i32, i32
  }
  func.func @transform_5(%arg0: i32, %arg1: i32, %arg2: i32) -> (i32, i32) {
    %c0_i32 = arith.constant 0 : i32
    %c0_i32_0 = arith.constant 0 : i32
    return %c0_i32, %arg1 : i32, i32
  }
  func.func @transform_6(%arg0: i32, %arg1: i32, %arg2: i32) -> (i32, i32) {
    %c0_i32 = arith.constant 0 : i32
    return %arg0, %arg1 : i32, i32
  }
}

module attributes {stable_mosaic.version = 11 : i64} {
  func.func @_linear_kernel(%arg0: i32, %arg1: i32, %arg2: i32, %arg3: memref<16x32xf32, #tpu.memory_space<vmem>>, %arg4: memref<32x512xbf16, #tpu.memory_space<vmem>>, %arg5: memref<1x512xf32, #tpu.memory_space<vmem>>, %arg6: memref<16x512xf32, #tpu.memory_space<vmem>>, %arg7: memref<16x512xf32, #tpu.memory_space<vmem>>) attributes {dimension_semantics = [#tpu.dimension_semantics<parallel>, #tpu.dimension_semantics<parallel>, #tpu.dimension_semantics<arbitrary>], iteration_bounds = array<i64: 1, 4, 1>, scalar_prefetch = 0 : i64, scratch_operands = 1 : i64, tpu.core_type = #tpu.core_type<tc>, window_params = [{transform_indices = @transform_0, window_bounds = array<i64: 16, 32>}, {transform_indices = @transform_1, window_bounds = array<i64: 32, 512>}, {transform_indices = @transform_2, window_bounds = array<i64: 1, 512>}, {transform_indices = @transform_3, window_bounds = array<i64: 16, 512>}]} {
    %c0_i32 = arith.constant 0 : i32
    %0 = arith.cmpi eq, %arg2, %c0_i32 : i32
    %1 = arith.extui %0 : i1 to i32
    %c0_i32_0 = arith.constant 0 : i32
    %2 = arith.cmpi ne, %1, %c0_i32_0 : i32
    scf.if %2 {
      %cst_10 = arith.constant 0.000000e+00 : f32
      %13 = vector.broadcast %cst_10 : f32 to vector<16x512xf32>
      %c0_11 = arith.constant 0 : index
      %c0_12 = arith.constant 0 : index
      %14 = vector.load %arg7[%c0_11, %c0_12] : memref<16x512xf32, #tpu.memory_space<vmem>>, vector<16x512xf32>
      tpu.vector_store %arg7[%c0_11, %c0_12], %13 {strides = array<i32>} : memref<16x512xf32, #tpu.memory_space<vmem>>, vector<16x512xf32>,
    } else {
    }
    %c0 = arith.constant 0 : index
    %c0_1 = arith.constant 0 : index
    %3 = vector.load %arg7[%c0, %c0_1] : memref<16x512xf32, #tpu.memory_space<vmem>>, vector<16x512xf32>
    %c0_2 = arith.constant 0 : index
    %c0_3 = arith.constant 0 : index
    %4 = vector.load %arg3[%c0_2, %c0_3] : memref<16x32xf32, #tpu.memory_space<vmem>>, vector<16x32xf32>
    %5 = arith.truncf %4 : vector<16x32xf32> to vector<16x32xbf16>
    %c0_4 = arith.constant 0 : index
    %c0_5 = arith.constant 0 : index
    %6 = vector.load %arg4[%c0_4, %c0_5] : memref<32x512xbf16, #tpu.memory_space<vmem>>, vector<32x512xbf16>
    %cst = arith.constant dense<0.000000e+00> : vector<16x512xf32>
    %7 = tpu.matmul %5, %6, %cst {dimension_numbers = #tpu.dot_dimension_numbers<[1], [0], [0], [1], [0, 0, 1, 1], [], []>} : vector<16x32xbf16>, vector<32x512xbf16>, vector<16x512xf32> -> vector<16x512xf32>
    %8 = arith.addf %3, %7 : vector<16x512xf32>
    %c0_6 = arith.constant 0 : index
    %c0_7 = arith.constant 0 : index
    %9 = vector.load %arg7[%c0_6, %c0_7] : memref<16x512xf32, #tpu.memory_space<vmem>>, vector<16x512xf32>
    tpu.vector_store %arg7[%c0_6, %c0_7], %8 {strides = array<i32>} : memref<16x512xf32, #tpu.memory_space<vmem>>, vector<16x512xf32>,
    %c0_i32_8 = arith.constant 0 : i32
    %10 = arith.cmpi eq, %arg2, %c0_i32_8 : i32
    %11 = arith.extui %10 : i1 to i32
    %c0_i32_9 = arith.constant 0 : i32
    %12 = arith.cmpi ne, %11, %c0_i32_9 : i32
    scf.if %12 {
      %c0_10 = arith.constant 0 : index
      %c0_11 = arith.constant 0 : index
      %13 = vector.load %arg7[%c0_10, %c0_11] : memref<16x512xf32, #tpu.memory_space<vmem>>, vector<16x512xf32>
      %c0_12 = arith.constant 0 : index
      %c0_13 = arith.constant 0 : index
      %14 = vector.load %arg5[%c0_12, %c0_13] : memref<1x512xf32, #tpu.memory_space<vmem>>, vector<1x512xf32>
      %15 = vector.broadcast %14 : vector<1x512xf32> to vector<16x512xf32>
      %16 = arith.addf %13, %15 : vector<16x512xf32>
      %cst_14 = arith.constant 0.000000e+00 : f32
      %17 = vector.broadcast %cst_14 : f32 to vector<16x512xf32>
      %18 = arith.maximumf %16, %17 : vector<16x512xf32>
      %c0_15 = arith.constant 0 : index
      %c0_16 = arith.constant 0 : index
      %19 = vector.load %arg6[%c0_15, %c0_16] : memref<16x512xf32, #tpu.memory_space<vmem>>, vector<16x512xf32>
      tpu.vector_store %arg6[%c0_15, %c0_16], %18 {strides = array<i32>} : memref<16x512xf32, #tpu.memory_space<vmem>>, vector<16x512xf32>,
    } else {
    }
    return
  }
  func.func @transform_0(%arg0: i32, %arg1: i32, %arg2: i32) -> (i32, i32) {
    %c0_i32 = arith.constant 0 : i32
    return %arg0, %arg2 : i32, i32
  }
  func.func @transform_1(%arg0: i32, %arg1: i32, %arg2: i32) -> (i32, i32) {
    %c0_i32 = arith.constant 0 : i32
    return %arg2, %arg1 : i32, i32
  }
  func.func @transform_2(%arg0: i32, %arg1: i32, %arg2: i32) -> (i32, i32) {
    %c0_i32 = arith.constant 0 : i32
    %c0_i32_0 = arith.constant 0 : i32
    return %c0_i32, %arg1 : i32, i32
  }
  func.func @transform_3(%arg0: i32, %arg1: i32, %arg2: i32) -> (i32, i32) {
    %c0_i32 = arith.constant 0 : i32
    return %arg0, %arg1 : i32, i32
  }
}

module attributes {stable_mosaic.version = 11 : i64} {
  func.func @_linear_kernel(%arg0: i32, %arg1: i32, %arg2: i32, %arg3: memref<16x512xf32, #tpu.memory_space<vmem>>, %arg4: memref<512x32xbf16, #tpu.memory_space<vmem>>, %arg5: memref<1x32xf32, #tpu.memory_space<vmem>>, %arg6: memref<16x32xf32, #tpu.memory_space<vmem>>, %arg7: memref<1x32xf32, #tpu.memory_space<vmem>>, %arg8: memref<1x32xf32, #tpu.memory_space<vmem>>, %arg9: memref<16x1xf32, #tpu.memory_space<vmem>>, %arg10: memref<16x32xf32, #tpu.memory_space<vmem>>, %arg11: memref<16x32xf32, #tpu.memory_space<vmem>>) attributes {dimension_semantics = [#tpu.dimension_semantics<parallel>, #tpu.dimension_semantics<parallel>, #tpu.dimension_semantics<arbitrary>], iteration_bounds = array<i64: 1, 1, 4>, scalar_prefetch = 0 : i64, scratch_operands = 1 : i64, tpu.core_type = #tpu.core_type<tc>, window_params = [{transform_indices = @transform_0, window_bounds = array<i64: 16, 512>}, {transform_indices = @transform_1, window_bounds = array<i64: 512, 32>}, {transform_indices = @transform_2, window_bounds = array<i64: 1, 32>}, {transform_indices = @transform_3, window_bounds = array<i64: 16, 32>}, {transform_indices = @transform_4, window_bounds = array<i64: 1, 32>}, {transform_indices = @transform_5, window_bounds = array<i64: 1, 32>}, {transform_indices = @transform_6, window_bounds = array<i64: 16, 1>}, {transform_indices = @transform_7, window_bounds = array<i64: 16, 32>}]} {
    %c0_i32 = arith.constant 0 : i32
    %0 = arith.cmpi eq, %arg2, %c0_i32 : i32
    %1 = arith.extui %0 : i1 to i32
    %c0_i32_0 = arith.constant 0 : i32
    %2 = arith.cmpi ne, %1, %c0_i32_0 : i32
    scf.if %2 {
      %cst_9 = arith.constant 0.000000e+00 : f32
      %13 = vector.broadcast %cst_9 : f32 to vector<16x32xf32>
      %c0_10 = arith.constant 0 : index
      %c0_11 = arith.constant 0 : index
      %14 = vector.load %arg11[%c0_10, %c0_11] : memref<16x32xf32, #tpu.memory_space<vmem>>, vector<16x32xf32>
      tpu.vector_store %arg11[%c0_10, %c0_11], %13 {strides = array<i32>} : memref<16x32xf32, #tpu.memory_space<vmem>>, vector<16x32xf32>,
    } else {
    }
    %c0 = arith.constant 0 : index
    %c0_1 = arith.constant 0 : index
    %3 = vector.load %arg11[%c0, %c0_1] : memref<16x32xf32, #tpu.memory_space<vmem>>, vector<16x32xf32>
    %c0_2 = arith.constant 0 : index
    %c0_3 = arith.constant 0 : index
    %4 = vector.load %arg3[%c0_2, %c0_3] : memref<16x512xf32, #tpu.memory_space<vmem>>, vector<16x512xf32>
    %5 = arith.truncf %4 : vector<16x512xf32> to vector<16x512xbf16>
    %c0_4 = arith.constant 0 : index
    %c0_5 = arith.constant 0 : index
    %6 = vector.load %arg4[%c0_4, %c0_5] : memref<512x32xbf16, #tpu.memory_space<vmem>>, vector<512x32xbf16>
    %cst = arith.constant dense<0.000000e+00> : vector<16x32xf32>
    %7 = tpu.matmul %5, %6, %cst {dimension_numbers = #tpu.dot_dimension_numbers<[1], [0], [0], [1], [0, 0, 1, 1], [], []>} : vector<16x512xbf16>, vector<512x32xbf16>, vector<16x32xf32> -> vector<16x32xf32>
    %8 = arith.addf %3, %7 : vector<16x32xf32>
    %c0_6 = arith.constant 0 : index
    %c0_7 = arith.constant 0 : index
    %9 = vector.load %arg11[%c0_6, %c0_7] : memref<16x32xf32, #tpu.memory_space<vmem>>, vector<16x32xf32>
    tpu.vector_store %arg11[%c0_6, %c0_7], %8 {strides = array<i32>} : memref<16x32xf32, #tpu.memory_space<vmem>>, vector<16x32xf32>,
    %c3_i32 = arith.constant 3 : i32
    %10 = arith.cmpi eq, %arg2, %c3_i32 : i32
    %11 = arith.extui %10 : i1 to i32
    %c0_i32_8 = arith.constant 0 : i32
    %12 = arith.cmpi ne, %11, %c0_i32_8 : i32
    scf.if %12 {
      %c0_9 = arith.constant 0 : index
      %c0_10 = arith.constant 0 : index
      %13 = vector.load %arg11[%c0_9, %c0_10] : memref<16x32xf32, #tpu.memory_space<vmem>>, vector<16x32xf32>
      %c0_11 = arith.constant 0 : index
      %c0_12 = arith.constant 0 : index
      %14 = vector.load %arg5[%c0_11, %c0_12] : memref<1x32xf32, #tpu.memory_space<vmem>>, vector<1x32xf32>
      %15 = vector.broadcast %14 : vector<1x32xf32> to vector<16x32xf32>
      %16 = arith.addf %13, %15 : vector<16x32xf32>
      %c0_13 = arith.constant 0 : index
      %c0_14 = arith.constant 0 : index
      %17 = vector.load %arg6[%c0_13, %c0_14] : memref<16x32xf32, #tpu.memory_space<vmem>>, vector<16x32xf32>
      %18 = arith.addf %16, %17 : vector<16x32xf32>
      %cst_15 = arith.constant dense<0.000000e+00> : vector<16xf32>
      %19 = vector.multi_reduction <add>, %18, %cst_15 [1] : vector<16x32xf32> to vector<16xf32>
      %20 = vector.shape_cast %19 : vector<16xf32> to vector<16x1xf32>
      %cst_16 = arith.constant 3.200000e+01 : f32
      %21 = vector.broadcast %cst_16 : f32 to vector<16x1xf32>
      %22 = arith.divf %20, %21 : vector<16x1xf32>
      %23 = vector.broadcast %22 : vector<16x1xf32> to vector<16x32xf32>
      %24 = arith.subf %18, %23 : vector<16x32xf32>
      %25 = arith.mulf %24, %24 : vector<16x32xf32>
      %cst_17 = arith.constant dense<0.000000e+00> : vector<16xf32>
      %26 = vector.multi_reduction <add>, %25, %cst_17 [1] : vector<16x32xf32> to vector<16xf32>
      %27 = vector.shape_cast %26 : vector<16xf32> to vector<16x1xf32>
      %cst_18 = arith.constant 3.200000e+01 : f32
      %28 = vector.broadcast %cst_18 : f32 to vector<16x1xf32>
      %29 = arith.divf %27, %28 : vector<16x1xf32>
      %30 = vector.broadcast %22 : vector<16x1xf32> to vector<16x32xf32>
      %31 = arith.subf %18, %30 : vector<16x32xf32>
      %cst_19 = arith.constant 9.99999974E-6 : f32
      %32 = vector.broadcast %cst_19 : f32 to vector<16x1xf32>
      %33 = arith.addf %29, %32 : vector<16x1xf32>
      %34 = math.rsqrt %33 : vector<16x1xf32>
      %35 = vector.broadcast %34 : vector<16x1xf32> to vector<16x32xf32>
      %36 = arith.mulf %31, %35 : vector<16x32xf32>
      %c0_20 = arith.constant 0 : index
      %c0_21 = arith.constant 0 : index
      %37 = vector.load %arg7[%c0_20, %c0_21] : memref<1x32xf32, #tpu.memory_space<vmem>>, vector<1x32xf32>
      %38 = vector.broadcast %37 : vector<1x32xf32> to vector<16x32xf32>
      %39 = arith.mulf %36, %38 : vector<16x32xf32>
      %c0_22 = arith.constant 0 : index
      %c0_23 = arith.constant 0 : index
      %40 = vector.load %arg8[%c0_22, %c0_23] : memref<1x32xf32, #tpu.memory_space<vmem>>, vector<1x32xf32>
      %41 = vector.broadcast %40 : vector<1x32xf32> to vector<16x32xf32>
      %42 = arith.addf %39, %41 : vector<16x32xf32>
      %c0_24 = arith.constant 0 : index
      %c0_25 = arith.constant 0 : index
      %43 = vector.load %arg9[%c0_24, %c0_25] : memref<16x1xf32, #tpu.memory_space<vmem>>, vector<16x1xf32>
      %44 = vector.broadcast %43 : vector<16x1xf32> to vector<16x32xf32>
      %45 = arith.mulf %42, %44 : vector<16x32xf32>
      %c0_26 = arith.constant 0 : index
      %c0_27 = arith.constant 0 : index
      %46 = vector.load %arg10[%c0_26, %c0_27] : memref<16x32xf32, #tpu.memory_space<vmem>>, vector<16x32xf32>
      tpu.vector_store %arg10[%c0_26, %c0_27], %45 {strides = array<i32>} : memref<16x32xf32, #tpu.memory_space<vmem>>, vector<16x32xf32>,
    } else {
    }
    return
  }
  func.func @transform_0(%arg0: i32, %arg1: i32, %arg2: i32) -> (i32, i32) {
    %c0_i32 = arith.constant 0 : i32
    return %arg0, %arg2 : i32, i32
  }
  func.func @transform_1(%arg0: i32, %arg1: i32, %arg2: i32) -> (i32, i32) {
    %c0_i32 = arith.constant 0 : i32
    return %arg2, %arg1 : i32, i32
  }
  func.func @transform_2(%arg0: i32, %arg1: i32, %arg2: i32) -> (i32, i32) {
    %c0_i32 = arith.constant 0 : i32
    %c0_i32_0 = arith.constant 0 : i32
    return %c0_i32, %arg1 : i32, i32
  }
  func.func @transform_3(%arg0: i32, %arg1: i32, %arg2: i32) -> (i32, i32) {
    %c0_i32 = arith.constant 0 : i32
    return %arg0, %arg1 : i32, i32
  }
  func.func @transform_4(%arg0: i32, %arg1: i32, %arg2: i32) -> (i32, i32) {
    %c0_i32 = arith.constant 0 : i32
    %c0_i32_0 = arith.constant 0 : i32
    return %c0_i32, %arg1 : i32, i32
  }
  func.func @transform_5(%arg0: i32, %arg1: i32, %arg2: i32) -> (i32, i32) {
    %c0_i32 = arith.constant 0 : i32
    %c0_i32_0 = arith.constant 0 : i32
    return %c0_i32, %arg1 : i32, i32
  }
  func.func @transform_6(%arg0: i32, %arg1: i32, %arg2: i32) -> (i32, i32) {
    %c0_i32 = arith.constant 0 : i32
    %c0_i32_0 = arith.constant 0 : i32
    return %arg0, %c0_i32 : i32, i32
  }
  func.func @transform_7(%arg0: i32, %arg1: i32, %arg2: i32) -> (i32, i32) {
    %c0_i32 = arith.constant 0 : i32
    return %arg0, %arg1 : i32, i32
  }
}

module attributes {stable_mosaic.version = 11 : i64} {
  func.func @_linear_kernel(%arg0: i32, %arg1: i32, %arg2: i32, %arg3: memref<16x32xf32, #tpu.memory_space<vmem>>, %arg4: memref<32x4xbf16, #tpu.memory_space<vmem>>, %arg5: memref<1x4xf32, #tpu.memory_space<vmem>>, %arg6: memref<16x4xf32, #tpu.memory_space<vmem>>, %arg7: memref<16x4xf32, #tpu.memory_space<vmem>>) attributes {dimension_semantics = [#tpu.dimension_semantics<parallel>, #tpu.dimension_semantics<parallel>, #tpu.dimension_semantics<arbitrary>], iteration_bounds = array<i64: 1, 1, 1>, scalar_prefetch = 0 : i64, scratch_operands = 1 : i64, tpu.core_type = #tpu.core_type<tc>, window_params = [{transform_indices = @transform_0, window_bounds = array<i64: 16, 32>}, {transform_indices = @transform_1, window_bounds = array<i64: 32, 4>}, {transform_indices = @transform_2, window_bounds = array<i64: 1, 4>}, {transform_indices = @transform_3, window_bounds = array<i64: 16, 4>}]} {
    %c0_i32 = arith.constant 0 : i32
    %0 = arith.cmpi eq, %arg2, %c0_i32 : i32
    %1 = arith.extui %0 : i1 to i32
    %c0_i32_0 = arith.constant 0 : i32
    %2 = arith.cmpi ne, %1, %c0_i32_0 : i32
    scf.if %2 {
      %cst_10 = arith.constant 0.000000e+00 : f32
      %13 = vector.broadcast %cst_10 : f32 to vector<16x4xf32>
      %c0_11 = arith.constant 0 : index
      %c0_12 = arith.constant 0 : index
      %14 = vector.load %arg7[%c0_11, %c0_12] : memref<16x4xf32, #tpu.memory_space<vmem>>, vector<16x4xf32>
      tpu.vector_store %arg7[%c0_11, %c0_12], %13 {strides = array<i32>} : memref<16x4xf32, #tpu.memory_space<vmem>>, vector<16x4xf32>,
    } else {
    }
    %c0 = arith.constant 0 : index
    %c0_1 = arith.constant 0 : index
    %3 = vector.load %arg7[%c0, %c0_1] : memref<16x4xf32, #tpu.memory_space<vmem>>, vector<16x4xf32>
    %c0_2 = arith.constant 0 : index
    %c0_3 = arith.constant 0 : index
    %4 = vector.load %arg3[%c0_2, %c0_3] : memref<16x32xf32, #tpu.memory_space<vmem>>, vector<16x32xf32>
    %5 = arith.truncf %4 : vector<16x32xf32> to vector<16x32xbf16>
    %c0_4 = arith.constant 0 : index
    %c0_5 = arith.constant 0 : index
    %6 = vector.load %arg4[%c0_4, %c0_5] : memref<32x4xbf16, #tpu.memory_space<vmem>>, vector<32x4xbf16>
    %cst = arith.constant dense<0.000000e+00> : vector<16x4xf32>
    %7 = tpu.matmul %5, %6, %cst {dimension_numbers = #tpu.dot_dimension_numbers<[1], [0], [0], [1], [0, 0, 1, 1], [], []>} : vector<16x32xbf16>, vector<32x4xbf16>, vector<16x4xf32> -> vector<16x4xf32>
    %8 = arith.addf %3, %7 : vector<16x4xf32>
    %c0_6 = arith.constant 0 : index
    %c0_7 = arith.constant 0 : index
    %9 = vector.load %arg7[%c0_6, %c0_7] : memref<16x4xf32, #tpu.memory_space<vmem>>, vector<16x4xf32>
    tpu.vector_store %arg7[%c0_6, %c0_7], %8 {strides = array<i32>} : memref<16x4xf32, #tpu.memory_space<vmem>>, vector<16x4xf32>,
    %c0_i32_8 = arith.constant 0 : i32
    %10 = arith.cmpi eq, %arg2, %c0_i32_8 : i32
    %11 = arith.extui %10 : i1 to i32
    %c0_i32_9 = arith.constant 0 : i32
    %12 = arith.cmpi ne, %11, %c0_i32_9 : i32
    scf.if %12 {
      %c0_10 = arith.constant 0 : index
      %c0_11 = arith.constant 0 : index
      %13 = vector.load %arg7[%c0_10, %c0_11] : memref<16x4xf32, #tpu.memory_space<vmem>>, vector<16x4xf32>
      %c0_12 = arith.constant 0 : index
      %c0_13 = arith.constant 0 : index
      %14 = vector.load %arg5[%c0_12, %c0_13] : memref<1x4xf32, #tpu.memory_space<vmem>>, vector<1x4xf32>
      %15 = vector.broadcast %14 : vector<1x4xf32> to vector<16x4xf32>
      %16 = arith.addf %13, %15 : vector<16x4xf32>
      %c0_14 = arith.constant 0 : index
      %c0_15 = arith.constant 0 : index
      %17 = vector.load %arg6[%c0_14, %c0_15] : memref<16x4xf32, #tpu.memory_space<vmem>>, vector<16x4xf32>
      tpu.vector_store %arg6[%c0_14, %c0_15], %16 {strides = array<i32>} : memref<16x4xf32, #tpu.memory_space<vmem>>, vector<16x4xf32>,
    } else {
    }
    return
  }
  func.func @transform_0(%arg0: i32, %arg1: i32, %arg2: i32) -> (i32, i32) {
    %c0_i32 = arith.constant 0 : i32
    return %arg0, %arg2 : i32, i32
  }
  func.func @transform_1(%arg0: i32, %arg1: i32, %arg2: i32) -> (i32, i32) {
    %c0_i32 = arith.constant 0 : i32
    return %arg2, %arg1 : i32, i32
  }
  func.func @transform_2(%arg0: i32, %arg1: i32, %arg2: i32) -> (i32, i32) {
    %c0_i32 = arith.constant 0 : i32
    %c0_i32_0 = arith.constant 0 : i32
    return %c0_i32, %arg1 : i32, i32
  }
  func.func @transform_3(%arg0: i32, %arg1: i32, %arg2: i32) -> (i32, i32) {
    %c0_i32 = arith.constant 0 : i32
    return %arg0, %arg1 : i32, i32
  }
}

module attributes {stable_mosaic.version = 11 : i64} {
  func.func @_graph_kernel(%arg0: i32, %arg1: memref<1x8x32xf32, #tpu.memory_space<vmem>>, %arg2: memref<1x8x1xf32, #tpu.memory_space<vmem>>, %arg3: memref<1x1x8xf32, #tpu.memory_space<vmem>>, %arg4: memref<3x32x64xbf16, #tpu.memory_space<vmem>>, %arg5: memref<1x64xf32, #tpu.memory_space<vmem>>, %arg6: memref<3x64x64xbf16, #tpu.memory_space<vmem>>, %arg7: memref<1x64xf32, #tpu.memory_space<vmem>>, %arg8: memref<32x64xbf16, #tpu.memory_space<vmem>>, %arg9: memref<1x64xf32, #tpu.memory_space<vmem>>, %arg10: memref<64x384xbf16, #tpu.memory_space<vmem>>, %arg11: memref<1x384xf32, #tpu.memory_space<vmem>>, %arg12: memref<128x8xbf16, #tpu.memory_space<vmem>>, %arg13: memref<1x8xf32, #tpu.memory_space<vmem>>, %arg14: memref<128x8xbf16, #tpu.memory_space<vmem>>, %arg15: memref<1x8xf32, #tpu.memory_space<vmem>>, %arg16: memref<128x32xbf16, #tpu.memory_space<vmem>>, %arg17: memref<1x32xf32, #tpu.memory_space<vmem>>, %arg18: memref<32x64xbf16, #tpu.memory_space<vmem>>, %arg19: memref<1x64xf32, #tpu.memory_space<vmem>>, %arg20: memref<64x32xbf16, #tpu.memory_space<vmem>>, %arg21: memref<1x32xf32, #tpu.memory_space<vmem>>, %arg22: memref<1x8x32xf32, #tpu.memory_space<vmem>>) attributes {dimension_semantics = [#tpu.dimension_semantics<parallel>], iteration_bounds = array<i64: 2>, scalar_prefetch = 0 : i64, scratch_operands = 0 : i64, tpu.core_type = #tpu.core_type<tc>, window_params = [{transform_indices = @transform_0, window_bounds = array<i64: 1, 8, 32>}, {transform_indices = @transform_1, window_bounds = array<i64: 1, 8, 1>}, {transform_indices = @transform_2, window_bounds = array<i64: 1, 1, 8>}, {pipeline_mode = #tpu.pipeline_mode<synchronous>, transform_indices = @transform_3, window_bounds = array<i64: 3, 32, 64>}, {pipeline_mode = #tpu.pipeline_mode<synchronous>, transform_indices = @transform_4, window_bounds = array<i64: 1, 64>}, {pipeline_mode = #tpu.pipeline_mode<synchronous>, transform_indices = @transform_5, window_bounds = array<i64: 3, 64, 64>}, {pipeline_mode = #tpu.pipeline_mode<synchronous>, transform_indices = @transform_6, window_bounds = array<i64: 1, 64>}, {pipeline_mode = #tpu.pipeline_mode<synchronous>, transform_indices = @transform_7, window_bounds = array<i64: 32, 64>}, {pipeline_mode = #tpu.pipeline_mode<synchronous>, transform_indices = @transform_8, window_bounds = array<i64: 1, 64>}, {pipeline_mode = #tpu.pipeline_mode<synchronous>, transform_indices = @transform_9, window_bounds = array<i64: 64, 384>}, {pipeline_mode = #tpu.pipeline_mode<synchronous>, transform_indices = @transform_10, window_bounds = array<i64: 1, 384>}, {pipeline_mode = #tpu.pipeline_mode<synchronous>, transform_indices = @transform_11, window_bounds = array<i64: 128, 8>}, {pipeline_mode = #tpu.pipeline_mode<synchronous>, transform_indices = @transform_12, window_bounds = array<i64: 1, 8>}, {pipeline_mode = #tpu.pipeline_mode<synchronous>, transform_indices = @transform_13, window_bounds = array<i64: 128, 8>}, {pipeline_mode = #tpu.pipeline_mode<synchronous>, transform_indices = @transform_14, window_bounds = array<i64: 1, 8>}, {pipeline_mode = #tpu.pipeline_mode<synchronous>, transform_indices = @transform_15, window_bounds = array<i64: 128, 32>}, {pipeline_mode = #tpu.pipeline_mode<synchronous>, transform_indices = @transform_16, window_bounds = array<i64: 1, 32>}, {pipeline_mode = #tpu.pipeline_mode<synchronous>, transform_indices = @transform_17, window_bounds = array<i64: 32, 64>}, {pipeline_mode = #tpu.pipeline_mode<synchronous>, transform_indices = @transform_18, window_bounds = array<i64: 1, 64>}, {pipeline_mode = #tpu.pipeline_mode<synchronous>, transform_indices = @transform_19, window_bounds = array<i64: 64, 32>}, {pipeline_mode = #tpu.pipeline_mode<synchronous>, transform_indices = @transform_20, window_bounds = array<i64: 1, 32>}, {transform_indices = @transform_21, window_bounds = array<i64: 1, 8, 32>}]} {
    %c0 = arith.constant 0 : index
    %c0_0 = arith.constant 0 : index
    %c0_1 = arith.constant 0 : index
    %0 = vector.load %arg1[%c0, %c0_0, %c0_1] : memref<1x8x32xf32, #tpu.memory_space<vmem>>, vector<1x8x32xf32>
    %1 = vector.shape_cast %0 : vector<1x8x32xf32> to vector<8x32xf32>
    %c0_2 = arith.constant 0 : index
    %c0_3 = arith.constant 0 : index
    %c0_4 = arith.constant 0 : index
    %2 = vector.load %arg2[%c0_2, %c0_3, %c0_4] : memref<1x8x1xf32, #tpu.memory_space<vmem>>, vector<1x8x1xf32>
    %3 = vector.shape_cast %2 : vector<1x8x1xf32> to vector<8x1xf32>
    %c0_5 = arith.constant 0 : index
    %c0_6 = arith.constant 0 : index
    %c0_7 = arith.constant 0 : index
    %4 = vector.load %arg3[%c0_5, %c0_6, %c0_7] : memref<1x1x8xf32, #tpu.memory_space<vmem>>, vector<1x1x8xf32>
    %5 = vector.shape_cast %4 : vector<1x1x8xf32> to vector<1x8xf32>
    %6 = tpu.iota {dimensions = array<i32: 0>} : vector<8x8xi32>
    %7 = tpu.iota {dimensions = array<i32: 1>} : vector<8x8xi32>
    %8 = arith.truncf %1 : vector<8x32xf32> to vector<8x32xbf16>
    %c2 = arith.constant 2 : index
    %c0_8 = arith.constant 0 : index
    %c0_9 = arith.constant 0 : index
    %9 = vector.load %arg4[%c2, %c0_8, %c0_9] : memref<3x32x64xbf16, #tpu.memory_space<vmem>>, vector<1x32x64xbf16>
    %10 = vector.shape_cast %9 : vector<1x32x64xbf16> to vector<32x64xbf16>
    %cst = arith.constant dense<0.000000e+00> : vector<8x64xf32>
    %11 = tpu.matmul %8, %10, %cst {dimension_numbers = #tpu.dot_dimension_numbers<[1], [0], [0], [1], [0, 0, 1, 1], [], []>} : vector<8x32xbf16>, vector<32x64xbf16>, vector<8x64xf32> -> vector<8x64xf32>
    %c2_i32 = arith.constant 2 : i32
    %12 = vector.broadcast %c2_i32 : i32 to vector<8x8xi32>
    %13 = arith.addi %7, %12 : vector<8x8xi32>
    %14 = arith.cmpi eq, %6, %13 : vector<8x8xi32>
    %15 = arith.extui %14 : vector<8x8xi1> to vector<8x8xi32>
    %16 = arith.sitofp %15 : vector<8x8xi32> to vector<8x8xf32>
    %c0_10 = arith.constant 0 : index
    %c0_11 = arith.constant 0 : index
    %c0_12 = arith.constant 0 : index
    %17 = vector.load %arg4[%c0_10, %c0_11, %c0_12] : memref<3x32x64xbf16, #tpu.memory_space<vmem>>, vector<1x32x64xbf16>
    %18 = vector.shape_cast %17 : vector<1x32x64xbf16> to vector<32x64xbf16>
    %cst_13 = arith.constant dense<0.000000e+00> : vector<8x64xf32>
    %19 = tpu.matmul %8, %18, %cst_13 {dimension_numbers = #tpu.dot_dimension_numbers<[1], [0], [0], [1], [0, 0, 1, 1], [], []>} : vector<8x32xbf16>, vector<32x64xbf16>, vector<8x64xf32> -> vector<8x64xf32>
    %cst_14 = arith.constant dense<0.000000e+00> : vector<8x64xf32>
    %20 = tpu.matmul %16, %19, %cst_14 {dimension_numbers = #tpu.dot_dimension_numbers<[1], [0], [0], [1], [0, 0, 1, 1], [], []>} : vector<8x8xf32>, vector<8x64xf32>, vector<8x64xf32> -> vector<8x64xf32>
    %21 = arith.addf %11, %20 : vector<8x64xf32>
    %c1_i32 = arith.constant 1 : i32
    %22 = vector.broadcast %c1_i32 : i32 to vector<8x8xi32>
    %23 = arith.addi %7, %22 : vector<8x8xi32>
    %24 = arith.cmpi eq, %6, %23 : vector<8x8xi32>
    %25 = arith.extui %24 : vector<8x8xi1> to vector<8x8xi32>
    %26 = arith.sitofp %25 : vector<8x8xi32> to vector<8x8xf32>
    %c1 = arith.constant 1 : index
    %c0_15 = arith.constant 0 : index
    %c0_16 = arith.constant 0 : index
    %27 = vector.load %arg4[%c1, %c0_15, %c0_16] : memref<3x32x64xbf16, #tpu.memory_space<vmem>>, vector<1x32x64xbf16>
    %28 = vector.shape_cast %27 : vector<1x32x64xbf16> to vector<32x64xbf16>
    %cst_17 = arith.constant dense<0.000000e+00> : vector<8x64xf32>
    %29 = tpu.matmul %8, %28, %cst_17 {dimension_numbers = #tpu.dot_dimension_numbers<[1], [0], [0], [1], [0, 0, 1, 1], [], []>} : vector<8x32xbf16>, vector<32x64xbf16>, vector<8x64xf32> -> vector<8x64xf32>
    %cst_18 = arith.constant dense<0.000000e+00> : vector<8x64xf32>
    %30 = tpu.matmul %26, %29, %cst_18 {dimension_numbers = #tpu.dot_dimension_numbers<[1], [0], [0], [1], [0, 0, 1, 1], [], []>} : vector<8x8xf32>, vector<8x64xf32>, vector<8x64xf32> -> vector<8x64xf32>
    %31 = arith.addf %21, %30 : vector<8x64xf32>
    %c0_19 = arith.constant 0 : index
    %c0_20 = arith.constant 0 : index
    %32 = vector.load %arg5[%c0_19, %c0_20] : memref<1x64xf32, #tpu.memory_space<vmem>>, vector<1x64xf32>
    %33 = vector.broadcast %32 : vector<1x64xf32> to vector<8x64xf32>
    %34 = arith.addf %31, %33 : vector<8x64xf32>
    %cst_21 = arith.constant 0.000000e+00 : f32
    %35 = vector.broadcast %cst_21 : f32 to vector<8x64xf32>
    %36 = arith.maximumf %34, %35 : vector<8x64xf32>
    %37 = arith.truncf %36 : vector<8x64xf32> to vector<8x64xbf16>
    %c2_22 = arith.constant 2 : index
    %c0_23 = arith.constant 0 : index
    %c0_24 = arith.constant 0 : index
    %38 = vector.load %arg6[%c2_22, %c0_23, %c0_24] : memref<3x64x64xbf16, #tpu.memory_space<vmem>>, vector<1x64x64xbf16>
    %39 = vector.shape_cast %38 : vector<1x64x64xbf16> to vector<64x64xbf16>
    %cst_25 = arith.constant dense<0.000000e+00> : vector<8x64xf32>
    %40 = tpu.matmul %37, %39, %cst_25 {dimension_numbers = #tpu.dot_dimension_numbers<[1], [0], [0], [1], [0, 0, 1, 1], [], []>} : vector<8x64xbf16>, vector<64x64xbf16>, vector<8x64xf32> -> vector<8x64xf32>
    %c2_i32_26 = arith.constant 2 : i32
    %41 = vector.broadcast %c2_i32_26 : i32 to vector<8x8xi32>
    %42 = arith.addi %7, %41 : vector<8x8xi32>
    %43 = arith.cmpi eq, %6, %42 : vector<8x8xi32>
    %44 = arith.extui %43 : vector<8x8xi1> to vector<8x8xi32>
    %45 = arith.sitofp %44 : vector<8x8xi32> to vector<8x8xf32>
    %c0_27 = arith.constant 0 : index
    %c0_28 = arith.constant 0 : index
    %c0_29 = arith.constant 0 : index
    %46 = vector.load %arg6[%c0_27, %c0_28, %c0_29] : memref<3x64x64xbf16, #tpu.memory_space<vmem>>, vector<1x64x64xbf16>
    %47 = vector.shape_cast %46 : vector<1x64x64xbf16> to vector<64x64xbf16>
    %cst_30 = arith.constant dense<0.000000e+00> : vector<8x64xf32>
    %48 = tpu.matmul %37, %47, %cst_30 {dimension_numbers = #tpu.dot_dimension_numbers<[1], [0], [0], [1], [0, 0, 1, 1], [], []>} : vector<8x64xbf16>, vector<64x64xbf16>, vector<8x64xf32> -> vector<8x64xf32>
    %cst_31 = arith.constant dense<0.000000e+00> : vector<8x64xf32>
    %49 = tpu.matmul %45, %48, %cst_31 {dimension_numbers = #tpu.dot_dimension_numbers<[1], [0], [0], [1], [0, 0, 1, 1], [], []>} : vector<8x8xf32>, vector<8x64xf32>, vector<8x64xf32> -> vector<8x64xf32>
    %50 = arith.addf %40, %49 : vector<8x64xf32>
    %c1_i32_32 = arith.constant 1 : i32
    %51 = vector.broadcast %c1_i32_32 : i32 to vector<8x8xi32>
    %52 = arith.addi %7, %51 : vector<8x8xi32>
    %53 = arith.cmpi eq, %6, %52 : vector<8x8xi32>
    %54 = arith.extui %53 : vector<8x8xi1> to vector<8x8xi32>
    %55 = arith.sitofp %54 : vector<8x8xi32> to vector<8x8xf32>
    %c1_33 = arith.constant 1 : index
    %c0_34 = arith.constant 0 : index
    %c0_35 = arith.constant 0 : index
    %56 = vector.load %arg6[%c1_33, %c0_34, %c0_35] : memref<3x64x64xbf16, #tpu.memory_space<vmem>>, vector<1x64x64xbf16>
    %57 = vector.shape_cast %56 : vector<1x64x64xbf16> to vector<64x64xbf16>
    %cst_36 = arith.constant dense<0.000000e+00> : vector<8x64xf32>
    %58 = tpu.matmul %37, %57, %cst_36 {dimension_numbers = #tpu.dot_dimension_numbers<[1], [0], [0], [1], [0, 0, 1, 1], [], []>} : vector<8x64xbf16>, vector<64x64xbf16>, vector<8x64xf32> -> vector<8x64xf32>
    %cst_37 = arith.constant dense<0.000000e+00> : vector<8x64xf32>
    %59 = tpu.matmul %55, %58, %cst_37 {dimension_numbers = #tpu.dot_dimension_numbers<[1], [0], [0], [1], [0, 0, 1, 1], [], []>} : vector<8x8xf32>, vector<8x64xf32>, vector<8x64xf32> -> vector<8x64xf32>
    %60 = arith.addf %50, %59 : vector<8x64xf32>
    %c0_38 = arith.constant 0 : index
    %c0_39 = arith.constant 0 : index
    %61 = vector.load %arg7[%c0_38, %c0_39] : memref<1x64xf32, #tpu.memory_space<vmem>>, vector<1x64xf32>
    %62 = vector.broadcast %61 : vector<1x64xf32> to vector<8x64xf32>
    %63 = arith.addf %60, %62 : vector<8x64xf32>
    %cst_40 = arith.constant 0.000000e+00 : f32
    %64 = vector.broadcast %cst_40 : f32 to vector<8x64xf32>
    %65 = arith.maximumf %63, %64 : vector<8x64xf32>
    %66 = arith.truncf %1 : vector<8x32xf32> to vector<8x32xbf16>
    %c0_41 = arith.constant 0 : index
    %c0_42 = arith.constant 0 : index
    %67 = vector.load %arg8[%c0_41, %c0_42] : memref<32x64xbf16, #tpu.memory_space<vmem>>, vector<32x64xbf16>
    %cst_43 = arith.constant dense<0.000000e+00> : vector<8x64xf32>
    %68 = tpu.matmul %66, %67, %cst_43 {dimension_numbers = #tpu.dot_dimension_numbers<[1], [0], [0], [1], [0, 0, 1, 1], [], []>} : vector<8x32xbf16>, vector<32x64xbf16>, vector<8x64xf32> -> vector<8x64xf32>
    %c0_44 = arith.constant 0 : index
    %c0_45 = arith.constant 0 : index
    %69 = vector.load %arg9[%c0_44, %c0_45] : memref<1x64xf32, #tpu.memory_space<vmem>>, vector<1x64xf32>
    %70 = vector.broadcast %69 : vector<1x64xf32> to vector<8x64xf32>
    %71 = arith.addf %68, %70 : vector<8x64xf32>
    %72 = arith.addf %65, %71 : vector<8x64xf32>
    %cst_46 = arith.constant 0.000000e+00 : f32
    %73 = vector.broadcast %cst_46 : f32 to vector<8x64xf32>
    %74 = arith.maximumf %72, %73 : vector<8x64xf32>
    %75 = vector.broadcast %3 : vector<8x1xf32> to vector<8x64xf32>
    %76 = arith.mulf %74, %75 : vector<8x64xf32>
    %77 = arith.truncf %76 : vector<8x64xf32> to vector<8x64xbf16>
    %c0_47 = arith.constant 0 : index
    %c0_48 = arith.constant 0 : index
    %78 = vector.load %arg10[%c0_47, %c0_48] : memref<64x384xbf16, #tpu.memory_space<vmem>>, vector<64x384xbf16>
    %cst_49 = arith.constant dense<0.000000e+00> : vector<8x384xf32>
    %79 = tpu.matmul %77, %78, %cst_49 {dimension_numbers = #tpu.dot_dimension_numbers<[1], [0], [0], [1], [0, 0, 1, 1], [], []>} : vector<8x64xbf16>, vector<64x384xbf16>, vector<8x384xf32> -> vector<8x384xf32>
    %c0_50 = arith.constant 0 : index
    %c0_51 = arith.constant 0 : index
    %80 = vector.load %arg11[%c0_50, %c0_51] : memref<1x384xf32, #tpu.memory_space<vmem>>, vector<1x384xf32>
    %81 = vector.broadcast %80 : vector<1x384xf32> to vector<8x384xf32>
    %82 = arith.addf %79, %81 : vector<8x384xf32>
    %cst_52 = arith.constant 0.000000e+00 : f32
    %83 = vector.broadcast %cst_52 : f32 to vector<8x384xf32>
    %84 = arith.maximumf %82, %83 : vector<8x384xf32>
    %85 = vector.extract_strided_slice %84 {offsets = [0, 0], sizes = [8, 128], strides = [1, 1]} : vector<8x384xf32> to vector<8x128xf32>
    %86 = arith.truncf %85 : vector<8x128xf32> to vector<8x128xbf16>
    %87 = vector.extract_strided_slice %84 {offsets = [0, 128], sizes = [8, 128], strides = [1, 1]} : vector<8x384xf32> to vector<8x128xf32>
    %88 = arith.truncf %87 : vector<8x128xf32> to vector<8x128xbf16>
    %89 = vector.extract_strided_slice %84 {offsets = [0, 256], sizes = [8, 128], strides = [1, 1]} : vector<8x384xf32> to vector<8x128xf32>
    %90 = arith.truncf %89 : vector<8x128xf32> to vector<8x128xbf16>
    %c0_53 = arith.constant 0 : index
    %c0_54 = arith.constant 0 : index
    %91 = vector.load %arg12[%c0_53, %c0_54] : memref<128x8xbf16, #tpu.memory_space<vmem>>, vector<128x8xbf16>
    %cst_55 = arith.constant dense<0.000000e+00> : vector<8x8xf32>
    %92 = tpu.matmul %86, %91, %cst_55 {dimension_numbers = #tpu.dot_dimension_numbers<[1], [0], [0], [1], [0, 0, 1, 1], [], []>} : vector<8x128xbf16>, vector<128x8xbf16>, vector<8x8xf32> -> vector<8x8xf32>
    %c0_56 = arith.constant 0 : index
    %c0_57 = arith.constant 0 : index
    %93 = vector.load %arg13[%c0_56, %c0_57] : memref<1x8xf32, #tpu.memory_space<vmem>>, vector<1x8xf32>
    %94 = vector.broadcast %93 : vector<1x8xf32> to vector<8x8xf32>
    %95 = arith.addf %92, %94 : vector<8x8xf32>
    %96 = math.tanh %95 : vector<8x8xf32>
    %c0_58 = arith.constant 0 : index
    %c0_59 = arith.constant 0 : index
    %97 = vector.load %arg14[%c0_58, %c0_59] : memref<128x8xbf16, #tpu.memory_space<vmem>>, vector<128x8xbf16>
    %cst_60 = arith.constant dense<0.000000e+00> : vector<8x8xf32>
    %98 = tpu.matmul %88, %97, %cst_60 {dimension_numbers = #tpu.dot_dimension_numbers<[1], [0], [0], [1], [0, 0, 1, 1], [], []>} : vector<8x128xbf16>, vector<128x8xbf16>, vector<8x8xf32> -> vector<8x8xf32>
    %c0_61 = arith.constant 0 : index
    %c0_62 = arith.constant 0 : index
    %99 = vector.load %arg15[%c0_61, %c0_62] : memref<1x8xf32, #tpu.memory_space<vmem>>, vector<1x8xf32>
    %100 = vector.broadcast %99 : vector<1x8xf32> to vector<8x8xf32>
    %101 = arith.addf %98, %100 : vector<8x8xf32>
    %102 = math.tanh %101 : vector<8x8xf32>
    %c0_63 = arith.constant 0 : index
    %c0_64 = arith.constant 0 : index
    %103 = vector.load %arg16[%c0_63, %c0_64] : memref<128x32xbf16, #tpu.memory_space<vmem>>, vector<128x32xbf16>
    %cst_65 = arith.constant dense<0.000000e+00> : vector<8x32xf32>
    %104 = tpu.matmul %90, %103, %cst_65 {dimension_numbers = #tpu.dot_dimension_numbers<[1], [0], [0], [1], [0, 0, 1, 1], [], []>} : vector<8x128xbf16>, vector<128x32xbf16>, vector<8x32xf32> -> vector<8x32xf32>
    %c0_66 = arith.constant 0 : index
    %c0_67 = arith.constant 0 : index
    %105 = vector.load %arg17[%c0_66, %c0_67] : memref<1x32xf32, #tpu.memory_space<vmem>>, vector<1x32xf32>
    %106 = vector.broadcast %105 : vector<1x32xf32> to vector<8x32xf32>
    %107 = arith.addf %104, %106 : vector<8x32xf32>
    %108 = vector.broadcast %3 : vector<8x1xf32> to vector<8x32xf32>
    %109 = arith.mulf %107, %108 : vector<8x32xf32>
    %cst_68 = arith.constant dense<0.000000e+00> : vector<8x8xf32>
    %110 = tpu.matmul %96, %102, %cst_68 {dimension_numbers = #tpu.dot_dimension_numbers<[1], [1], [0], [0], [0, 0, 1, 0], [], []>} : vector<8x8xf32>, vector<8x8xf32>, vector<8x8xf32> -> vector<8x8xf32>
    %cst_69 = arith.constant dense<0.000000e+00> : vector<8x8xf32>
    %111 = tpu.matmul %102, %96, %cst_69 {dimension_numbers = #tpu.dot_dimension_numbers<[1], [1], [0], [0], [0, 0, 1, 0], [], []>} : vector<8x8xf32>, vector<8x8xf32>, vector<8x8xf32> -> vector<8x8xf32>
    %112 = arith.subf %110, %111 : vector<8x8xf32>
    %113 = math.tanh %112 : vector<8x8xf32>
    %114 = vector.broadcast %3 : vector<8x1xf32> to vector<8x8xf32>
    %115 = vector.broadcast %5 : vector<1x8xf32> to vector<8x8xf32>
    %116 = arith.mulf %114, %115 : vector<8x8xf32>
    %cst_70 = arith.constant 0.000000e+00 : f32
    %117 = vector.broadcast %cst_70 : f32 to vector<8x8xf32>
    %118 = arith.maximumf %113, %117 : vector<8x8xf32>
    %119 = arith.mulf %118, %116 : vector<8x8xf32>
    %cst_71 = arith.constant 0.000000e+00 : f32
    %120 = vector.broadcast %cst_71 : f32 to vector<8x8xf32>
    %121 = arith.subf %120, %113 : vector<8x8xf32>
    %cst_72 = arith.constant 0.000000e+00 : f32
    %122 = vector.broadcast %cst_72 : f32 to vector<8x8xf32>
    %123 = arith.maximumf %121, %122 : vector<8x8xf32>
    %124 = arith.mulf %123, %116 : vector<8x8xf32>
    %125 = arith.cmpi eq, %6, %7 : vector<8x8xi32>
    %126 = arith.extui %125 : vector<8x8xi1> to vector<8x8xi32>
    %127 = arith.sitofp %126 : vector<8x8xi32> to vector<8x8xf32>
    %128 = arith.addf %119, %127 : vector<8x8xf32>
    %129 = arith.addf %124, %127 : vector<8x8xf32>
    %cst_73 = arith.constant dense<0.000000e+00> : vector<8xf32>
    %130 = vector.multi_reduction <add>, %129, %cst_73 [1] : vector<8x8xf32> to vector<8xf32>
    %131 = vector.shape_cast %130 : vector<8xf32> to vector<8x1xf32>
    %132 = math.rsqrt %131 : vector<8x1xf32>
    %cst_74 = arith.constant dense<0.000000e+00> : vector<8xf32>
    %133 = vector.multi_reduction <add>, %128, %cst_74 [0] : vector<8x8xf32> to vector<8xf32>
    %134 = vector.shape_cast %133 : vector<8xf32> to vector<1x8xf32>
    %135 = math.rsqrt %134 : vector<1x8xf32>
    %136 = vector.broadcast %132 : vector<8x1xf32> to vector<8x8xf32>
    %137 = arith.mulf %136, %129 : vector<8x8xf32>
    %138 = vector.broadcast %135 : vector<1x8xf32> to vector<8x8xf32>
    %139 = arith.mulf %137, %138 : vector<8x8xf32>
    %cst_75 = arith.constant dense<0.000000e+00> : vector<8x32xf32>
    %140 = tpu.matmul %139, %109, %cst_75 {dimension_numbers = #tpu.dot_dimension_numbers<[1], [0], [0], [1], [0, 0, 1, 1], [], []>} : vector<8x8xf32>, vector<8x32xf32>, vector<8x32xf32> -> vector<8x32xf32>
    %141 = arith.truncf %140 : vector<8x32xf32> to vector<8x32xbf16>
    %c0_76 = arith.constant 0 : index
    %c0_77 = arith.constant 0 : index
    %142 = vector.load %arg18[%c0_76, %c0_77] : memref<32x64xbf16, #tpu.memory_space<vmem>>, vector<32x64xbf16>
    %cst_78 = arith.constant dense<0.000000e+00> : vector<8x64xf32>
    %143 = tpu.matmul %141, %142, %cst_78 {dimension_numbers = #tpu.dot_dimension_numbers<[1], [0], [0], [1], [0, 0, 1, 1], [], []>} : vector<8x32xbf16>, vector<32x64xbf16>, vector<8x64xf32> -> vector<8x64xf32>
    %c0_79 = arith.constant 0 : index
    %c0_80 = arith.constant 0 : index
    %144 = vector.load %arg19[%c0_79, %c0_80] : memref<1x64xf32, #tpu.memory_space<vmem>>, vector<1x64xf32>
    %145 = vector.broadcast %144 : vector<1x64xf32> to vector<8x64xf32>
    %146 = arith.addf %143, %145 : vector<8x64xf32>
    %cst_81 = arith.constant 0.000000e+00 : f32
    %147 = vector.broadcast %cst_81 : f32 to vector<8x64xf32>
    %148 = arith.maximumf %146, %147 : vector<8x64xf32>
    %cst_82 = arith.constant dense<0.000000e+00> : vector<8x64xf32>
    %149 = tpu.matmul %139, %148, %cst_82 {dimension_numbers = #tpu.dot_dimension_numbers<[1], [0], [0], [1], [0, 0, 1, 1], [], []>} : vector<8x8xf32>, vector<8x64xf32>, vector<8x64xf32> -> vector<8x64xf32>
    %150 = arith.truncf %149 : vector<8x64xf32> to vector<8x64xbf16>
    %c0_83 = arith.constant 0 : index
    %c0_84 = arith.constant 0 : index
    %151 = vector.load %arg20[%c0_83, %c0_84] : memref<64x32xbf16, #tpu.memory_space<vmem>>, vector<64x32xbf16>
    %cst_85 = arith.constant dense<0.000000e+00> : vector<8x32xf32>
    %152 = tpu.matmul %150, %151, %cst_85 {dimension_numbers = #tpu.dot_dimension_numbers<[1], [0], [0], [1], [0, 0, 1, 1], [], []>} : vector<8x64xbf16>, vector<64x32xbf16>, vector<8x32xf32> -> vector<8x32xf32>
    %c0_86 = arith.constant 0 : index
    %c0_87 = arith.constant 0 : index
    %153 = vector.load %arg21[%c0_86, %c0_87] : memref<1x32xf32, #tpu.memory_space<vmem>>, vector<1x32xf32>
    %154 = vector.broadcast %153 : vector<1x32xf32> to vector<8x32xf32>
    %155 = arith.addf %152, %154 : vector<8x32xf32>
    %cst_88 = arith.constant 0.000000e+00 : f32
    %156 = vector.broadcast %cst_88 : f32 to vector<8x32xf32>
    %157 = arith.maximumf %155, %156 : vector<8x32xf32>
    %158 = vector.broadcast %3 : vector<8x1xf32> to vector<8x32xf32>
    %159 = arith.mulf %157, %158 : vector<8x32xf32>
    %160 = arith.addf %1, %159 : vector<8x32xf32>
    %c0_89 = arith.constant 0 : index
    %c0_90 = arith.constant 0 : index
    %c0_91 = arith.constant 0 : index
    %161 = vector.load %arg22[%c0_89, %c0_90, %c0_91] : memref<1x8x32xf32, #tpu.memory_space<vmem>>, vector<1x8x32xf32>
    %162 = vector.shape_cast %161 : vector<1x8x32xf32> to vector<8x32xf32>
    %163 = vector.shape_cast %160 : vector<8x32xf32> to vector<1x8x32xf32>
    tpu.vector_store %arg22[%c0_89, %c0_90, %c0_91], %163 {strides = array<i32>} : memref<1x8x32xf32, #tpu.memory_space<vmem>>, vector<1x8x32xf32>,
    return
  }
  func.func @transform_0(%arg0: i32) -> (i32, i32, i32) {
    %c0_i32 = arith.constant 0 : i32
    %c0_i32_0 = arith.constant 0 : i32
    %c0_i32_1 = arith.constant 0 : i32
    return %arg0, %c0_i32, %c0_i32_0 : i32, i32, i32
  }
  func.func @transform_1(%arg0: i32) -> (i32, i32, i32) {
    %c0_i32 = arith.constant 0 : i32
    %c0_i32_0 = arith.constant 0 : i32
    %c0_i32_1 = arith.constant 0 : i32
    return %arg0, %c0_i32, %c0_i32_0 : i32, i32, i32
  }
  func.func @transform_2(%arg0: i32) -> (i32, i32, i32) {
    %c0_i32 = arith.constant 0 : i32
    %c0_i32_0 = arith.constant 0 : i32
    %c0_i32_1 = arith.constant 0 : i32
    return %arg0, %c0_i32, %c0_i32_0 : i32, i32, i32
  }
  func.func @transform_3(%arg0: i32) -> (i32, i32, i32) {
    %c0_i32 = arith.constant 0 : i32
    %c0_i32_0 = arith.constant 0 : i32
    %c0_i32_1 = arith.constant 0 : i32
    %c0_i32_2 = arith.constant 0 : i32
    return %c0_i32, %c0_i32_0, %c0_i32_1 : i32, i32, i32
  }
  func.func @transform_4(%arg0: i32) -> (i32, i32) {
    %c0_i32 = arith.constant 0 : i32
    %c0_i32_0 = arith.constant 0 : i32
    %c0_i32_1 = arith.constant 0 : i32
    return %c0_i32, %c0_i32_0 : i32, i32
  }
  func.func @transform_5(%arg0: i32) -> (i32, i32, i32) {
    %c0_i32 = arith.constant 0 : i32
    %c0_i32_0 = arith.constant 0 : i32
    %c0_i32_1 = arith.constant 0 : i32
    %c0_i32_2 = arith.constant 0 : i32
    return %c0_i32, %c0_i32_0, %c0_i32_1 : i32, i32, i32
  }
  func.func @transform_6(%arg0: i32) -> (i32, i32) {
    %c0_i32 = arith.constant 0 : i32
    %c0_i32_0 = arith.constant 0 : i32
    %c0_i32_1 = arith.constant 0 : i32
    return %c0_i32, %c0_i32_0 : i32, i32
  }
  func.func @transform_7(%arg0: i32) -> (i32, i32) {
    %c0_i32 = arith.constant 0 : i32
    %c0_i32_0 = arith.constant 0 : i32
    %c0_i32_1 = arith.constant 0 : i32
    return %c0_i32, %c0_i32_0 : i32, i32
  }
  func.func @transform_8(%arg0: i32) -> (i32, i32) {
    %c0_i32 = arith.constant 0 : i32
    %c0_i32_0 = arith.constant 0 : i32
    %c0_i32_1 = arith.constant 0 : i32
    return %c0_i32, %c0_i32_0 : i32, i32
  }
  func.func @transform_9(%arg0: i32) -> (i32, i32) {
    %c0_i32 = arith.constant 0 : i32
    %c0_i32_0 = arith.constant 0 : i32
    %c0_i32_1 = arith.constant 0 : i32
    return %c0_i32, %c0_i32_0 : i32, i32
  }
  func.func @transform_10(%arg0: i32) -> (i32, i32) {
    %c0_i32 = arith.constant 0 : i32
    %c0_i32_0 = arith.constant 0 : i32
    %c0_i32_1 = arith.constant 0 : i32
    return %c0_i32, %c0_i32_0 : i32, i32
  }
  func.func @transform_11(%arg0: i32) -> (i32, i32) {
    %c0_i32 = arith.constant 0 : i32
    %c0_i32_0 = arith.constant 0 : i32
    %c0_i32_1 = arith.constant 0 : i32
    return %c0_i32, %c0_i32_0 : i32, i32
  }
  func.func @transform_12(%arg0: i32) -> (i32, i32) {
    %c0_i32 = arith.constant 0 : i32
    %c0_i32_0 = arith.constant 0 : i32
    %c0_i32_1 = arith.constant 0 : i32
    return %c0_i32, %c0_i32_0 : i32, i32
  }
  func.func @transform_13(%arg0: i32) -> (i32, i32) {
    %c0_i32 = arith.constant 0 : i32
    %c0_i32_0 = arith.constant 0 : i32
    %c0_i32_1 = arith.constant 0 : i32
    return %c0_i32, %c0_i32_0 : i32, i32
  }
  func.func @transform_14(%arg0: i32) -> (i32, i32) {
    %c0_i32 = arith.constant 0 : i32
    %c0_i32_0 = arith.constant 0 : i32
    %c0_i32_1 = arith.constant 0 : i32
    return %c0_i32, %c0_i32_0 : i32, i32
  }
  func.func @transform_15(%arg0: i32) -> (i32, i32) {
    %c0_i32 = arith.constant 0 : i32
    %c0_i32_0 = arith.constant 0 : i32
    %c0_i32_1 = arith.constant 0 : i32
    return %c0_i32, %c0_i32_0 : i32, i32
  }
  func.func @transform_16(%arg0: i32) -> (i32, i32) {
    %c0_i32 = arith.constant 0 : i32
    %c0_i32_0 = arith.constant 0 : i32
    %c0_i32_1 = arith.constant 0 : i32
    return %c0_i32, %c0_i32_0 : i32, i32
  }
  func.func @transform_17(%arg0: i32) -> (i32, i32) {
    %c0_i32 = arith.constant 0 : i32
    %c0_i32_0 = arith.constant 0 : i32
    %c0_i32_1 = arith.constant 0 : i32
    return %c0_i32, %c0_i32_0 : i32, i32
  }
  func.func @transform_18(%arg0: i32) -> (i32, i32) {
    %c0_i32 = arith.constant 0 : i32
    %c0_i32_0 = arith.constant 0 : i32
    %c0_i32_1 = arith.constant 0 : i32
    return %c0_i32, %c0_i32_0 : i32, i32
  }
  func.func @transform_19(%arg0: i32) -> (i32, i32) {
    %c0_i32 = arith.constant 0 : i32
    %c0_i32_0 = arith.constant 0 : i32
    %c0_i32_1 = arith.constant 0 : i32
    return %c0_i32, %c0_i32_0 : i32, i32
  }
  func.func @transform_20(%arg0: i32) -> (i32, i32) {
    %c0_i32 = arith.constant 0 : i32
    %c0_i32_0 = arith.constant 0 : i32
    %c0_i32_1 = arith.constant 0 : i32
    return %c0_i32, %c0_i32_0 : i32, i32
  }
  func.func @transform_21(%arg0: i32) -> (i32, i32, i32) {
    %c0_i32 = arith.constant 0 : i32
    %c0_i32_0 = arith.constant 0 : i32
    %c0_i32_1 = arith.constant 0 : i32
    return %arg0, %c0_i32, %c0_i32_0 : i32, i32, i32
  }
}

</mosaic_0001>

<bundles_post_ra>
// kernel: pretrain_forward.14
= control target key start
LH: loop header
LB: loop body
LE: loop exit
PB: predicated region body
PF: predicated region fallthrough
CT: control target
= control target key end

     0   :  { %vm19_vm0 = vcmask 785408   ;;  %v132_v0 = vmov 0.0   ;;  %vm133_vm1 = vmmov 0   ;;  %vm43_vm2 = vcmask 261120   ;;  %s181_s1 = inlined_call_operand.vmem [shape: bf16[32,96], index: 1, kind: input, shape index: {}]   ;;  %s182_s0 = inlined_call_operand.vmem [shape: f32[16,32], index: 0, kind: input, shape index: {}]   ;;  %s183_s2 = inlined_call_operand.vmem [shape: f32[1,96], index: 2, kind: input, shape index: {}]   ;;  %s184_s3 = inlined_call_operand.vmem [shape: f32[16,96], index: 3, kind: output, shape index: {}]  }
   0x1   :  { %120 = vmatprep.subr.bf16.mxu0 %v132_v0  ;;  %v130_v1 = vld [vmem:[%s181_s1] sm:$0xff]   ;;  %124 = vmatprep.mubr.msk.bf16.mxu0 %vm133_vm1, %v132_v0  ;;  %20 = vst.msk [vmem:[#allocation2] sm:$0xff] %vm19_vm0, %v132_v0  ;;  %21 = vst.msk [vmem:[#allocation2 + $0x8] sm:$0xff] %vm19_vm0, %v132_v0  ;;  %v131_v2 = vld [vmem:[%s181_s1 + $0x8] sm:$0xff]  }
   0x2   :  { %121 = vmatpush3.bf16.msra.mxu0 %v130_v1  ;;  %v24_v3 = vld [vmem:[%s182_s0] sm:$0xff]  ;;  %v25_v4 = vld [vmem:[%s182_s0 + $0x8] sm:$0xff] }
   0x3   :  { %122 = vmatprep.subr.bf16.mxu0 %v132_v0  ;;  %v26_v5 = vpack.c.bf16 %v25_v4, %v24_v3  ;;  %v116_v14 = vld [vmem:[%s183_s2] ss:$0 sm:$0xff] }
   0x6   :  { %123 = vmatpush3.bf16.msra.mxu0 %v131_v2 }
   0x8   :  { %v22_v6 = vld [vmem:[#allocation2] sm:$0xff]  ;;  %v23_v8 = vld [vmem:[#allocation2 + $0x8] sm:$0xff] }
   0x9   :  { %125 = vmatmul.mubr.msk.bf16.vlgmr.msra.gmra.mrb[0].mxu0 %vm43_vm2, %v26_v5 }
  0xdc   :  { %v81_v7 = vpop.f32.mrb[0].mxu0 }
  0xdd   :  { %v88_v9 = vadd.f32 %v81_v7, %v22_v6  ;;  %v126_v10 = vpop.f32.mrb[1].mxu0 }
  0xde   :  { %v84_v11 = vpop.f32.mrb[2].mxu0 }
  0xdf   :  { %91 = vst.msk [vmem:[#allocation2] sm:$0xff] %vm19_vm0, %v88_v9  ;;  %v89_v12 = vadd.f32 %v84_v11, %v23_v8  ;;  %v127_v13 = vpop.f32.mrb[3].mxu0 }
  0xe1   :  { %92 = vst.msk [vmem:[#allocation2 + $0x8] sm:$0xff] %vm19_vm0, %v89_v12 }
  0xe6   :  { %v96_v15 = vld [vmem:[#allocation2] sm:$0xff] }
  0xe7   :  { %v105_v16 = vadd.f32 %v116_v14, %v96_v15 }
  0xe8   :  { %v97_v17 = vld [vmem:[#allocation2 + $0x8] sm:$0xff] }
  0xe9   :  { %107 = vst.msk [vmem:[%s184_s3] sm:$0xff] %vm19_vm0, %v105_v16  ;;  %v106_v18 = vadd.f32 %v116_v14, %v97_v17 }
  0xeb   :  { %108 = vst.msk [vmem:[%s184_s3 + $0x8] sm:$0xff] %vm19_vm0, %v106_v18 }

// kernel: pretrain_forward.13
= control target key start
LH: loop header
LB: loop body
LE: loop exit
PB: predicated region body
PF: predicated region fallthrough
CT: control target
= control target key end

     0   :  { %vm19_vm0 = vcmask 261120   ;;  %vm32_vm1 = vcmask 1043456   ;;  %v114_v0 = vmov 0.0   ;;  %vm115_vm2 = vmmov 0   ;;  %s160_s1 = inlined_call_operand.vmem [shape: bf16[8,32], index: 1, kind: input, shape index: {}]   ;;  %s161_s0 = inlined_call_operand.vmem [shape: f32[16,8], index: 0, kind: input, shape index: {}]   ;;  %s162_s2 = inlined_call_operand.vmem [shape: f32[1,32], index: 2, kind: input, shape index: {}]   ;;  %s163_s3 = inlined_call_operand.vmem [shape: f32[16,32], index: 3, kind: output, shape index: {}]  }
   0x1   :  { %20 = vst.msk [vmem:[#allocation2] sm:$0xff] %vm19_vm0, %v114_v0  ;;  %21 = vst.msk [vmem:[#allocation2 + $0x8] sm:$0xff] %vm19_vm0, %v114_v0  ;;  %106 = vmatprep.subr.bf16.mxu0 %v114_v0  ;;  %v27_v1 = vld [vmem:[%s160_s1] sm:$0xf]  ;;  %108 = vmatprep.mubr.msk.bf16.mxu0 %vm115_vm2, %v114_v0  ;;  %v25_v3 = vld [vmem:[%s161_s0 + $0x8] sm:$0xff]  ;;  %vm28_vm3 = vcmask 64512  }
   0x2   :  { %v24_v2 = vld [vmem:[%s161_s0] sm:$0xff]  ;;  %v34_v4 = vsel %vm32_vm1, %v27_v1, 0 }
   0x3   :  { %v26_v5 = vpack.c.bf16 %v25_v3, %v24_v2  ;;  %107 = vmatpush3.bf16.msra.mxu0 %v34_v4  ;;  %v103_v14 = vld [vmem:[%s162_s2] ss:$0 sm:$0xff] }
   0x6   :  { %109 = vmatmul.mubr.msk.bf16.vlgmr.msra.gmra.mrb[0].mxu0 %vm28_vm3, %v26_v5 }
   0x8   :  { %v22_v6 = vld [vmem:[#allocation2] sm:$0xff]  ;;  %v23_v8 = vld [vmem:[#allocation2 + $0x8] sm:$0xff] }
  0xd9   :  { %v70_v7 = vpop.f32.mrb[0].mxu0 }
  0xda   :  { %v77_v9 = vadd.f32 %v70_v7, %v22_v6  ;;  %v110_v10 = vpop.f32.mrb[1].mxu0 }
  0xdb   :  { %v73_v11 = vpop.f32.mrb[2].mxu0 }
  0xdc   :  { %80 = vst.msk [vmem:[#allocation2] sm:$0xff] %vm19_vm0, %v77_v9  ;;  %v78_v12 = vadd.f32 %v73_v11, %v23_v8  ;;  %v111_v13 = vpop.f32.mrb[3].mxu0 }
  0xde   :  { %81 = vst.msk [vmem:[#allocation2 + $0x8] sm:$0xff] %vm19_vm0, %v78_v12 }
  0xe3   :  { %v85_v15 = vld [vmem:[#allocation2] sm:$0xff] }
  0xe4   :  { %v94_v16 = vadd.f32 %v103_v14, %v85_v15 }
  0xe5   :  { %v86_v17 = vld [vmem:[#allocation2 + $0x8] sm:$0xff] }
  0xe6   :  { %96 = vst.msk [vmem:[%s163_s3] sm:$0xff] %vm19_vm0, %v94_v16  ;;  %v95_v18 = vadd.f32 %v103_v14, %v86_v17 }
  0xe8   :  { %97 = vst.msk [vmem:[%s163_s3 + $0x8] sm:$0xff] %vm19_vm0, %v95_v18 }

// kernel: pretrain_forward.16
= control target key start
LH: loop header
LB: loop body
LE: loop exit
PB: predicated region body
PF: predicated region fallthrough
CT: control target
= control target key end

     0   :  { %vm28_vm0 = vcmask 261120   ;;  %v195_v0 = vmov 0.0   ;;  %vm196_vm1 = vmmov 0   ;;  %s276_s1 = inlined_call_operand.vmem [shape: bf16[32,32], index: 1, kind: input, shape index: {}]   ;;  %s277_s0 = inlined_call_operand.vmem [shape: f32[16,32], index: 0, kind: input, shape index: {}]   ;;  %s278_s2 = inlined_call_operand.vmem [shape: f32[1,32], index: 2, kind: input, shape index: {}]   ;;  %s279_s3 = inlined_call_operand.vmem [shape: f32[16,32], index: 3, kind: input, shape index: {}]   ;;  %s280_s4 = inlined_call_operand.vmem [shape: f32[1,32], index: 4, kind: input, shape index: {}]   ;;  %s281_s5 = inlined_call_operand.vmem [shape: f32[1,32], index: 5, kind: input, shape index: {}]   ;;  %s282_s6 = inlined_call_operand.vmem [shape: f32[16,32], index: 6, kind: output, shape index: {}]  }
   0x1   :  { %179 = vmatprep.subr.bf16.mxu0 %v195_v0  ;;  %v189_v1 = vld [vmem:[%s276_s1] sm:$0xff]   ;;  %183 = vmatprep.mubr.msk.bf16.mxu0 %vm196_vm1, %v195_v0  ;;  %29 = vst.msk [vmem:[#allocation2] sm:$0xff] %vm28_vm0, %v195_v0  ;;  %30 = vst.msk [vmem:[#allocation2 + $0x8] sm:$0xff] %vm28_vm0, %v195_v0  ;;  %v190_v2 = vld [vmem:[%s276_s1 + $0x8] sm:$0xff]  }
   0x2   :  { %180 = vmatpush3.bf16.msra.mxu0 %v189_v1  ;;  %v33_v3 = vld [vmem:[%s277_s0] sm:$0xff]  ;;  %v34_v4 = vld [vmem:[%s277_s0 + $0x8] sm:$0xff] }
   0x3   :  { %181 = vmatprep.subr.bf16.mxu0 %v195_v0  ;;  %v35_v5 = vpack.c.bf16 %v34_v4, %v33_v3  ;;  %v173_v14 = vld [vmem:[%s278_s2] ss:$0 sm:$0xff]  ;;  %v116_v19 = vld [vmem:[%s279_s3 + $0x8] sm:$0xff] }
   0x4   :  { %v115_v16 = vld [vmem:[%s279_s3] sm:$0xff] }
   0x5   :  { %v174_v42 = vld [vmem:[%s280_s4] ss:$0 sm:$0xff] }
   0x6   :  { %182 = vmatpush3.bf16.msra.mxu0 %v190_v2  ;;  %v175_v44 = vld [vmem:[%s281_s5] ss:$0 sm:$0xff] }
   0x8   :  { %v31_v6 = vld [vmem:[#allocation2] sm:$0xff]  ;;  %v32_v8 = vld [vmem:[#allocation2 + $0x8] sm:$0xff] }
   0x9   :  { %184 = vmatmul.mubr.msk.bf16.vlgmr.msra.gmra.mrb[0].mxu0 %vm28_vm0, %v35_v5 }
  0xdc   :  { %v90_v7 = vpop.f32.mrb[0].mxu0 }
  0xdd   :  { %v97_v9 = vadd.f32 %v90_v7, %v31_v6  ;;  %v185_v10 = vpop.f32.mrb[1].mxu0 }
  0xde   :  { %v93_v11 = vpop.f32.mrb[2].mxu0 }
  0xdf   :  { %99 = vst.msk [vmem:[#allocation2] sm:$0xff] %vm28_vm0, %v97_v9  ;;  %v98_v12 = vadd.f32 %v93_v11, %v32_v8  ;;  %v186_v13 = vpop.f32.mrb[3].mxu0 }
  0xe1   :  { %100 = vst.msk [vmem:[#allocation2 + $0x8] sm:$0xff] %vm28_vm0, %v98_v12 }
  0xe6   :  { %v104_v15 = vld [vmem:[#allocation2] sm:$0xff] }
  0xe7   :  { %v113_v17 = vadd.f32 %v173_v14, %v104_v15 }
  0xe8   :  { %v105_v18 = vld [vmem:[#allocation2 + $0x8] sm:$0xff] }
  0xe9   :  { %v117_v20 = vadd.f32 %v115_v16, %v113_v17  ;;  %v114_v21 = vadd.f32 %v173_v14, %v105_v18 }
  0xeb   :  { %v119_v22 = vsel %vm28_vm0, %v117_v20, 0.0  ;;  %v118_v23 = vadd.f32 %v116_v19, %v114_v21 }
  0xec   :  { %120 = vadd.xlane.f32.xlu0 %v119_v22 }
  0xed   :  { %v122_v24 = vsel %vm28_vm0, %v118_v23, 0.0 }
  0xf0   :  { %123 = vadd.xlane.f32.xlu0 %v122_v24 }
 0x179   :  { %v121_v25 = vpop.xlane.xlu0 %120 }
 0x17a   :  { %v126_v26 = vmul.f32 0.03125, %v121_v25 }
 0x17c   :  { %v128_v27 = vsub.f32 %v117_v20, %v126_v26 }
 0x17d   :  { %v124_v28 = vpop.xlane.xlu0 %123 }
 0x17e   :  { %v127_v29 = vmul.f32 0.03125, %v124_v28  ;;  %v130_v30 = vmul.f32 %v128_v27, %v128_v27 }
 0x180   :  { %v129_v31 = vsub.f32 %v118_v23, %v127_v29  ;;  %v132_v32 = vsel %vm28_vm0, %v130_v30, 0.0 }
 0x181   :  { %133 = vadd.xlane.f32.xlu1 %v132_v32 }
 0x182   :  { %v131_v33 = vmul.f32 %v129_v31, %v129_v31 }
 0x184   :  { %v135_v34 = vsel %vm28_vm0, %v131_v33, 0.0 }
 0x185   :  { %136 = vadd.xlane.f32.xlu1 %v135_v34 }
 0x20e   :  { %v134_v35 = vpop.xlane.xlu1 %133 }
 0x20f   :  { %v138_v36 = vmul.f32 0.03125, %v134_v35 }
 0x211   :  { %v140_v37 = vadd.f32 1e-05, %v138_v36 }
 0x212   :  { %v137_v38 = vpop.xlane.xlu1 %136 }
 0x213   :  { %191 = vrsqrt.f32 %v140_v37  ;;  %v139_v39 = vmul.f32 0.03125, %v137_v38 }
 0x215   :  { %v141_v40 = vadd.f32 1e-05, %v139_v39 }
 0x217   :  { %193 = vrsqrt.f32 %v141_v40 }
 0x21d   :  { %v192_v41 = vpop.eup %191 }
 0x21e   :  { %v144_v43 = vmul.f32 %v192_v41, %v128_v27 }
 0x220   :  { %v153_v45 = vmul.f32 %v174_v42, %v144_v43 }
 0x221   :  { %v194_v46 = vpop.eup %193 }
 0x222   :  { %v162_v47 = vadd.f32 %v175_v44, %v153_v45  ;;  %v145_v48 = vmul.f32 %v194_v46, %v129_v31 }
 0x224   :  { %164 = vst.msk [vmem:[%s282_s6] sm:$0xff] %vm28_vm0, %v162_v47  ;;  %v154_v49 = vmul.f32 %v174_v42, %v145_v48 }
 0x226   :  { %v163_v50 = vadd.f32 %v175_v44, %v154_v49 }
 0x228   :  { %165 = vst.msk [vmem:[%s282_s6 + $0x8] sm:$0xff] %vm28_vm0, %v163_v50 }

// kernel: pretrain_forward.15
= control target key start
LH: loop header
LB: loop body
LE: loop exit
PB: predicated region body
PF: predicated region fallthrough
CT: control target
= control target key end

     0   :  { %s1496_s15 = smov 0   ;;  %s1708_s0 = inlined_call_operand.vmem [shape: f32[2,8,8,4], index: 0, kind: input, shape index: {}]   ;;  %s1709_s1 = inlined_call_operand.vmem [shape: f32[2,8,8,4], index: 1, kind: input, shape index: {}]   ;;  %s1710_s2 = inlined_call_operand.vmem [shape: f32[2,8,8,4], index: 2, kind: input, shape index: {}]   ;;  %s1711_s3 = inlined_call_operand.vmem [shape: f32[2,1,8], index: 3, kind: input, shape index: {}]   ;;  %s1712_s4 = inlined_call_operand.vmem [shape: f32[2,8,8,4], index: 4, kind: output, shape index: {}]  }
   0x1 LB: > { %s1255_s16 = sadd.s32 4294967295, %s1467_s15   ;;  %p1259_p0 = scmp.ge.s32.totalorder %s1467_s15, 1  ;;  %s1467_s15 = sphi %s1496_s15, %s14_s15  }
   0x2   : > { %p190_p1 = scmp.lt.s32.totalorder %s1467_s15, 3 }
   0x4   : > { %p191_p2 = pnand %p1259_p0, %p190_p1 }
   0x5   : > { %p229_p3 = scmp.lt.s32.totalorder (!%p191_p2), %s1255_s16, 1  ;;  %v1469_v0 = vmov (!%p191_p2), 0.0   ;;  %vm1470_vm0 = vmmov (!%p191_p2), 0   ;;  %vm302_vm1 = vcmask (!%p191_p2), 31744   ;;  %vm693_vm2 = vcmask (!%p191_p2), 64512  }
   0x6   : > { %194 = sbr.rel (%p191_p2) target bundleno = 802 (0x322), region = 36  ;;  %1323 = vmatprep.subr.bf16.mxu0 (!%p191_p2), %v1469_v0  ;;  %1329 = vmatprep.subr.bf16.mxu1 (!%p191_p2), %v1469_v0  ;;  %vm793_vm3 = vcmask (!%p191_p2), 1043456  }
   0x7   : > { %1325 = vmatprep.mubr.msk.bf16.mxu0 (!%p191_p2), %vm1470_vm0, %v1469_v0  ;;  %1331 = vmatprep.mubr.msk.bf16.mxu1 (!%p191_p2), %vm1470_vm0, %v1469_v0 }
   0xd   : > { %s1714_s16 = smov (!%p229_p3, %s1255_s16), 1 }
   0xe   : > { %s1513_s17 = sshll.u32 %s1714_s16, 6  ;;  %s246_s26 = scalar_lea.vmem %s1711_s3, %s1714_s16 }
   0xf   : > { %s1519_s20 = scalar_lea.vmem %s1709_s1, %s1513_s17  ;;  %s1527_s23 = scalar_lea.vmem %s1708_s0, %s1513_s17  ;;  %v1276_v43 = vld [vmem:[%s246_s26] ss:$0 sm:$0xff] }
  0x10   : > { %v269_v1 = vld [vmem:[%s1519_s20] sm:$0xff]  ;;  %v270_v2 = vld [vmem:[%s1519_s20 + $0x8] sm:$0xff]  ;;  %v271_v5 = vld [vmem:[%s1519_s20 + $0x10] sm:$0xff]  ;;  %s1625_s29 = scalar_lea.vmem %s1710_s2, %s1513_s17  ;;  %s1687_s6 = scalar_lea.vmem %s1712_s4, %s1513_s17 }
  0x11   : > { %v277_v3 = vpack.c.bf16 %v269_v1, %v269_v1  ;;  %v278_v4 = vpack.c.bf16 %v270_v2, %v270_v2  ;;  %v272_v6 = vld [vmem:[%s1519_s20 + $0x18] sm:$0xff]  ;;  %v253_v9 = vld [vmem:[%s1527_s23] sm:$0xff]  ;;  %v254_v10 = vld [vmem:[%s1527_s23 + $0x8] sm:$0xff]  ;;  %v279_v11 = vpack.c.bf16 %v271_v5, %v271_v5 }
  0x12   : > { %v280_v12 = vpack.c.bf16 %v272_v6, %v272_v6  ;;  %v261_v13 = vpack.c.bf16 %v253_v9, %v253_v9  ;;  %v262_v14 = vpack.c.bf16 %v254_v10, %v254_v10  ;;  %v273_v17 = vld [vmem:[%s1519_s20 + $0x20] sm:$0xff]  ;;  %v274_v18 = vld [vmem:[%s1519_s20 + $0x28] sm:$0xff]  ;;  %v255_v19 = vld [vmem:[%s1527_s23 + $0x10] sm:$0xff] }
  0x13   : > { %v307_v7 = vsel %vm302_vm1, %v277_v3, 0  ;;  %v353_v8 = vsel %vm302_vm1, %v278_v4, 0  ;;  %v399_v15 = vsel %vm302_vm1, %v279_v11, 0  ;;  %v256_v20 = vld [vmem:[%s1527_s23 + $0x18] sm:$0xff]  ;;  %v281_v21 = vpack.c.bf16 %v273_v17, %v273_v17  ;;  %v275_v27 = vld [vmem:[%s1519_s20 + $0x30] sm:$0xff]  ;;  %v257_v29 = vld [vmem:[%s1527_s23 + $0x20] sm:$0xff] }
  0x14   : > { %1324 = vmatpush3.bf16.xpose.msra.mxu0 %v307_v7  ;;  %1330 = vmatpush3.bf16.xpose.msra.mxu1 %v353_v8  ;;  %v445_v16 = vsel %vm302_vm1, %v280_v12, 0  ;;  %v282_v22 = vpack.c.bf16 %v274_v18, %v274_v18  ;;  %v263_v23 = vpack.c.bf16 %v255_v19, %v255_v19  ;;  %v264_v24 = vpack.c.bf16 %v256_v20, %v256_v20  ;;  %v276_v28 = vld [vmem:[%s1519_s20 + $0x38] sm:$0xff]  ;;  %v258_v30 = vld [vmem:[%s1527_s23 + $0x28] sm:$0xff]  ;;  %v259_v37 = vld [vmem:[%s1527_s23 + $0x30] sm:$0xff] }
  0x15   : > { %1335 = vmatprep.subr.bf16.mxu0 %v1469_v0  ;;  %1341 = vmatprep.subr.bf16.mxu1 %v1469_v0  ;;  %v491_v25 = vsel %vm302_vm1, %v281_v21, 0  ;;  %v283_v31 = vpack.c.bf16 %v275_v27, %v275_v27  ;;  %v284_v32 = vpack.c.bf16 %v276_v28, %v276_v28  ;;  %v265_v33 = vpack.c.bf16 %v257_v29, %v257_v29  ;;  %v260_v38 = vld [vmem:[%s1527_s23 + $0x38] sm:$0xff] }
  0x16   : > { %v537_v26 = vsel %vm302_vm1, %v282_v22, 0  ;;  %v266_v34 = vpack.c.bf16 %v258_v30, %v258_v30  ;;  %v267_v39 = vpack.c.bf16 %v259_v37, %v259_v37  ;;  %v268_v40 = vpack.c.bf16 %v260_v38, %v260_v38 }
  0x17   : > { %v583_v35 = vsel %vm302_vm1, %v283_v31, 0  ;;  %v629_v36 = vsel %vm302_vm1, %v284_v32, 0 }
  0x1b   : > { %1326 = vmatmul.mubr.msk.bf16.vlgmr.msra.gmra.mrb[0].mxu0 %vm302_vm1, %v261_v13  ;;  %1332 = vmatmul.mubr.msk.bf16.vlgmr.msra.gmra.mrb[0].mxu1 %vm302_vm1, %v262_v14 }
  0x1c   : > { %1336 = vmatpush3.bf16.xpose.msra.mxu0 %v399_v15  ;;  %1342 = vmatpush3.bf16.xpose.msra.mxu1 %v445_v16 }
  0x1d   : > { %1337 = vmatprep.mubr.msk.bf16.mxu0 %vm1470_vm0, %v1469_v0  ;;  %1343 = vmatprep.mubr.msk.bf16.mxu1 %vm1470_vm0, %v1469_v0 }
  0x1e   : > { %1347 = vmatprep.subr.bf16.mxu0 %v1469_v0  ;;  %1353 = vmatprep.subr.bf16.mxu1 %v1469_v0 }
  0x23   : > { %1338 = vmatmul.mubr.msk.bf16.vlgmr.msra.gmra.mrb[4].mxu0 %vm302_vm1, %v263_v23  ;;  %1344 = vmatmul.mubr.msk.bf16.vlgmr.msra.gmra.mrb[4].mxu1 %vm302_vm1, %v264_v24 }
  0x24   : > { %1348 = vmatpush3.bf16.xpose.msra.mxu0 %v491_v25  ;;  %1354 = vmatpush3.bf16.xpose.msra.mxu1 %v537_v26 }
  0x25   : > { %1349 = vmatprep.mubr.msk.bf16.mxu0 %vm1470_vm0, %v1469_v0  ;;  %1355 = vmatprep.mubr.msk.bf16.mxu1 %vm1470_vm0, %v1469_v0 }
  0x26   : > { %1359 = vmatprep.subr.bf16.mxu0 %v1469_v0  ;;  %1365 = vmatprep.subr.bf16.mxu1 %v1469_v0 }
  0x2b   : > { %1350 = vmatmul.mubr.msk.bf16.vlgmr.msra.gmra.mrb[8].mxu0 %vm302_vm1, %v265_v33  ;;  %1356 = vmatmul.mubr.msk.bf16.vlgmr.msra.gmra.mrb[8].mxu1 %vm302_vm1, %v266_v34 }
  0x2c   : > { %1360 = vmatpush3.bf16.xpose.msra.mxu0 %v583_v35  ;;  %1366 = vmatpush3.bf16.xpose.msra.mxu1 %v629_v36 }
  0x2d   : > { %1361 = vmatprep.mubr.msk.bf16.mxu0 %vm1470_vm0, %v1469_v0  ;;  %1367 = vmatprep.mubr.msk.bf16.mxu1 %vm1470_vm0, %v1469_v0 }
  0x2e   : > { %1371 = vmatprep.subr.bf16.mxu0 %v1469_v0  ;;  %1377 = vmatprep.subr.bf16.mxu1 %v1469_v0 }
  0x33   : > { %1362 = vmatmul.mubr.msk.bf16.vlgmr.msra.gmra.mrb[12].mxu0 %vm302_vm1, %v267_v39  ;;  %1368 = vmatmul.mubr.msk.bf16.vlgmr.msra.gmra.mrb[12].mxu1 %vm302_vm1, %v268_v40 }
  0x34   : > { %1373 = vmatprep.mubr.msk.bf16.mxu0 %vm1470_vm0, %v1469_v0  ;;  %1379 = vmatprep.mubr.msk.bf16.mxu1 %vm1470_vm0, %v1469_v0 }
  0xee   : > { %v343_v41 = vpop.f32.mrb[0].mxu0  ;;  %v389_v42 = vpop.f32.mrb[0].mxu1 }
  0xef   : > { %v671_v44 = vmul.f32 0.5, %v343_v41  ;;  %v1327_v45 = vpop.f32.mrb[1].mxu0  ;;  %v672_v46 = vmul.f32 0.5, %v389_v42  ;;  %v1333_v47 = vpop.f32.mrb[1].mxu1 }
  0xf0   : > { %v346_v48 = vpop.f32.mrb[2].mxu0  ;;  %v392_v49 = vpop.f32.mrb[2].mxu1 }
  0xf1   : > { %v1328_v50 = vpop.f32.mrb[3].mxu0  ;;  %v1334_v51 = vpop.f32.mrb[3].mxu1  ;;  %v685_v52 = vadd.f32 %v1276_v43, %v671_v44  ;;  %v686_v53 = vadd.f32 %v1276_v43, %v672_v46 }
  0xf3   : > { %v694_v54 = vsel %vm693_vm2, %v685_v52, -inf  ;;  %v697_v55 = vsel %vm693_vm2, %v686_v53, -inf }
  0xf4   : > { %695 = vmax.xlane.f32.xlu0 %v694_v54 }
  0xf6   : > { %v435_v56 = vpop.f32.mrb[4].mxu0  ;;  %v481_v57 = vpop.f32.mrb[4].mxu1 }
  0xf7   : > { %v673_v58 = vmul.f32 0.5, %v435_v56  ;;  %v1339_v59 = vpop.f32.mrb[5].mxu0  ;;  %v674_v60 = vmul.f32 0.5, %v481_v57  ;;  %v1345_v61 = vpop.f32.mrb[5].mxu1 }
  0xf8   : > { %698 = vmax.xlane.f32.xlu0 %v697_v55  ;;  %v438_v62 = vpop.f32.mrb[6].mxu0  ;;  %v484_v63 = vpop.f32.mrb[6].mxu1 }
  0xf9   : > { %v1340_v1 = vpop.f32.mrb[7].mxu0  ;;  %v1346_v2 = vpop.f32.mrb[7].mxu1  ;;  %v687_v3 = vadd.f32 %v1276_v43, %v673_v58  ;;  %v688_v4 = vadd.f32 %v1276_v43, %v674_v60 }
  0xfb   : > { %v700_v5 = vsel %vm693_vm2, %v687_v3, -inf  ;;  %v703_v6 = vsel %vm693_vm2, %v688_v4, -inf }
  0xfc   : > { %701 = vmax.xlane.f32.xlu1 %v700_v5 }
  0xfe   : > { %v527_v7 = vpop.f32.mrb[8].mxu0  ;;  %v573_v8 = vpop.f32.mrb[8].mxu1 }
  0xff   : > { %v675_v9 = vmul.f32 0.5, %v527_v7  ;;  %v676_v10 = vmul.f32 0.5, %v573_v8  ;;  %v1351_v11 = vpop.f32.mrb[9].mxu0  ;;  %v1357_v12 = vpop.f32.mrb[9].mxu1 }
 0x100   : > { %704 = vmax.xlane.f32.xlu1 %v703_v6  ;;  %v530_v13 = vpop.f32.mrb[10].mxu0  ;;  %v576_v14 = vpop.f32.mrb[10].mxu1  ;;  %v285_v11 = vld [vmem:[%s1625_s29] sm:$0xff] }
 0x101   : > { %v1352_v15 = vpop.f32.mrb[11].mxu0  ;;  %v1358_v16 = vpop.f32.mrb[11].mxu1  ;;  %v690_v17 = vadd.f32 %v1276_v43, %v676_v10  ;;  %v689_v18 = vadd.f32 %v1276_v43, %v675_v9  ;;  %v293_v13 = vpack.c.bf16 %v285_v11, %v285_v11 }
 0x102   : > { %v286_v15 = vld [vmem:[%s1625_s29 + $0x8] sm:$0xff] }
 0x103   : > { %v709_v19 = vsel %vm693_vm2, %v690_v17, -inf  ;;  %v706_v20 = vsel %vm693_vm2, %v689_v18, -inf  ;;  %v795_v14 = vsel %vm793_vm3, %v293_v13, 0  ;;  %v294_v16 = vpack.c.bf16 %v286_v15, %v286_v15 }
 0x104   : > { %710 = vmax.xlane.f32.xlu1 %v709_v19  ;;  %707 = vmax.xlane.f32.xlu0 %v706_v20 }
 0x105   : > { %1372 = vmatpush3.bf16.msra.mxu0 %v795_v14 }
 0x106   : > { %v619_v21 = vpop.f32.mrb[12].mxu0  ;;  %v665_v22 = vpop.f32.mrb[12].mxu1  ;;  %1383 = vmatprep.subr.bf16.mxu0 %v1469_v0 }
 0x107   : > { %v677_v23 = vmul.f32 0.5, %v619_v21  ;;  %v678_v24 = vmul.f32 0.5, %v665_v22  ;;  %v1363_v25 = vpop.f32.mrb[13].mxu0  ;;  %v1369_v26 = vpop.f32.mrb[13].mxu1  ;;  %v288_v21 = vld [vmem:[%s1625_s29 + $0x18] sm:$0xff] }
 0x108   : > { %v622_v27 = vpop.f32.mrb[14].mxu0  ;;  %v668_v28 = vpop.f32.mrb[14].mxu1  ;;  %v296_v22 = vpack.c.bf16 %v288_v21, %v288_v21 }
 0x109   : > { %v1364_v29 = vpop.f32.mrb[15].mxu0  ;;  %v1370_v30 = vpop.f32.mrb[15].mxu1  ;;  %v692_v31 = vadd.f32 %v1276_v43, %v678_v24  ;;  %v691_v32 = vadd.f32 %v1276_v43, %v677_v23  ;;  %v289_v24 = vld [vmem:[%s1625_s29 + $0x20] sm:$0xff]  ;;  %v290_v27 = vld [vmem:[%s1625_s29 + $0x28] sm:$0xff] }
 0x10a   : > { %v933_v23 = vsel %vm793_vm3, %v296_v22, 0  ;;  %v297_v25 = vpack.c.bf16 %v289_v24, %v289_v24  ;;  %v298_v28 = vpack.c.bf16 %v290_v27, %v290_v27  ;;  %v291_v30 = vld [vmem:[%s1625_s29 + $0x30] sm:$0xff] }
 0x10b   : > { %v715_v33 = vsel %vm693_vm2, %v692_v31, -inf  ;;  %v712_v34 = vsel %vm693_vm2, %v691_v32, -inf }
 0x10c   : > { %716 = vmax.xlane.f32.xlu1 %v715_v33  ;;  %713 = vmax.xlane.f32.xlu0 %v712_v34  ;;  %v979_v26 = vsel %vm793_vm3, %v297_v25, 0  ;;  %v1025_v29 = vsel %vm793_vm3, %v298_v28, 0  ;;  %v292_v33 = vld [vmem:[%s1625_s29 + $0x38] sm:$0xff] }
 0x10d   : > { %v300_v34 = vpack.c.bf16 %v292_v33, %v292_v33 }
 0x181   : > { %v696_v35 = vpop.xlane.xlu0 %695 }
 0x182   : > { %v718_v36 = vsub.f32 %v685_v52, %v696_v35  ;;  %v1117_v35 = vsel %vm793_vm3, %v300_v34, 0 }
 0x184   : > { %v726_v37 = vmul.f32 1.442695, %v718_v36 }
 0x185   : > { %v699_v38 = vpop.xlane.xlu0 %698 }
 0x186   : > { %1429 = vpow2.f32 %v726_v37  ;;  %v719_v39 = vsub.f32 %v686_v53, %v699_v38 }
 0x188   : > { %v728_v40 = vmul.f32 1.442695, %v719_v39 }
 0x189   : > { %v702_v41 = vpop.xlane.xlu1 %701 }
 0x18a   : > { %1431 = vpow2.f32 %v728_v40  ;;  %v720_v42 = vsub.f32 %v687_v3, %v702_v41 }
 0x18c   : > { %v730_v44 = vmul.f32 1.442695, %v720_v42 }
 0x18d   : > { %v705_v45 = vpop.xlane.xlu1 %704 }
 0x18e   : > { %1433 = vpow2.f32 %v730_v44  ;;  %v721_v43 = vsub.f32 %v688_v4, %v705_v45 }
 0x190   : > { %v1595_v46 = vpop.eup %1429  ;;  %v732_v47 = vmul.f32 1.442695, %v721_v43 }
 0x191   : > { %v711_v48 = vpop.xlane.xlu1 %710  ;;  %v708_v49 = vpop.xlane.xlu0 %707  ;;  %v742_v50 = vsel %vm693_vm2, %v1595_v46, 0.0 }
 0x192   : > { %1435 = vpow2.f32 %v732_v47  ;;  %v723_v51 = vsub.f32 %v690_v17, %v711_v48  ;;  %v722_v52 = vsub.f32 %v689_v18, %v708_v49  ;;  %743 = vadd.xlane.f32.xlu0 %v742_v50  ;;  %v841_v17 = vsel %vm793_vm3, %v294_v16, 0  ;;  %v287_v18 = vld [vmem:[%s1625_s29 + $0x10] sm:$0xff] }
 0x193   : > { %1378 = vmatpush3.bf16.msra.mxu1 %v841_v17  ;;  %v295_v19 = vpack.c.bf16 %v287_v18, %v287_v18 }
 0x194   : > { %v1599_v53 = vpop.eup %1431  ;;  %v736_v54 = vmul.f32 1.442695, %v723_v51  ;;  %v734_v55 = vmul.f32 1.442695, %v722_v52  ;;  %1389 = vmatprep.subr.bf16.mxu1 %v1469_v0 }
 0x195   : > { %v745_v56 = vsel %vm693_vm2, %v1599_v53, 0.0  ;;  %v887_v20 = vsel %vm793_vm3, %v295_v19, 0 }
 0x196   : > { %1437 = vpow2.f32 %v736_v54  ;;  %746 = vadd.xlane.f32.xlu1 %v745_v56 }
 0x197   : > { %1439 = vpow2.f32 %v734_v55 }
 0x198   : > { %v1603_v57 = vpop.eup %1433 }
 0x199   : > { %v717_v58 = vpop.xlane.xlu1 %716  ;;  %v714_v59 = vpop.xlane.xlu0 %713  ;;  %v748_v60 = vsel %vm693_vm2, %v1603_v57, 0.0 }
 0x19a   : > { %v725_v61 = vsub.f32 %v692_v31, %v717_v58  ;;  %v724_v62 = vsub.f32 %v691_v32, %v714_v59  ;;  %749 = vadd.xlane.f32.xlu0 %v748_v60  ;;  %v299_v31 = vpack.c.bf16 %v291_v30, %v291_v30 }
 0x19c   : > { %v1607_v63 = vpop.eup %1435  ;;  %v740_v1 = vmul.f32 1.442695, %v725_v61  ;;  %v738_v2 = vmul.f32 1.442695, %v724_v62  ;;  %v1071_v32 = vsel %vm793_vm3, %v299_v31, 0 }
 0x19d   : > { %v751_v3 = vsel %vm693_vm2, %v1607_v63, 0.0 }
 0x19e   : > { %1441 = vpow2.f32 %v740_v1  ;;  %752 = vadd.xlane.f32.xlu1 %v751_v3 }
 0x19f   : > { %1443 = vpow2.f32 %v738_v2 }
 0x1a0   : > { %v1611_v4 = vpop.eup %1437 }
 0x1a1   : > { %v1613_v5 = vpop.eup %1439  ;;  %v757_v6 = vsel %vm693_vm2, %v1611_v4, 0.0 }
 0x1a2   : > { %758 = vadd.xlane.f32.xlu1 %v757_v6  ;;  %v754_v7 = vsel %vm693_vm2, %v1613_v5, 0.0 }
 0x1a3   : > { %755 = vadd.xlane.f32.xlu0 %v754_v7 }
 0x1a8   : > { %v1619_v8 = vpop.eup %1441 }
 0x1a9   : > { %v1627_v9 = vpop.eup %1443  ;;  %v763_v10 = vsel %vm693_vm2, %v1619_v8, 0.0 }
 0x1aa   : > { %764 = vadd.xlane.f32.xlu1 %v763_v10  ;;  %v760_v12 = vsel %vm693_vm2, %v1627_v9, 0.0 }
 0x1ab   : > { %761 = vadd.xlane.f32.xlu0 %v760_v12 }
 0x21f   : > { %v744_v36 = vpop.xlane.xlu0 %743 }
 0x220   : > { %1445 = vrcp.f32 %v744_v36 }
 0x223   : > { %v747_v37 = vpop.xlane.xlu1 %746 }
 0x224   : > { %1447 = vrcp.f32 %v747_v37 }
 0x227   : > { %v750_v38 = vpop.xlane.xlu0 %749 }
 0x228   : > { %1449 = vrcp.f32 %v750_v38 }
 0x22a   : > { %v1446_v39 = vpop.eup %1445 }
 0x22b   : > { %v774_v40 = vmul.f32 %v1446_v39, %v1595_v46  ;;  %v753_v41 = vpop.xlane.xlu1 %752 }
 0x22c   : > { %1451 = vrcp.f32 %v753_v41 }
 0x22d   : > { %v782_v42 = vpack.c.bf16 %v774_v40, %v774_v40 }
 0x22e   : > { %v1448_v44 = vpop.eup %1447 }
 0x22f   : > { %v775_v45 = vmul.f32 %v1448_v44, %v1599_v53  ;;  %v759_v43 = vpop.xlane.xlu1 %758  ;;  %1374 = vmatmul.mubr.msk.bf16.vlgmr.msra.gmra.mrb[16].mxu0 %vm693_vm2, %v782_v42 }
 0x230   : > { %1453 = vrcp.f32 %v759_v43  ;;  %v756_v47 = vpop.xlane.xlu0 %755  ;;  %1384 = vmatpush3.bf16.msra.mxu0 %v887_v20  ;;  %1385 = vmatprep.mubr.msk.bf16.mxu0 %vm1470_vm0, %v1469_v0 }
 0x231   : > { %1455 = vrcp.f32 %v756_v47  ;;  %v783_v48 = vpack.c.bf16 %v775_v45, %v775_v45  ;;  %1395 = vmatprep.subr.bf16.mxu0 %v1469_v0 }
 0x232   : > { %v1450_v46 = vpop.eup %1449 }
 0x233   : > { %v776_v49 = vmul.f32 %v1450_v46, %v1603_v57  ;;  %1380 = vmatmul.mubr.msk.bf16.vlgmr.msra.gmra.mrb[16].mxu1 %vm693_vm2, %v783_v48 }
 0x234   : > { %1390 = vmatpush3.bf16.msra.mxu1 %v933_v23  ;;  %1391 = vmatprep.mubr.msk.bf16.mxu1 %vm1470_vm0, %v1469_v0 }
 0x235   : > { %v784_v50 = vpack.c.bf16 %v776_v49, %v776_v49  ;;  %1401 = vmatprep.subr.bf16.mxu1 %v1469_v0 }
 0x236   : > { %v1452_v51 = vpop.eup %1451 }
 0x237   : > { %v777_v52 = vmul.f32 %v1452_v51, %v1607_v63  ;;  %v765_v53 = vpop.xlane.xlu1 %764  ;;  %1386 = vmatmul.mubr.msk.bf16.vlgmr.msra.gmra.mrb[20].mxu0 %vm693_vm2, %v784_v50 }
 0x238   : > { %1457 = vrcp.f32 %v765_v53  ;;  %v762_v54 = vpop.xlane.xlu0 %761  ;;  %1396 = vmatpush3.bf16.msra.mxu0 %v979_v26  ;;  %1397 = vmatprep.mubr.msk.bf16.mxu0 %vm1470_vm0, %v1469_v0 }
 0x239   : > { %1459 = vrcp.f32 %v762_v54  ;;  %v785_v55 = vpack.c.bf16 %v777_v52, %v777_v52  ;;  %1407 = vmatprep.subr.bf16.mxu0 %v1469_v0 }
 0x23a   : > { %v1454_v56 = vpop.eup %1453 }
 0x23b   : > { %v1456_v57 = vpop.eup %1455  ;;  %1392 = vmatmul.mubr.msk.bf16.vlgmr.msra.gmra.mrb[20].mxu1 %vm693_vm2, %v785_v55  ;;  %v779_v59 = vmul.f32 %v1454_v56, %v1611_v4 }
 0x23c   : > { %v778_v58 = vmul.f32 %v1456_v57, %v1613_v5  ;;  %1402 = vmatpush3.bf16.msra.mxu1 %v1025_v29  ;;  %1403 = vmatprep.mubr.msk.bf16.mxu1 %vm1470_vm0, %v1469_v0 }
 0x23d   : > { %1413 = vmatprep.subr.bf16.mxu1 %v1469_v0  ;;  %v787_v61 = vpack.c.bf16 %v779_v59, %v779_v59 }
 0x23e   : > { %v786_v60 = vpack.c.bf16 %v778_v58, %v778_v58 }
 0x240   : > { %1398 = vmatmul.mubr.msk.bf16.vlgmr.msra.gmra.mrb[24].mxu0 %vm693_vm2, %v786_v60 }
 0x241   : > { %1408 = vmatpush3.bf16.msra.mxu0 %v1071_v32  ;;  %1409 = vmatprep.mubr.msk.bf16.mxu0 %vm1470_vm0, %v1469_v0 }
 0x242   : > { %v1458_v62 = vpop.eup %1457 }
 0x243   : > { %v1460_v63 = vpop.eup %1459  ;;  %1404 = vmatmul.mubr.msk.bf16.vlgmr.msra.gmra.mrb[24].mxu1 %vm693_vm2, %v787_v61  ;;  %v781_v2 = vmul.f32 %v1458_v62, %v1619_v8 }
 0x244   : > { %v780_v1 = vmul.f32 %v1460_v63, %v1627_v9  ;;  %1414 = vmatpush3.bf16.msra.mxu1 %v1117_v35  ;;  %1415 = vmatprep.mubr.msk.bf16.mxu1 %vm1470_vm0, %v1469_v0 }
 0x245   : > { %v789_v4 = vpack.c.bf16 %v781_v2, %v781_v2 }
 0x246   : > { %v788_v3 = vpack.c.bf16 %v780_v1, %v780_v1 }
 0x248   : > { %1410 = vmatmul.mubr.msk.bf16.vlgmr.msra.gmra.mrb[28].mxu0 %vm693_vm2, %v788_v3 }
 0x24b   : > { %1416 = vmatmul.mubr.msk.bf16.vlgmr.msra.gmra.mrb[28].mxu1 %vm693_vm2, %v789_v4 }
 0x302   : > { %v831_v5 = vpop.f32.mrb[16].mxu0 }
 0x303   : > { %1159 = vst.msk [vmem:[%s1687_s6] sm:$0xff] %vm302_vm1, %v831_v5  ;;  %v1375_v0 = vpop.f32.mrb[17].mxu0 }
 0x304   : > { %v834_v6 = vpop.f32.mrb[18].mxu0 }
 0x305   : > { %v1376_v7 = vpop.f32.mrb[19].mxu0 }
 0x306   : > { %v877_v8 = vpop.f32.mrb[16].mxu1 }
 0x307   : > { %1160 = vst.msk [vmem:[%s1687_s6 + $0x8] sm:$0xff] %vm302_vm1, %v877_v8  ;;  %v1381_v9 = vpop.f32.mrb[17].mxu1 }
 0x308   : > { %v880_v10 = vpop.f32.mrb[18].mxu1 }
 0x309   : > { %v1382_v11 = vpop.f32.mrb[19].mxu1 }
 0x30a   : > { %v923_v12 = vpop.f32.mrb[20].mxu0 }
 0x30b   : > { %1161 = vst.msk [vmem:[%s1687_s6 + $0x10] sm:$0xff] %vm302_vm1, %v923_v12  ;;  %v1387_v13 = vpop.f32.mrb[21].mxu0 }
 0x30c   : > { %v926_v14 = vpop.f32.mrb[22].mxu0 }
 0x30d   : > { %v1388_v15 = vpop.f32.mrb[23].mxu0 }
 0x30e   : > { %v969_v16 = vpop.f32.mrb[20].mxu1 }
 0x30f   : > { %1162 = vst.msk [vmem:[%s1687_s6 + $0x18] sm:$0xff] %vm302_vm1, %v969_v16  ;;  %v1393_v17 = vpop.f32.mrb[21].mxu1 }
 0x310   : > { %v972_v18 = vpop.f32.mrb[22].mxu1 }
 0x311   : > { %v1394_v19 = vpop.f32.mrb[23].mxu1 }
 0x313   : > { %v1015_v20 = vpop.f32.mrb[24].mxu0 }
 0x314   : > { %1163 = vst.msk [vmem:[%s1687_s6 + $0x20] sm:$0xff] %vm302_vm1, %v1015_v20  ;;  %v1399_v21 = vpop.f32.mrb[25].mxu0 }
 0x315   : > { %v1018_v22 = vpop.f32.mrb[26].mxu0 }
 0x316   : > { %v1400_v23 = vpop.f32.mrb[27].mxu0  ;;  %v1061_v24 = vpop.f32.mrb[24].mxu1 }
 0x317   : > { %1164 = vst.msk [vmem:[%s1687_s6 + $0x28] sm:$0xff] %vm302_vm1, %v1061_v24  ;;  %v1405_v25 = vpop.f32.mrb[25].mxu1 }
 0x318   : > { %v1064_v26 = vpop.f32.mrb[26].mxu1 }
 0x319   : > { %v1406_v27 = vpop.f32.mrb[27].mxu1 }
 0x31b   : > { %v1107_v28 = vpop.f32.mrb[28].mxu0 }
 0x31c   : > { %1165 = vst.msk [vmem:[%s1687_s6 + $0x30] sm:$0xff] %vm302_vm1, %v1107_v28  ;;  %v1411_v29 = vpop.f32.mrb[29].mxu0 }
 0x31d   : > { %v1110_v30 = vpop.f32.mrb[30].mxu0 }
 0x31e   : > { %v1412_v31 = vpop.f32.mrb[31].mxu0  ;;  %v1153_v32 = vpop.f32.mrb[28].mxu1 }
 0x31f   : > { %1166 = vst.msk [vmem:[%s1687_s6 + $0x38] sm:$0xff] %vm302_vm1, %v1153_v32  ;;  %v1417_v33 = vpop.f32.mrb[29].mxu1 }
 0x320   : > { %v1156_v34 = vpop.f32.mrb[30].mxu1 }
 0x321   : > { %v1418_v35 = vpop.f32.mrb[31].mxu1 }
 0x322 PF: > { %s14_s15 = sadd.s32 1, %s1467_s15  }
 0x323   : > { %p11_p4 = scmp.ge.s32.totalorder %s14_s15, 4  }
 0x325   :  { %13 = sbr.rel (!%p11_p4) target bundleno = 1 (0x1), region = 75 }

// kernel: pretrain_forward.17
= control target key start
LH: loop header
LB: loop body
LE: loop exit
PB: predicated region body
PF: predicated region fallthrough
CT: control target
= control target key end

     0   :  { %s804_s12 = smov 0   ;;  %s806_s13 = smov 0   ;;  %s890_s0 = inlined_call_operand.vmem [shape: f32[16,32], index: 0, kind: input, shape index: {}]   ;;  %s891_s1 = inlined_call_operand.vmem [shape: bf16[32,2048], index: 1, kind: input, shape index: {}]   ;;  %s892_s2 = inlined_call_operand.vmem [shape: f32[1,2048], index: 2, kind: input, shape index: {}]   ;;  %s893_s3 = inlined_call_operand.vmem [shape: f32[16,2048], index: 3, kind: output, shape index: {}]  }
   0x1   :  { %s808_s14 = smov 0   ;;  %s810_s15 = smov 0  }
   0x2   :  { %s812_s16 = smov 0  }
   0x3 LB: > { %s28_s17 = sadd.s32 1, %s777_s15  ;;  %s661_s18 = sadd.s32 4294967295, %s781_s16   ;;  %s781_s16 = sphi %s812_s16, %s13_s16   ;;  %s777_s15 = sphi %s810_s15, %s898_s15   ;;  %s773_s14 = sphi %s808_s14, %s897_s14   ;;  %s769_s13 = sphi %s806_s13, %s896_s13   ;;  %s765_s12 = sphi %s804_s12, %s895_s12  }
   0x4   : > { %p30_p0 = scmp.ge.s32.totalorder %s28_s17, 4  ;;  %p76_p1 = scmp.ne.s32.totalorder %s769_s13, %s765_s12 }
   0x5   : > { %p77_p2 = scmp.eq.s32.totalorder %s781_s16, 0  ;;  %p134_p4 = scmp.eq.s32.totalorder %s661_s18, 3 }
   0x6   : > { %s900_s17 = smov (%p30_p0, %s28_s17), 0  ;;  %s69_s20 = sadd.s32 1, %s769_s13 }
   0x7   : > { %p78_p3 = por %p77_p2, %p76_p1  ;;  %s65_s19 = ssub.s32 %s777_s15, %s900_s17 }
   0x8   : > { %p67_p5 = scmp.eq.s32.totalorder %s65_s19, 0  ;;  %p839_p6 = por %p134_p4, %p76_p1 }
   0x9   : > { %p665_p7 = scmp.ge.s32.totalorder %s781_s16, 4 }
   0xa   : > { %s844_s22 = scalar_select %p67_p5, %s769_s13, %s69_s20  }
   0xb   : > { %168 = sbr.rel (%p665_p7) target bundleno = 26 (0x1a), region = 20 }
  0x12   : > { %171 = sbr.rel (!%p78_p3) target bundleno = 26 (0x1a), region = 24  ;;  %s173_s23 = sand.u32 (%p78_p3), 1, %s769_s13  }
  0x13   : > { %s688_s24 = sshll.u32 (%p78_p3), %s777_s15, 4  ;;  %s666_s25 = sshll.u32 (%p78_p3), %s173_s23, 6 }
  0x14   : > { %s181_s28 = scalar_lea.vmem (%p78_p3), %s891_s1, %s688_s24  ;;  %s175_s29 = scalar_lea.vmem (%p78_p3), [#allocation3], %s666_s25 }
  0x15   : > { %v194_v0 = vld [vmem:[%s181_s28] sm:$0xff] (%p78_p3)  ;;  %v196_v1 = vld [vmem:[%s181_s28 + $0x8] sm:$0xff] (%p78_p3) }
  0x16   : > { %v198_v2 = vld [vmem:[%s181_s28 + $0x40] sm:$0xff] (%p78_p3)  ;;  %195 = vst [vmem:[%s175_s29] sm:$0xff] (%p78_p3), %v194_v0  ;;  %197 = vst [vmem:[%s175_s29 + $0x8] sm:$0xff] (%p78_p3), %v196_v1  ;;  %v200_v3 = vld [vmem:[%s181_s28 + $0x48] sm:$0xff] (%p78_p3) }
  0x17   : > { %199 = vst [vmem:[%s175_s29 + $0x10] sm:$0xff] (%p78_p3), %v198_v2  ;;  %v202_v4 = vld [vmem:[%s181_s28 + $0x80] sm:$0xff] (%p78_p3)  ;;  %v204_v5 = vld [vmem:[%s181_s28 + $0x88] sm:$0xff] (%p78_p3)  ;;  %201 = vst [vmem:[%s175_s29 + $0x18] sm:$0xff] (%p78_p3), %v200_v3 }
  0x18   : > { %203 = vst [vmem:[%s175_s29 + $0x20] sm:$0xff] (%p78_p3), %v202_v4  ;;  %205 = vst [vmem:[%s175_s29 + $0x28] sm:$0xff] (%p78_p3), %v204_v5  ;;  %v206_v6 = vld [vmem:[%s181_s28 + $0xc0] sm:$0xff] (%p78_p3)  ;;  %v208_v7 = vld [vmem:[%s181_s28 + $0xc8] sm:$0xff] (%p78_p3) }
  0x19   : > { %207 = vst [vmem:[%s175_s29 + $0x30] sm:$0xff] %v206_v6  ;;  %209 = vst [vmem:[%s175_s29 + $0x38] sm:$0xff] %v208_v7 }
  0x1a PF: > { %p669_p8 = scmp.ge.s32.totalorder %s781_s16, 1  ;;  %p222_p9 = scmp.lt.s32.totalorder %s781_s16, 5 }
  0x1c   : > { %p223_p10 = pnand %p669_p8, %p222_p9 }
  0x1d   : > { %s229_s30 = sand.u32 (!%p223_p10), 1, %s765_s12   ;;  %v783_v8 = vmov (!%p223_p10), 0   ;;  %v302_v13 = vld [vmem:[%s890_s0] sm:$0xff] (!%p223_p10)  ;;  %v303_v14 = vld [vmem:[%s890_s0 + $0x8] sm:$0xff] (!%p223_p10)  ;;  %vm353_vm0 = vcmask (!%p223_p10), 261120   ;;  %s672_s10 = sshll.u32 (!%p223_p10), %s773_s14, 2  ;;  %v472_v20 = vlaneseq (!%p223_p10) }
  0x1e   : > { %226 = sbr.rel (%p223_p10) target bundleno = 269 (0x10d), region = 51  ;;  %s855_s4 = sshll.u32 (!%p223_p10), %s229_s30, 6  ;;  %389 = vmatprep.mubr.bf16.mxu0 (!%p223_p10), %v783_v8  ;;  %432 = vmatprep.mubr.bf16.mxu1 (!%p223_p10), %v783_v8  ;;  %v304_v19 = vpack.c.bf16 (!%p223_p10), %v303_v14, %v302_v13 }
  0x1f   : > { %s231_s5 = scalar_lea.vmem (!%p223_p10), [#allocation3], %s855_s4  ;;  %p275_p11 = scmp.lt.s32.totalorder (!%p223_p10), %s672_s10, 15  ;;  %v473_v21 = vshrl.u32 (!%p223_p10), %v472_v20, 7 }
  0x20   : > { %v731_v9 = vld [vmem:[%s231_s5 + $0x4] ss:$16 sps:$4 sm:$0xff] (!%p223_p10)   ;;  %v733_v10 = vld [vmem:[%s231_s5 + $0xc] ss:$16 sps:$4 sm:$0xff] (!%p223_p10)   ;;  %v735_v11 = vld [vmem:[%s231_s5] ss:$16 sps:$4 sm:$0xff] (!%p223_p10)  }
  0x21   : > { %357 = vmatprep.subr.bf16.mxu0 (!%p223_p10), %v731_v9  ;;  %v736_v12 = vld [vmem:[%s231_s5 + $0x8] ss:$16 sps:$4 sm:$0xff] (!%p223_p10)   ;;  %400 = vmatprep.subr.bf16.mxu1 (!%p223_p10), %v733_v10  ;;  %v737_v15 = vld [vmem:[%s231_s5 + $0x24] ss:$16 sps:$4 sm:$0xff] (!%p223_p10)   ;;  %v739_v16 = vld [vmem:[%s231_s5 + $0x2c] ss:$16 sps:$4 sm:$0xff] (!%p223_p10)  }
  0x22   : > { %358 = vmatpush1.bf16.msra.mxu0 (!%p223_p10), %v735_v11  ;;  %401 = vmatpush1.bf16.msra.mxu1 (!%p223_p10), %v736_v12  ;;  %v741_v17 = vld [vmem:[%s231_s5 + $0x20] ss:$16 sps:$4 sm:$0xff] (!%p223_p10)   ;;  %v742_v18 = vld [vmem:[%s231_s5 + $0x28] ss:$16 sps:$4 sm:$0xff] (!%p223_p10)   ;;  %v474_v22 = vsub.s32 (!%p223_p10), 0, %v473_v21  ;;  %v482_v23 = vsub.s32 (!%p223_p10), 2, %v473_v21 }
  0x23   : > { %359 = vmatprep.subr.bf16.mxu0 (!%p223_p10), %v737_v15  ;;  %402 = vmatprep.subr.bf16.mxu1 (!%p223_p10), %v739_v16  ;;  %v478_v25 = vsub.s32 (!%p223_p10), 1, %v473_v21  ;;  %v486_v26 = vsub.s32 (!%p223_p10), 3, %v473_v21  ;;  %s262_s19 = scalar_lea.vmem (!%p223_p10), [#allocation4], %s855_s4 }
  0x25   : > { %s902_s10 = smov (!%p275_p11, %s672_s10), 15  ;;  %s689_s20 = sshll.u32 (%p839_p6), %s773_s14, 5 }
  0x26   : > { %360 = vmatpush1.bf16.msra.mxu0 %v741_v17  ;;  %403 = vmatpush1.bf16.msra.mxu1 %v742_v18  ;;  %s277_s18 = scalar_lea.vmem %s892_s2, %s902_s10  ;;  %s528_s25 = scalar_lea.vmem (%p839_p6), %s893_s3, %s689_s20 }
  0x27   : > { %v470_v24 = vld [vmem:[%s277_s18] sm:$0xf] }
  0x28   : > { %v475_v27 = vrot.slane %v470_v24, %v474_v22  ;;  %v483_v28 = vrot.slane %v470_v24, %v482_v23  ;;  %v479_v29 = vrot.slane %v470_v24, %v478_v25  ;;  %v487_v30 = vrot.slane %v470_v24, %v486_v26 }
  0x29   : > { %681 = vmatmul.mubr.msk.bf16.vlgmr.msra.gmra.mrb[0].mxu0 %vm353_vm0, %v304_v19  ;;  %682 = vmatmul.mubr.msk.bf16.vlgmr.msra.gmra.mrb[0].mxu1 %vm353_vm0, %v304_v19 }
  0xfc   : > { %v391_v31 = vpop.f32.mrb[0].mxu0  ;;  %v434_v32 = vpop.f32.mrb[0].mxu1 }
  0xfd   : > { %v492_v33 = vadd.f32 %v475_v27, %v391_v31  ;;  %v494_v34 = vadd.f32 %v483_v28, %v434_v32  ;;  %v393_v35 = vpop.f32.mrb[1].mxu0  ;;  %v436_v36 = vpop.f32.mrb[1].mxu1 }
  0xfe   : > { %v493_v37 = vadd.f32 %v479_v29, %v393_v35  ;;  %v495_v38 = vadd.f32 %v487_v30, %v436_v36  ;;  %v395_v39 = vpop.f32.mrb[2].mxu0  ;;  %v438_v40 = vpop.f32.mrb[2].mxu1  ;;  %522 = sbr.rel (!%p839_p6) target bundleno = 269 (0x10d), region = 67 }
  0xff   : > { %v500_v41 = vmax.f32 %v492_v33, 0.0  ;;  %v502_v42 = vmax.f32 %v494_v34, 0.0  ;;  %v496_v43 = vadd.f32 %v475_v27, %v395_v39  ;;  %v498_v44 = vadd.f32 %v483_v28, %v438_v40  ;;  %v397_v45 = vpop.f32.mrb[3].mxu0  ;;  %v440_v46 = vpop.f32.mrb[3].mxu1 }
 0x100   : > { %v501_v47 = vmax.f32 %v493_v37, 0.0  ;;  %v503_v48 = vmax.f32 %v495_v38, 0.0  ;;  %v497_v49 = vadd.f32 %v479_v29, %v397_v45  ;;  %v499_v50 = vadd.f32 %v487_v30, %v440_v46 }
 0x101   : > { %508 = vst [vmem:[%s262_s19] sm:$0xff] %v500_v41  ;;  %510 = vst [vmem:[%s262_s19 + $0x10] sm:$0xff] %v502_v42  ;;  %v504_v51 = vmax.f32 %v496_v43, 0.0  ;;  %v506_v52 = vmax.f32 %v498_v44, 0.0 }
 0x102   : > { %509 = vst [vmem:[%s262_s19 + $0x8] sm:$0xff] %v501_v47  ;;  %511 = vst [vmem:[%s262_s19 + $0x18] sm:$0xff] %v503_v48  ;;  %v505_v53 = vmax.f32 %v497_v49, 0.0  ;;  %v507_v54 = vmax.f32 %v499_v50, 0.0 }
 0x103   : > { %512 = vst [vmem:[%s262_s19 + $0x20] sm:$0xff] %v504_v51  ;;  %514 = vst [vmem:[%s262_s19 + $0x30] sm:$0xff] %v506_v52 }
 0x104   : > { %513 = vst [vmem:[%s262_s19 + $0x28] sm:$0xff] %v505_v53  ;;  %515 = vst [vmem:[%s262_s19 + $0x38] sm:$0xff] %v507_v54 }
 0x108   : > { %v541_v55 = vld [vmem:[%s262_s19] sm:$0xff]  ;;  %v545_v57 = vld [vmem:[%s262_s19 + $0x10] sm:$0xff] }
 0x109   : > { %v543_v56 = vld [vmem:[%s262_s19 + $0x8] sm:$0xff]  ;;  %v547_v58 = vld [vmem:[%s262_s19 + $0x18] sm:$0xff]  ;;  %542 = vst [vmem:[%s528_s25] sm:$0xff] %v541_v55  ;;  %546 = vst [vmem:[%s528_s25 + $0x10] sm:$0xff] %v545_v57 }
 0x10a   : > { %v549_v59 = vld [vmem:[%s262_s19 + $0x20] sm:$0xff]  ;;  %544 = vst [vmem:[%s528_s25 + $0x8] sm:$0xff] %v543_v56  ;;  %548 = vst [vmem:[%s528_s25 + $0x18] sm:$0xff] %v547_v58  ;;  %v553_v61 = vld [vmem:[%s262_s19 + $0x30] sm:$0xff] }
 0x10b   : > { %v551_v60 = vld [vmem:[%s262_s19 + $0x28] sm:$0xff]  ;;  %550 = vst [vmem:[%s528_s25 + $0x80] sm:$0xff] %v549_v59  ;;  %v555_v62 = vld [vmem:[%s262_s19 + $0x38] sm:$0xff]  ;;  %554 = vst [vmem:[%s528_s25 + $0x90] sm:$0xff] %v553_v61 }
 0x10c   : > { %552 = vst [vmem:[%s528_s25 + $0x88] sm:$0xff] %v551_v60  ;;  %556 = vst [vmem:[%s528_s25 + $0x98] sm:$0xff] %v555_v62 }
 0x10d PF: > { %s13_s16 = sadd.s32 1, %s781_s16   ;;  %s895_s12 = smov %s769_s13 }
 0x10e   : > { %p10_p12 = scmp.ge.s32.totalorder %s13_s16, 6   ;;  %s896_s13 = smov %s844_s22 }
 0x10f   : > { %s897_s14 = smov %s777_s15  ;;  %s898_s15 = smov %s900_s17 }
 0x110   :  { %12 = sbr.rel (!%p10_p12) target bundleno = 3 (0x3), region = 127 }

// kernel: pretrain_forward.25
= control target key start
LH: loop header
LB: loop body
LE: loop exit
PB: predicated region body
PF: predicated region fallthrough
CT: control target
= control target key end

     0   :  { %vm19_vm0 = vcmask 31744   ;;  %v132_v0 = vmov 0.0   ;;  %vm133_vm1 = vmmov 0   ;;  %vm43_vm2 = vcmask 261120   ;;  %s181_s1 = inlined_call_operand.vmem [shape: bf16[32,4], index: 1, kind: input, shape index: {}]   ;;  %s182_s0 = inlined_call_operand.vmem [shape: f32[16,32], index: 0, kind: input, shape index: {}]   ;;  %s183_s2 = inlined_call_operand.vmem [shape: f32[1,4], index: 2, kind: input, shape index: {}]   ;;  %s184_s3 = inlined_call_operand.vmem [shape: f32[16,4], index: 3, kind: output, shape index: {}]  }
   0x1   :  { %120 = vmatprep.subr.bf16.mxu0 %v132_v0  ;;  %v130_v1 = vld [vmem:[%s181_s1] sm:$0xff]   ;;  %124 = vmatprep.mubr.msk.bf16.mxu0 %vm133_vm1, %v132_v0  ;;  %20 = vst.msk [vmem:[#allocation2] sm:$0xff] %vm19_vm0, %v132_v0  ;;  %21 = vst.msk [vmem:[#allocation2 + $0x8] sm:$0xff] %vm19_vm0, %v132_v0  ;;  %v131_v2 = vld [vmem:[%s181_s1 + $0x8] sm:$0xff]  }
   0x2   :  { %121 = vmatpush3.bf16.msra.mxu0 %v130_v1  ;;  %v24_v3 = vld [vmem:[%s182_s0] sm:$0xff]  ;;  %v25_v4 = vld [vmem:[%s182_s0 + $0x8] sm:$0xff] }
   0x3   :  { %122 = vmatprep.subr.bf16.mxu0 %v132_v0  ;;  %v26_v5 = vpack.c.bf16 %v25_v4, %v24_v3  ;;  %v116_v14 = vld [vmem:[%s183_s2] ss:$0 sm:$0xff] }
   0x6   :  { %123 = vmatpush3.bf16.msra.mxu0 %v131_v2 }
   0x8   :  { %v22_v6 = vld [vmem:[#allocation2] sm:$0xff]  ;;  %v23_v8 = vld [vmem:[#allocation2 + $0x8] sm:$0xff] }
   0x9   :  { %125 = vmatmul.mubr.msk.bf16.vlgmr.msra.gmra.mrb[0].mxu0 %vm43_vm2, %v26_v5 }
  0xdc   :  { %v81_v7 = vpop.f32.mrb[0].mxu0 }
  0xdd   :  { %v88_v9 = vadd.f32 %v81_v7, %v22_v6  ;;  %v126_v10 = vpop.f32.mrb[1].mxu0 }
  0xde   :  { %v84_v11 = vpop.f32.mrb[2].mxu0 }
  0xdf   :  { %91 = vst.msk [vmem:[#allocation2] sm:$0xff] %vm19_vm0, %v88_v9  ;;  %v89_v12 = vadd.f32 %v84_v11, %v23_v8  ;;  %v127_v13 = vpop.f32.mrb[3].mxu0 }
  0xe1   :  { %92 = vst.msk [vmem:[#allocation2 + $0x8] sm:$0xff] %vm19_vm0, %v89_v12 }
  0xe6   :  { %v96_v15 = vld [vmem:[#allocation2] sm:$0xff] }
  0xe7   :  { %v105_v16 = vadd.f32 %v116_v14, %v96_v15 }
  0xe8   :  { %v97_v17 = vld [vmem:[#allocation2 + $0x8] sm:$0xff] }
  0xe9   :  { %107 = vst.msk [vmem:[%s184_s3] sm:$0xff] %vm19_vm0, %v105_v16  ;;  %v106_v18 = vadd.f32 %v116_v14, %v97_v17 }
  0xeb   :  { %108 = vst.msk [vmem:[%s184_s3 + $0x8] sm:$0xff] %vm19_vm0, %v106_v18 }

// kernel: pretrain_forward.18
= control target key start
LH: loop header
LB: loop body
LE: loop exit
PB: predicated region body
PF: predicated region fallthrough
CT: control target
= control target key end

     0   :  { %s1354_s24 = smov 0   ;;  %s1356_s25 = smov 0   ;;  %s1500_s0 = inlined_call_operand.vmem [shape: f32[16,2048], index: 0, kind: input, shape index: {}]   ;;  %s1501_s1 = inlined_call_operand.vmem [shape: bf16[2048,32], index: 1, kind: input, shape index: {}]   ;;  %s1502_s2 = inlined_call_operand.vmem [shape: f32[1,32], index: 2, kind: input, shape index: {}]   ;;  %s1503_s3 = inlined_call_operand.vmem [shape: f32[16,32], index: 3, kind: input, shape index: {}]   ;;  %s1504_s4 = inlined_call_operand.vmem [shape: f32[1,32], index: 4, kind: input, shape index: {}]   ;;  %s1505_s5 = inlined_call_operand.vmem [shape: f32[1,32], index: 5, kind: input, shape index: {}]   ;;  %s1506_s6 = inlined_call_operand.vmem [shape: f32[16,1], index: 6, kind: input, shape index: {}]   ;;  %s1507_s7 = inlined_call_operand.vmem [shape: f32[16,32], index: 7, kind: output, shape index: {}]  }
   0x1   :  { %s1358_s26 = smov 0   ;;  %s1360_s27 = smov 0  }
   0x2   :  { %s1362_s28 = smov 0  }
   0x3 LB: > { %s29_s29 = sadd.s32 1, %s1306_s27  ;;  %p52_p1 = scmp.ne.s32.totalorder %s1298_s25, %s1294_s24  ;;  %s1310_s28 = sphi %s1362_s28, %s17_s28   ;;  %s1306_s27 = sphi %s1360_s27, %s1511_s27   ;;  %s1302_s26 = sphi %s1358_s26, %s1510_s26   ;;  %s1298_s25 = sphi %s1356_s25, %s1509_s25   ;;  %s1294_s24 = sphi %s1354_s24, %s1508_s24  }
   0x4   : > { %p30_p0 = scmp.ge.s32.totalorder %s29_s29, 4  ;;  %p53_p2 = scmp.eq.s32.totalorder %s1310_s28, 0 }
   0x5   : > { %s45_s8 = sadd.s32 1, %s1298_s25  ;;  %p1098_p5 = scmp.ge.s32.totalorder %s1310_s28, 4 }
   0x6   : > { %s1513_s29 = smov (%p30_p0, %s29_s29), 0  ;;  %p54_p3 = por %p53_p2, %p52_p1 }
   0x7   : > { %s41_s30 = ssub.s32 %s1306_s27, %s1513_s29  ;;  %305 = sbr.rel (%p1098_p5) target bundleno = 22 (0x16), region = 36 }
   0x8   : > { %p43_p4 = scmp.eq.s32.totalorder %s41_s30, 0 }
   0xa   : > { %s1389_s9 = scalar_select %p43_p4, %s1298_s25, %s45_s8  }
   0xe   : > { %308 = sbr.rel (!%p54_p3) target bundleno = 22 (0x16), region = 40  ;;  %s310_s10 = sand.u32 (%p54_p3), 1, %s1298_s25  }
   0xf   : > { %s1147_s11 = sshll.u32 (%p54_p3), %s1306_s27, 5  ;;  %s1099_s12 = sshll.u32 (%p54_p3), %s310_s10, 6 }
  0x10   : > { %s318_s15 = scalar_lea.vmem (%p54_p3), %s1500_s0, %s1147_s11  ;;  %s312_s16 = scalar_lea.vmem (%p54_p3), [#allocation3], %s1099_s12 }
  0x11   : > { %v331_v0 = vld [vmem:[%s318_s15] sm:$0xff] (%p54_p3)  ;;  %v333_v1 = vld [vmem:[%s318_s15 + $0x8] sm:$0xff] (%p54_p3)  ;;  %v335_v2 = vld [vmem:[%s318_s15 + $0x10] sm:$0xff] (%p54_p3) }
  0x12   : > { %332 = vst [vmem:[%s312_s16] sm:$0xff] (%p54_p3), %v331_v0  ;;  %334 = vst [vmem:[%s312_s16 + $0x8] sm:$0xff] (%p54_p3), %v333_v1  ;;  %v337_v3 = vld [vmem:[%s318_s15 + $0x18] sm:$0xff] (%p54_p3)  ;;  %v339_v4 = vld [vmem:[%s318_s15 + $0x80] sm:$0xff] (%p54_p3) }
  0x13   : > { %336 = vst [vmem:[%s312_s16 + $0x10] sm:$0xff] (%p54_p3), %v335_v2  ;;  %v341_v5 = vld [vmem:[%s318_s15 + $0x88] sm:$0xff] (%p54_p3)  ;;  %338 = vst [vmem:[%s312_s16 + $0x18] sm:$0xff] (%p54_p3), %v337_v3  ;;  %v343_v6 = vld [vmem:[%s318_s15 + $0x90] sm:$0xff] (%p54_p3) }
  0x14   : > { %340 = vst [vmem:[%s312_s16 + $0x20] sm:$0xff] (%p54_p3), %v339_v4  ;;  %342 = vst [vmem:[%s312_s16 + $0x28] sm:$0xff] (%p54_p3), %v341_v5  ;;  %v345_v7 = vld [vmem:[%s318_s15 + $0x98] sm:$0xff] (%p54_p3) }
  0x15   : > { %344 = vst [vmem:[%s312_s16 + $0x30] sm:$0xff] %v343_v6  ;;  %346 = vst [vmem:[%s312_s16 + $0x38] sm:$0xff] %v345_v7 }
  0x16 PF: > { %p1102_p6 = scmp.ge.s32.totalorder %s1310_s28, 1  ;;  %p363_p7 = scmp.lt.s32.totalorder %s1310_s28, 5 }
  0x18   : > { %p364_p8 = pnand %p1102_p6, %p363_p7 }
  0x19   : > { %s370_s17 = sand.u32 (!%p364_p8), 1, %s1294_s24   ;;  %s1104_s18 = sshll.u32 (!%p364_p8), %s1302_s26, 6 }
  0x1a   : > { %367 = sbr.rel (%p364_p8) target bundleno = 626 (0x272), region = 67  ;;  %s1103_s19 = sshll.u32 (!%p364_p8), %s370_s17, 6 }
  0x1b   : > { %p437_p9 = scmp.lt.s32.totalorder (!%p364_p8), %s1104_s18, 255  ;;  %s1406_s30 = scalar_lea.vmem (!%p364_p8), [#allocation3], %s1103_s19 }
  0x1c   : > { %p1106_p10 = scmp.ne.s32.totalorder (!%p364_p8), %s1302_s26, 0 }
  0x21   : > { %s1515_s18 = smov (!%p437_p9, %s1104_s18), 255  ;;  %482 = sbr.rel (%p1106_p10) target bundleno = 40 (0x28), region = 75 }
  0x22   : > { %s1105_s20 = sshll.u32 %s1515_s18, 2  ;;  %vm483_vm0 = vcmask (!%p1106_p10), 261120   ;;  %v1312_v8 = vmov (!%p1106_p10), 0.0  }
  0x23   : > { %s1404_s23 = scalar_lea.vmem %s1501_s1, %s1105_s20  ;;  %484 = vst.msk [vmem:[#allocation2] sm:$0xff] (!%p1106_p10), %vm483_vm0, %v1312_v8  ;;  %485 = vst.msk [vmem:[#allocation2 + $0x8] sm:$0xff] (!%p1106_p10), %vm483_vm0, %v1312_v8 }
  0x28 PF: > { %v1234_v9 = vld [vmem:[%s1404_s23 + $0x40] sm:$0xff]   ;;  %v1238_v13 = vld [vmem:[%s1404_s23 + $0x48] sm:$0xff]   ;;  %v1242_v17 = vld [vmem:[%s1404_s23 + $0x50] sm:$0xff]   ;;  %vm840_vm1 = vcmask 261120   ;;  %p1139_p11 = scmp.ne.s32.totalorder %s1302_s26, 3 }
  0x29   : > { %v1235_v10 = vld [vmem:[%s1404_s23 + $0xc0] sm:$0xff]   ;;  %1148 = vmatprep.subr.bf16.mxu0 %v1234_v9  ;;  %v1239_v14 = vld [vmem:[%s1404_s23 + $0xc8] sm:$0xff]   ;;  %v1243_v18 = vld [vmem:[%s1404_s23 + $0xd0] sm:$0xff]  }
  0x2a   : > { %v1236_v11 = vld [vmem:[%s1404_s23] sm:$0xff]   ;;  %1170 = vmatprep.subr.bf16.mxu1 %v1235_v10  ;;  %v1240_v15 = vld [vmem:[%s1404_s23 + $0x8] sm:$0xff]   ;;  %v1244_v19 = vld [vmem:[%s1404_s23 + $0x10] sm:$0xff]  }
  0x2b   : > { %v1237_v12 = vld [vmem:[%s1404_s23 + $0x80] sm:$0xff]   ;;  %1149 = vmatpush3.bf16.msra.mxu0 %v1236_v11  ;;  %v1241_v16 = vld [vmem:[%s1404_s23 + $0x88] sm:$0xff]   ;;  %v1245_v20 = vld [vmem:[%s1404_s23 + $0x90] sm:$0xff]  }
  0x2c   : > { %1171 = vmatpush3.bf16.msra.mxu1 %v1237_v12  ;;  %1150 = vmatprep.subr.bf16.mxu0 %v1238_v13  ;;  %v1246_v21 = vld [vmem:[%s1404_s23 + $0x58] sm:$0xff]   ;;  %v1250_v25 = vld [vmem:[%s1404_s23 + $0x60] sm:$0xff]   ;;  %v1254_v29 = vld [vmem:[%s1404_s23 + $0x68] sm:$0xff]  }
  0x2d   : > { %1172 = vmatprep.subr.bf16.mxu1 %v1239_v14  ;;  %v1247_v22 = vld [vmem:[%s1404_s23 + $0xd8] sm:$0xff]   ;;  %v1251_v26 = vld [vmem:[%s1404_s23 + $0xe0] sm:$0xff]   ;;  %v1255_v30 = vld [vmem:[%s1404_s23 + $0xe8] sm:$0xff]  }
  0x2e   : > { %v1248_v23 = vld [vmem:[%s1404_s23 + $0x18] sm:$0xff]   ;;  %v1252_v27 = vld [vmem:[%s1404_s23 + $0x20] sm:$0xff]   ;;  %v1256_v31 = vld [vmem:[%s1404_s23 + $0x28] sm:$0xff]  }
  0x2f   : > { %1151 = vmatpush3.bf16.msra.mxu0 %v1240_v15  ;;  %v1249_v24 = vld [vmem:[%s1404_s23 + $0x98] sm:$0xff]   ;;  %v1253_v28 = vld [vmem:[%s1404_s23 + $0xa0] sm:$0xff]   ;;  %v1257_v32 = vld [vmem:[%s1404_s23 + $0xa8] sm:$0xff]  }
  0x30   : > { %1173 = vmatpush3.bf16.msra.mxu1 %v1241_v16  ;;  %1152 = vmatprep.subr.bf16.mxu0 %v1242_v17  ;;  %v1258_v33 = vld [vmem:[%s1404_s23 + $0x70] sm:$0xff]   ;;  %v1262_v37 = vld [vmem:[%s1404_s23 + $0x78] sm:$0xff]   ;;  %v491_v43 = vld [vmem:[%s1406_s30 + $0x18] sm:$0xff] }
  0x31   : > { %1174 = vmatprep.subr.bf16.mxu1 %v1243_v18  ;;  %v1259_v34 = vld [vmem:[%s1404_s23 + $0xf0] sm:$0xff]   ;;  %v1263_v38 = vld [vmem:[%s1404_s23 + $0xf8] sm:$0xff]   ;;  %v495_v45 = vld [vmem:[%s1406_s30 + $0x38] sm:$0xff] }
  0x32   : > { %v1260_v35 = vld [vmem:[%s1404_s23 + $0x30] sm:$0xff]   ;;  %v1264_v39 = vld [vmem:[%s1404_s23 + $0x38] sm:$0xff]   ;;  %v499_v48 = vpack.c.bf16 %v495_v45, %v491_v43  ;;  %v490_v50 = vld [vmem:[%s1406_s30 + $0x10] sm:$0xff] }
  0x33   : > { %1153 = vmatpush3.bf16.msra.mxu0 %v1244_v19  ;;  %v1261_v36 = vld [vmem:[%s1404_s23 + $0xb0] sm:$0xff]   ;;  %v1265_v40 = vld [vmem:[%s1404_s23 + $0xb8] sm:$0xff]   ;;  %v494_v51 = vld [vmem:[%s1406_s30 + $0x30] sm:$0xff]  ;;  %v1313_v19 = vmov (!%p1139_p11), 0  }
  0x34   : > { %1175 = vmatpush3.bf16.msra.mxu1 %v1245_v20  ;;  %1154 = vmatprep.subr.bf16.mxu0 %v1246_v21  ;;  %v489_v41 = vld [vmem:[%s1406_s30 + $0x8] sm:$0xff]  ;;  %v488_v46 = vld [vmem:[%s1406_s30] sm:$0xff]  ;;  %v498_v52 = vpack.c.bf16 %v494_v51, %v490_v50  ;;  %v486_v62 = vld [vmem:[#allocation2] sm:$0xff] }
  0x35   : > { %1176 = vmatprep.subr.bf16.mxu1 %v1247_v22  ;;  %v493_v42 = vld [vmem:[%s1406_s30 + $0x28] sm:$0xff]  ;;  %v492_v47 = vld [vmem:[%s1406_s30 + $0x20] sm:$0xff]  ;;  %829 = vmatprep.mubr.bf16.mxu1 %v499_v48  ;;  %v487_v3 = vld [vmem:[#allocation2 + $0x8] sm:$0xff] }
  0x36   : > { %v497_v44 = vpack.c.bf16 %v493_v42, %v489_v41  ;;  %v496_v49 = vpack.c.bf16 %v492_v47, %v488_v46  ;;  %v1140_v8 = vld [vmem:[%s1502_s2] ss:$0 sm:$0xff] (!%p1139_p11)  ;;  %v859_v12 = vld [vmem:[%s1503_s3 + $0x8] sm:$0xff] (!%p1139_p11)  ;;  %1266 = vset.pattern.permute.xlu0 (!%p1139_p11), %v1313_v19  ;;  %1267 = vset.pattern.permute.xlu1 (!%p1139_p11), %v1313_v19 }
  0x37   : > { %1155 = vmatpush3.bf16.msra.mxu0 %v1248_v23  ;;  %v858_v9 = vld [vmem:[%s1503_s3] sm:$0xff] (!%p1139_p11) }
  0x38   : > { %1177 = vmatpush3.bf16.msra.mxu1 %v1249_v24  ;;  %1156 = vmatprep.subr.bf16.mxu0 %v1250_v25  ;;  %v907_v18 = vld [vmem:[%s1506_s6] sm:$0xff] (!%p1139_p11) }
  0x39   : > { %1178 = vmatprep.subr.bf16.mxu1 %v1251_v26  ;;  %788 = vmatprep.mubr.bf16.mxu0 %v497_v44 }
  0x3b   : > { %1157 = vmatpush3.bf16.msra.mxu0 %v1252_v27 }
  0x3c   : > { %1179 = vmatpush3.bf16.msra.mxu1 %v1253_v28  ;;  %1158 = vmatprep.subr.bf16.mxu0 %v1254_v29 }
  0x3d   : > { %1180 = vmatprep.subr.bf16.mxu1 %v1255_v30  ;;  %v908_v30 = vld [vmem:[%s1506_s6 + $0x8] sm:$0xff] (!%p1139_p11) }
  0x3f   : > { %1159 = vmatpush3.bf16.msra.mxu0 %v1256_v31 }
  0x40   : > { %1181 = vmatpush3.bf16.msra.mxu1 %v1257_v32  ;;  %1160 = vmatprep.subr.bf16.mxu0 %v1258_v33 }
  0x41   : > { %1182 = vmatprep.subr.bf16.mxu1 %v1259_v34 }
  0x43   : > { %1161 = vmatpush3.bf16.msra.mxu0 %v1260_v35 }
  0x44   : > { %1183 = vmatpush3.bf16.msra.mxu1 %v1261_v36  ;;  %1162 = vmatprep.subr.bf16.mxu0 %v1262_v37 }
  0x45   : > { %1184 = vmatprep.subr.bf16.mxu1 %v1263_v38  ;;  %v1141_v38 = vld [vmem:[%s1504_s4] ss:$0 sm:$0xff] (!%p1139_p11) }
  0x47   : > { %1163 = vmatpush3.bf16.msra.mxu0 %v1264_v39 }
  0x48   : > { %1185 = vmatpush3.bf16.msra.mxu1 %v1265_v40  ;;  %v1142_v40 = vld [vmem:[%s1505_s5] ss:$0 sm:$0xff] (!%p1139_p11) }
  0x4a   : > { %789 = vmatmul.mubr.bf16.vlgmr.msra.gmra.mrb[0].mxu0 %v496_v49 }
  0x4b   : > { %830 = vmatmul.mubr.bf16.vlgmr.msra.gmra.mrb[0].mxu1 %v498_v52 }
 0x11d   : > { %v1164_v53 = vpop.f32.mrb[0].mxu0 }
 0x11e   : > { %v1186_v54 = vpop.f32.mrb[0].mxu1  ;;  %v1165_v55 = vpop.f32.mrb[1].mxu0 }
 0x11f   : > { %v1166_v56 = vadd.f32 %v1165_v55, %v1164_v53  ;;  %v1187_v57 = vpop.f32.mrb[1].mxu1  ;;  %v1167_v58 = vpop.f32.mrb[2].mxu0 }
 0x120   : > { %v1188_v59 = vadd.f32 %v1187_v57, %v1186_v54  ;;  %v1189_v60 = vpop.f32.mrb[2].mxu1  ;;  %v1168_v61 = vpop.f32.mrb[3].mxu0 }
 0x121   : > { %v1169_v63 = vadd.f32 %v1168_v61, %v1167_v58  ;;  %v1190_v0 = vpop.f32.mrb[3].mxu1 }
 0x122   : > { %v832_v1 = vadd.f32 %v1188_v59, %v1166_v56  ;;  %v1191_v2 = vadd.f32 %v1190_v0, %v1189_v60  ;;  %846 = sbr.rel (%p1139_p11) target bundleno = 626 (0x272), region = 79 }
 0x124   : > { %v838_v4 = vadd.f32 %v832_v1, %v486_v62  ;;  %v835_v5 = vadd.f32 %v1191_v2, %v1169_v63 }
 0x126   : > { %841 = vst.msk [vmem:[#allocation2] sm:$0xff] %vm840_vm1, %v838_v4  ;;  %v839_v6 = vadd.f32 %v835_v5, %v487_v3 }
 0x128   : > { %842 = vst.msk [vmem:[#allocation2 + $0x8] sm:$0xff] %vm840_vm1, %v839_v6 }
 0x12d   : > { %v847_v7 = vld [vmem:[#allocation2] sm:$0xff] }
 0x12e   : > { %v856_v10 = vadd.f32 %v1140_v8, %v847_v7 }
 0x12f   : > { %v848_v11 = vld [vmem:[#allocation2 + $0x8] sm:$0xff] }
 0x130   : > { %v857_v13 = vadd.f32 %v1140_v8, %v848_v11  ;;  %v860_v14 = vadd.f32 %v858_v9, %v856_v10 }
 0x132   : > { %v861_v15 = vadd.f32 %v859_v12, %v857_v13  ;;  %v862_v16 = vsel %vm840_vm1, %v860_v14, 0.0 }
 0x133   : > { %863 = vadd.xlane.f32.xlu0 %v862_v16 }
 0x134   : > { %v865_v17 = vsel %vm840_vm1, %v861_v15, 0.0 }
 0x137   : > { %866 = vadd.xlane.f32.xlu0 %v865_v17 }
 0x14d   : > { %911 = vperm.xlu0 %1266, %v907_v18  }
 0x1c0   : > { %v864_v20 = vpop.xlane.xlu0 %863 }
 0x1c1   : > { %v869_v21 = vmul.f32 0.03125, %v864_v20 }
 0x1c3   : > { %v871_v22 = vsub.f32 %v860_v14, %v869_v21 }
 0x1c4   : > { %v867_v23 = vpop.xlane.xlu0 %866 }
 0x1c5   : > { %v870_v24 = vmul.f32 0.03125, %v867_v23  ;;  %v873_v25 = vmul.f32 %v871_v22, %v871_v22 }
 0x1c7   : > { %v872_v26 = vsub.f32 %v861_v15, %v870_v24  ;;  %v875_v27 = vsel %vm840_vm1, %v873_v25, 0.0 }
 0x1c8   : > { %876 = vadd.xlane.f32.xlu1 %v875_v27 }
 0x1c9   : > { %v874_v28 = vmul.f32 %v872_v26, %v872_v26 }
 0x1cb   : > { %v878_v29 = vsel %vm840_vm1, %v874_v28, 0.0 }
 0x1cc   : > { %879 = vadd.xlane.f32.xlu1 %v878_v29  ;;  %v912_v43 = vpop.permute.xlu0 %911 }
 0x1dd   : > { %916 = vperm.xlu1 %1267, %v908_v30  }
 0x255   : > { %v877_v31 = vpop.xlane.xlu1 %876 }
 0x256   : > { %v881_v32 = vmul.f32 0.03125, %v877_v31 }
 0x258   : > { %v883_v33 = vadd.f32 1e-05, %v881_v32 }
 0x259   : > { %v880_v34 = vpop.xlane.xlu1 %879 }
 0x25a   : > { %1268 = vrsqrt.f32 %v883_v33  ;;  %v882_v35 = vmul.f32 0.03125, %v880_v34 }
 0x25c   : > { %v884_v36 = vadd.f32 1e-05, %v882_v35 }
 0x25d   : > { %v917_v48 = vpop.permute.xlu1 %916 }
 0x25e   : > { %1270 = vrsqrt.f32 %v884_v36 }
 0x264   : > { %v1269_v37 = vpop.eup %1268 }
 0x265   : > { %v887_v39 = vmul.f32 %v1269_v37, %v871_v22 }
 0x267   : > { %v896_v41 = vmul.f32 %v1141_v38, %v887_v39 }
 0x268   : > { %v1271_v42 = vpop.eup %1270 }
 0x269   : > { %v905_v44 = vadd.f32 %v1142_v40, %v896_v41  ;;  %v888_v45 = vmul.f32 %v1271_v42, %v872_v26 }
 0x26b   : > { %v919_v46 = vmul.f32 %v912_v43, %v905_v44  ;;  %v897_v47 = vmul.f32 %v1141_v38, %v888_v45 }
 0x26d   : > { %921 = vst.msk [vmem:[%s1507_s7] sm:$0xff] %vm840_vm1, %v919_v46  ;;  %v906_v49 = vadd.f32 %v1142_v40, %v897_v47 }
 0x26f   : > { %v920_v50 = vmul.f32 %v917_v48, %v906_v49 }
 0x271   : > { %922 = vst.msk [vmem:[%s1507_s7 + $0x8] sm:$0xff] %vm840_vm1, %v920_v50 }
 0x272 PF: > { %s17_s28 = sadd.s32 1, %s1310_s28   ;;  %s1508_s24 = smov %s1298_s25 }
 0x273   : > { %p14_p12 = scmp.ge.s32.totalorder %s17_s28, 6   ;;  %s1509_s25 = smov %s1389_s9 }
 0x274   : > { %s1510_s26 = smov %s1306_s27  ;;  %s1511_s27 = smov %s1513_s29 }
 0x275   :  { %16 = sbr.rel (!%p14_p12) target bundleno = 3 (0x3), region = 132 }

// kernel: pretrain_forward.19
= control target key start
LH: loop header
LB: loop body
LE: loop exit
PB: predicated region body
PF: predicated region fallthrough
CT: control target
= control target key end

     0   :  { %s3585_s0 = inlined_call_operand.vmem [shape: f32[2,8,32], index: 0, kind: input, shape index: {}]   ;;  %s3586_s1 = inlined_call_operand.vmem [shape: f32[2,8,1], index: 1, kind: input, shape index: {}]   ;;  %s3587_s2 = inlined_call_operand.vmem [shape: f32[2,1,8], index: 2, kind: input, shape index: {}]   ;;  %s3588_s3 = inlined_call_operand.vmem [shape: bf16[3,32,64], index: 3, kind: input, shape index: {}]   ;;  %s3589_s4 = inlined_call_operand.vmem [shape: f32[1,64], index: 4, kind: input, shape index: {}]   ;;  %s3590_s5 = inlined_call_operand.vmem [shape: bf16[3,64,64], index: 5, kind: input, shape index: {}]   ;;  %s3591_s6 = inlined_call_operand.vmem [shape: f32[1,64], index: 6, kind: input, shape index: {}]   ;;  %s3592_s7 = inlined_call_operand.vmem [shape: bf16[32,64], index: 7, kind: input, shape index: {}]   ;;  %s3593_s8 = inlined_call_operand.vmem [shape: f32[1,64], index: 8, kind: input, shape index: {}]   ;;  %s3594_s9 = inlined_call_operand.vmem [shape: bf16[64,384], index: 9, kind: input, shape index: {}]   ;;  %s3595_s10 = inlined_call_operand.vmem [shape: f32[1,384], index: 10, kind: input, shape index: {}]   ;;  %s3596_s11 = inlined_call_operand.vmem [shape: bf16[128,8], index: 11, kind: input, shape index: {}]   ;;  %s3597_s12 = inlined_call_operand.vmem [shape: f32[1,8], index: 12, kind: input, shape index: {}]   ;;  %s3598_s13 = inlined_call_operand.vmem [shape: bf16[128,8], index: 13, kind: input, shape index: {}]   ;;  %s3599_s14 = inlined_call_operand.vmem [shape: f32[1,8], index: 14, kind: input, shape index: {}]   ;;  %s3600_s15 = inlined_call_operand.vmem [shape: bf16[128,32], index: 15, kind: input, shape index: {}]   ;;  %s3601_s16 = inlined_call_operand.vmem [shape: f32[1,32], index: 16, kind: input, shape index: {}]   ;;  %s3602_s17 = inlined_call_operand.vmem [shape: bf16[32,64], index: 17, kind: input, shape index: {}]   ;;  %s3603_s18 = inlined_call_operand.vmem [shape: f32[1,64], index: 18, kind: input, shape index: {}]   ;;  %s3604_s19 = inlined_call_operand.vmem [shape: bf16[64,32], index: 19, kind: input, shape index: {}]   ;;  %s3605_s20 = inlined_call_operand.vmem [shape: f32[1,32], index: 20, kind: input, shape index: {}]   ;;  %s3606_s21 = inlined_call_operand.vmem [shape: f32[2,8,32], index: 21, kind: output, shape index: {}]  }
   0x1   :  { %3609 = sst [smem:[#allocation2_spill]] %s3585_s0 }
   0x2   :  { %3610 = sst [smem:[#allocation3_spill]] %s3586_s1 }
   0x3   :  { %3611 = sst [smem:[#allocation4_spill]] %s3587_s2  ;;  %s3171_s2 = smov 0  }
   0x4   :  { %3612 = sst [smem:[#allocation5_spill]] %s3588_s3 }
   0x5   :  { %3613 = sst [smem:[#allocation6_spill]] %s3589_s4 }
   0x6   :  { %3614 = sst [smem:[#allocation7_spill]] %s3590_s5 }
   0x7 LB: > { %s2550_s25 = sadd.s32 4294967295, %s3056_s2   ;;  %p2554_p0 = scmp.ge.s32.totalorder %s3056_s2, 1  ;;  %s3056_s2 = sphi %s3171_s2, %s31_s2  }
   0x8   : > { %p603_p1 = scmp.lt.s32.totalorder %s3056_s2, 3 }
   0xa   : > { %p604_p2 = pnand %p2554_p0, %p603_p1 }
   0xb   : > { %s3615_s3 = sld [smem:[#allocation5_spill]] (!%p604_p2)  ;;  %v3058_v1 = vmov (!%p604_p2), 0.0   ;;  %vm3059_vm0 = vmmov (!%p604_p2), 0   ;;  %p668_p3 = scmp.lt.s32.totalorder (!%p604_p2), %s2550_s25, 1  ;;  %vm717_vm1 = vcmask (!%p604_p2), 261120   ;;  %v687_v5 = vlaneseq (!%p604_p2)  ;;  %v2992_v60 = vld [vmem:[%s3592_s7] sm:$0xff] (!%p604_p2)  }
   0xc   : > { %607 = sbr.rel (%p604_p2) target bundleno = 2862 (0xb2e), region = 104  ;;  %2762 = vmatprep.subr.bf16.mxu0 (!%p604_p2), %v3058_v1  ;;  %2770 = vmatprep.subr.mxu1 (!%p604_p2), %v3058_v1  ;;  %s3616_s5 = sld [smem:[#allocation2_spill]] (!%p604_p2)  ;;  %vm761_vm3 = vcmask (!%p604_p2), 64512   ;;  %vm1073_vm5 = vcmask (!%p604_p2), 523264   ;;  %v3060_v46 = vmov (!%p604_p2), 0   ;;  %v2993_v61 = vld [vmem:[%s3592_s7 + $0x8] sm:$0xff] (!%p604_p2)  }
   0xd   : > { %2766 = vmatprep.mubr.msk.bf16.mxu0 (!%p604_p2), %vm3059_vm0, %v3058_v1  ;;  %2772 = vmatprep.mubr.msk.f32.mxu1 (!%p604_p2), %vm3059_vm0, %v3058_v1  ;;  %v3212_v6 = vand.u32 (!%p604_p2), 127, %v687_v5  ;;  %v3214_v7 = vshrl.u32 (!%p604_p2), %v687_v5, 7  ;;  %s3618_s30 = sld [smem:[#allocation6_spill]] (!%p604_p2)  ;;  %v2996_v62 = vld [vmem:[%s3594_s9 + $0x4] ss:$12 sps:$4 sm:$0xff] (!%p604_p2)  }
   0xe   : > { %2973 = vset.pattern.permute.xlu0 (!%p604_p2), %v3060_v46  ;;  %v2994_v63 = vld [vmem:[%s3594_s9] ss:$12 sps:$4 sm:$0xff] (!%p604_p2)  }
   0xf   : > { %v697_v8 = vadd.s32 (!%p604_p2), 2, %v3212_v6  ;;  %v887_v23 = vadd.s32 (!%p604_p2), 1, %v3212_v6  ;;  %v3001_v5 = vld [vmem:[%s3594_s9 + $0x20] ss:$12 sps:$4 sm:$0xff] (!%p604_p2)   ;;  %vm2159_vm6 = vcmp.eq.s32.totalorder (!%p604_p2), %v3214_v7, %v3212_v6 }
  0x11   : > { %v2974_v0 = vld [vmem:[%s3615_s3] sm:$0xff] (!%p604_p2)   ;;  %v2975_v2 = vld [vmem:[%s3615_s3 + $0x8] sm:$0xff] (!%p604_p2)   ;;  %vm698_vm2 = vcmp.eq.s32.totalorder (!%p604_p2), %v3214_v7, %v697_v8  ;;  %v2978_v16 = vld [vmem:[%s3615_s3 + $0x10] sm:$0xff] (!%p604_p2)   ;;  %vm888_vm4 = vcmp.eq.s32.totalorder (!%p604_p2), %v3214_v7, %v887_v23 }
  0x12   : > { %2763 = vmatpush3.bf16.msra.mxu0 (!%p604_p2), %v2974_v0  ;;  %v3219_v9 = vsel (!%p604_p2), %vm698_vm2, 1.0, %v3058_v1  ;;  %v2976_v10 = vld [vmem:[%s3615_s3 + $0x20] sm:$0xff] (!%p604_p2)   ;;  %v2977_v15 = vld [vmem:[%s3615_s3 + $0x28] sm:$0xff] (!%p604_p2)   ;;  %v2979_v17 = vld [vmem:[%s3615_s3 + $0x18] sm:$0xff] (!%p604_p2)   ;;  %v3261_v28 = vsel (!%p604_p2), %vm888_vm4, 1.0, %v3058_v1 }
  0x13   : > { %2764 = vmatprep.subr.bf16.mxu0 %v3058_v1  ;;  %s3622_s25 = smov (!%p668_p3, %s2550_s25), 1  ;;  %v2579_v36 = vld [vmem:[%s3618_s30] ss:$0 sm:$0xff]  ;;  %v2997_v0 = vld [vmem:[%s3594_s9 + $0x8] ss:$12 sps:$4 sm:$0xff]  }
  0x14   : > { %s3195_s0 = sshll.u32 %s3622_s25, 3  ;;  %v3004_v8 = vld [vmem:[%s3594_s9 + $0x34] ss:$12 sps:$4 sm:$0xff]  }
  0x15   : > { %s671_s22 = scalar_lea.vmem %s3616_s5, %s3195_s0  ;;  %s3619_s5 = sld [smem:[#allocation3_spill]] }
  0x16   : > { %2765 = vmatpush3.bf16.msra.mxu0 %v2975_v2  ;;  %v3202_v3 = vld [vmem:[%s671_s22] sm:$0xff]  ;;  %s3617_s22 = sld [smem:[#allocation7_spill]]  ;;  %s682_s4 = scalar_lea.vmem %s3606_s21, %s3195_s0 }
  0x17   : > { %2796 = vmatprep.subr.bf16.mxu0 %v3058_v1  ;;  %v3206_v4 = vpack.c.bf16 %v3202_v3, %v3202_v3  ;;  %v2998_v2 = vld [vmem:[%s3594_s9 + $0x18] ss:$12 sps:$4 sm:$0xff]  }
  0x19   : > { %2767 = vmatmul.mubr.msk.bf16.vlgmr.msra.gmra.mrb[0].mxu0 %vm717_vm1, %v3206_v4 }
  0x1a   : > { %2804 = vmatprep.mubr.msk.bf16.mxu0 %vm3059_vm0, %v3058_v1 }
  0x1b   : > { %s675_s23 = scalar_lea.vmem %s3619_s5, %s3195_s0  ;;  %s3620_s5 = sld [smem:[#allocation4_spill]] }
  0x1c   : > { %v2980_v18 = vld [vmem:[%s3617_s22] sm:$0xff]   ;;  %v2981_v19 = vld [vmem:[%s3617_s22 + $0x8] sm:$0xff]   ;;  %v2982_v33 = vld [vmem:[%s3617_s22 + $0x10] sm:$0xff]  }
  0x1d   : > { %2797 = vmatpush3.bf16.msra.mxu0 %v2980_v18  ;;  %v2983_v34 = vld [vmem:[%s3617_s22 + $0x18] sm:$0xff]   ;;  %v2984_v41 = vld [vmem:[%s3617_s22 + $0x20] sm:$0xff]   ;;  %v2985_v43 = vld [vmem:[%s3617_s22 + $0x28] sm:$0xff]  }
  0x1e   : > { %2798 = vmatprep.subr.bf16.mxu0 %v3058_v1  ;;  %v2986_v44 = vld [vmem:[%s3617_s22 + $0x30] sm:$0xff]   ;;  %v2987_v45 = vld [vmem:[%s3617_s22 + $0x38] sm:$0xff]   ;;  %v685_v47 = vld [vmem:[%s675_s23] sm:$0xff] }
  0x1f   : > { %1471 = vperm.xlu0 %2973, %v685_v47   ;;  %v2988_v48 = vld [vmem:[%s3617_s22 + $0x40] sm:$0xff]   ;;  %v2989_v53 = vld [vmem:[%s3617_s22 + $0x48] sm:$0xff]   ;;  %v2990_v54 = vld [vmem:[%s3617_s22 + $0x50] sm:$0xff]  }
  0x20   : > { %v2991_v55 = vld [vmem:[%s3617_s22 + $0x58] sm:$0xff]   ;;  %v3019_v47 = vld [vmem:[%s3598_s13 + $0x20] sm:$0xff]  }
  0x21   : > { %2799 = vmatpush3.bf16.msra.mxu0 %v2981_v19  ;;  %s678_s23 = scalar_lea.vmem %s3620_s5, %s3622_s25 }
  0x22   : > { %2800 = vmatprep.subr.bf16.mxu0 %v3058_v1 }
  0x25   : > { %2801 = vmatpush3.bf16.msra.mxu0 %v2982_v33 }
  0x26   : > { %2802 = vmatprep.subr.bf16.mxu0 %v3058_v1 }
  0x29   : > { %2803 = vmatpush3.bf16.msra.mxu0 %v2983_v34 }
  0x2a   : > { %2825 = vmatprep.subr.bf16.mxu0 %v3058_v1 }
  0x9e   : > { %v3390_v34 = vpop.permute.xlu0 %1471 }
  0xec   : > { %v755_v11 = vpop.f32.mrb[0].mxu0 }
  0xed   : > { %v2768_v12 = vpop.f32.mrb[1].mxu0  ;;  %2771 = vmatpush3.msra.mxu1 %v755_v11  ;;  %v3008_v11 = vld [vmem:[%s3594_s9 + $0x4c] ss:$12 sps:$4 sm:$0xff]  }
  0xee   : > { %v758_v13 = vpop.f32.mrb[2].mxu0  ;;  %2773 = vmatmul.mubr.msk.f32.vlgmr.msra.gmra.mrb[0].mxu1 %vm761_vm3, %v3219_v9  ;;  %2775 = vmatprep.subr.bf16.mxu1 %v3058_v1  ;;  %v3006_v12 = vld [vmem:[%s3594_s9 + $0x48] ss:$12 sps:$4 sm:$0xff]  }
  0xef   : > { %v2769_v14 = vpop.f32.mrb[3].mxu0  ;;  %2776 = vmatpush3.bf16.msra.mxu1 %v2976_v10  ;;  %2779 = vmatprep.mubr.msk.bf16.mxu1 %vm3059_vm0, %v3058_v1  ;;  %v3005_v10 = vld [vmem:[%s3594_s9 + $0x38] ss:$12 sps:$4 sm:$0xff]   ;;  %v3009_v13 = vld [vmem:[%s3594_s9 + $0x50] ss:$12 sps:$4 sm:$0xff]  }
  0xf0   : > { %2777 = vmatprep.subr.bf16.mxu1 %v3058_v1 }
  0xf3   : > { %2778 = vmatpush3.bf16.msra.mxu1 %v2977_v15 }
  0xf4   : > { %2783 = vmatprep.subr.bf16.mxu1 %v3058_v1 }
  0xf6   : > { %2780 = vmatmul.mubr.msk.bf16.vlgmr.msra.gmra.mrb[4].mxu1 %vm717_vm1, %v3206_v4 }
  0xf7   : > { %2784 = vmatpush3.bf16.msra.mxu1 %v2978_v16  ;;  %2787 = vmatprep.mubr.msk.bf16.mxu1 %vm3059_vm0, %v3058_v1 }
  0xf8   : > { %2785 = vmatprep.subr.bf16.mxu1 %v3058_v1 }
  0xfb   : > { %2786 = vmatpush3.bf16.msra.mxu1 %v2979_v17 }
  0xfc   : > { %2791 = vmatprep.subr.mxu1 %v3058_v1 }
  0xfe   : > { %2788 = vmatmul.mubr.msk.bf16.vlgmr.msra.gmra.mrb[8].mxu1 %vm717_vm1, %v3206_v4 }
  0xff   : > { %2793 = vmatprep.mubr.msk.f32.mxu1 %vm3059_vm0, %v3058_v1 }
 0x1c1   : > { %v831_v20 = vpop.f32.mrb[0].mxu1 }
 0x1c2   : > { %v2774_v21 = vpop.f32.mrb[1].mxu1 }
 0x1c9   : > { %v881_v22 = vpop.f32.mrb[4].mxu1 }
 0x1ca   : > { %v882_v24 = vadd.f32 %v881_v22, %v831_v20  ;;  %v2781_v25 = vpop.f32.mrb[5].mxu1 }
 0x1cb   : > { %v884_v26 = vpop.f32.mrb[6].mxu1 }
 0x1cc   : > { %v2782_v27 = vpop.f32.mrb[7].mxu1  ;;  %v2614_v26 = vld [vmem:[%s3593_s8] ss:$0 sm:$0xff] }
 0x1d1   : > { %v942_v29 = vpop.f32.mrb[8].mxu1 }
 0x1d2   : > { %v2789_v30 = vpop.f32.mrb[9].mxu1  ;;  %2792 = vmatpush3.msra.mxu1 %v942_v29 }
 0x1d3   : > { %v945_v31 = vpop.f32.mrb[10].mxu1  ;;  %2794 = vmatmul.mubr.msk.f32.vlgmr.msra.gmra.mrb[2].mxu1 %vm761_vm3, %v3261_v28  ;;  %2808 = vmatprep.subr.mxu1 %v3058_v1 }
 0x1d4   : > { %v2790_v32 = vpop.f32.mrb[11].mxu1  ;;  %2810 = vmatprep.mubr.msk.f32.mxu1 %vm3059_vm0, %v3058_v1 }
 0x2a6   : > { %v1017_v35 = vpop.f32.mrb[2].mxu1 }
 0x2a7   : > { %v1021_v37 = vadd.f32 %v1017_v35, %v882_v24  ;;  %v2795_v38 = vpop.f32.mrb[3].mxu1  ;;  %v2613_v24 = vld [vmem:[%s3591_s6] ss:$0 sm:$0xff] }
 0x2a8   : > { %v3011_v38 = vld [vmem:[%s3598_s13] sm:$0xff]  }
 0x2a9   : > { %v1029_v39 = vadd.f32 %v2579_v36, %v1021_v37  ;;  %v3010_v37 = vld [vmem:[%s3596_s11] sm:$0xff]  }
 0x2ab   : > { %v1030_v40 = vmax.f32 %v1029_v39, 0.0 }
 0x2ad   : > { %v1031_v42 = vpack.c.bf16 %v1030_v40, %v1030_v40  ;;  %v3012_v40 = vld [vmem:[%s3596_s11 + $0x8] sm:$0xff]  }
 0x2af   : > { %2805 = vmatmul.mubr.msk.bf16.vlgmr.msra.gmra.mrb[4].mxu0 %vm1073_vm5, %v1031_v42 }
 0x2b0   : > { %2826 = vmatpush3.bf16.msra.mxu0 %v2984_v41  ;;  %2833 = vmatprep.mubr.msk.bf16.mxu0 %vm3059_vm0, %v3058_v1  ;;  %v3013_v41 = vld [vmem:[%s3598_s13 + $0x8] sm:$0xff]  }
 0x2b1   : > { %2827 = vmatprep.subr.bf16.mxu0 %v3058_v1 }
 0x2b4   : > { %2828 = vmatpush3.bf16.msra.mxu0 %v2985_v43  ;;  %v3015_v43 = vld [vmem:[%s3598_s13 + $0x10] sm:$0xff]  }
 0x2b5   : > { %2829 = vmatprep.subr.bf16.mxu0 %v3058_v1 }
 0x2b8   : > { %2830 = vmatpush3.bf16.msra.mxu0 %v2986_v44  ;;  %v3016_v44 = vld [vmem:[%s3596_s11 + $0x18] sm:$0xff]  }
 0x2b9   : > { %2831 = vmatprep.subr.bf16.mxu0 %v3058_v1 }
 0x2bc   : > { %2832 = vmatpush3.bf16.msra.mxu0 %v2987_v45  ;;  %v3017_v45 = vld [vmem:[%s3598_s13 + $0x18] sm:$0xff]  }
 0x2bd   : > { %1576 = vmatprep.subr.bf16.mxu0 %v2996_v62 }
 0x2bf   : > { %2834 = vmatmul.mubr.msk.bf16.vlgmr.msra.gmra.mrb[8].mxu0 %vm1073_vm5, %v1031_v42 }
 0x2c0   : > { %1608 = vmatprep.mubr.bf16.mxu0 %v3060_v46  ;;  %1577 = vmatpush1.bf16.msra.mxu0 %v2994_v63  ;;  %v3018_v46 = vld [vmem:[%s3596_s11 + $0x20] sm:$0xff]  }
 0x382   : > { %v1111_v49 = vpop.f32.mrb[4].mxu0 }
 0x383   : > { %v2806_v50 = vpop.f32.mrb[5].mxu0  ;;  %2809 = vmatpush3.msra.mxu1 %v1111_v49  ;;  %v3021_v49 = vld [vmem:[%s3598_s13 + $0x28] sm:$0xff]  }
 0x384   : > { %v1114_v51 = vpop.f32.mrb[6].mxu0  ;;  %2811 = vmatmul.mubr.msk.f32.vlgmr.msra.gmra.mrb[12].mxu1 %vm761_vm3, %v3219_v9  ;;  %2813 = vmatprep.subr.bf16.mxu1 %v3058_v1  ;;  %v3002_v9 = vld [vmem:[%s3594_s9 + $0x30] ss:$12 sps:$4 sm:$0xff]  }
 0x385   : > { %v2807_v52 = vpop.f32.mrb[7].mxu0  ;;  %2814 = vmatpush3.bf16.msra.mxu1 %v2988_v48  ;;  %2821 = vmatprep.mubr.msk.bf16.mxu1 %vm3059_vm0, %v3058_v1  ;;  %v3020_v48 = vld [vmem:[%s3596_s11 + $0x28] sm:$0xff]   ;;  %v3022_v50 = vld [vmem:[%s3596_s11 + $0x30] sm:$0xff]  }
 0x386   : > { %2815 = vmatprep.subr.bf16.mxu1 %v3058_v1  ;;  %v3023_v51 = vld [vmem:[%s3598_s13 + $0x30] sm:$0xff]   ;;  %v3024_v52 = vld [vmem:[%s3596_s11 + $0x38] sm:$0xff]  }
 0x389   : > { %2816 = vmatpush3.bf16.msra.mxu1 %v2989_v53  ;;  %v3025_v53 = vld [vmem:[%s3598_s13 + $0x38] sm:$0xff]  }
 0x38a   : > { %2817 = vmatprep.subr.bf16.mxu1 %v3058_v1 }
 0x38d   : > { %2818 = vmatpush3.bf16.msra.mxu1 %v2990_v54  ;;  %v1496_v54 = vsub.s32 0, %v3214_v7 }
 0x38e   : > { %2819 = vmatprep.subr.bf16.mxu1 %v3058_v1 }
 0x391   : > { %2820 = vmatpush3.bf16.msra.mxu1 %v2991_v55  ;;  %v1492_v55 = vld [vmem:[%s3595_s10] sm:$0x7] }
 0x392   : > { %v1318_v56 = vpop.f32.mrb[8].mxu0  ;;  %2837 = vmatprep.subr.mxu1 %v3058_v1 }
 0x393   : > { %v2835_v57 = vpop.f32.mrb[9].mxu0 }
 0x394   : > { %v1321_v58 = vpop.f32.mrb[10].mxu0  ;;  %2822 = vmatmul.mubr.msk.bf16.vlgmr.msra.gmra.mrb[16].mxu1 %vm1073_vm5, %v1031_v42  ;;  %v3014_v42 = vld [vmem:[%s3596_s11 + $0x10] sm:$0xff]   ;;  %v1497_v57 = vrot.slane %v1492_v55, %v1496_v54 }
 0x395   : > { %v2836_v59 = vpop.f32.mrb[11].mxu0  ;;  %2838 = vmatpush3.msra.mxu1 %v1318_v56  ;;  %2839 = vmatprep.mubr.msk.f32.mxu1 %vm3059_vm0, %v3058_v1  ;;  %v1500_v56 = vsub.s32 1, %v3214_v7 }
 0x396   : > { %2842 = vmatprep.subr.bf16.mxu1 %v3058_v1 }
 0x397   : > { %v1501_v58 = vrot.slane %v1492_v55, %v1500_v56 }
 0x39c   : > { %2840 = vmatmul.mubr.msk.f32.vlgmr.msra.gmra.mrb[14].mxu1 %vm761_vm3, %v3261_v28 }
 0x39d   : > { %2843 = vmatpush3.bf16.msra.mxu1 %v2992_v60  ;;  %2846 = vmatprep.mubr.msk.bf16.mxu1 %vm3059_vm0, %v3058_v1 }
 0x39e   : > { %2844 = vmatprep.subr.bf16.mxu1 %v3058_v1 }
 0x3a1   : > { %2845 = vmatpush3.bf16.msra.mxu1 %v2993_v61 }
 0x3a2   : > { %2850 = vmatprep.subr.bf16.mxu1 %v3058_v1 }
 0x3a4   : > { %2847 = vmatmul.mubr.msk.bf16.vlgmr.msra.gmra.mrb[20].mxu1 %vm717_vm1, %v3206_v4  ;;  %v3000_v4 = vld [vmem:[%s3594_s9 + $0x1c] ss:$12 sps:$4 sm:$0xff]  }
 0x3a5   : > { %2858 = vmatprep.mubr.msk.bf16.mxu1 %vm3059_vm0, %v3058_v1  ;;  %2851 = vmatpush3.bf16.msra.mxu1 %v2997_v0 }
 0x3a6   : > { %2852 = vmatprep.subr.bf16.mxu1 %v3058_v1  ;;  %1578 = vmatprep.subr.bf16.mxu0 %v3000_v4 }
 0x3a7   : > { %1579 = vmatpush1.bf16.msra.mxu0 %v2998_v2 }
 0x3a8   : > { %1580 = vmatprep.subr.bf16.mxu0 %v3004_v8 }
 0x3a9   : > { %2853 = vmatpush3.bf16.msra.mxu1 %v3001_v5 }
 0x3aa   : > { %2854 = vmatprep.subr.bf16.mxu1 %v3058_v1 }
 0x3ab   : > { %1581 = vmatpush1.bf16.msra.mxu0 %v3002_v9 }
 0x3ac   : > { %1582 = vmatprep.subr.bf16.mxu0 %v3008_v11  ;;  %v3026_v11 = vld [vmem:[%s3600_s15] sm:$0xff]  }
 0x3ad   : > { %2855 = vmatpush3.bf16.msra.mxu1 %v3005_v10 }
 0x3ae   : > { %2856 = vmatprep.subr.bf16.mxu1 %v3058_v1 }
 0x3af   : > { %1583 = vmatpush1.bf16.msra.mxu0 %v3006_v12 }
 0x3b0   : > { %2862 = vmatprep.subr.bf16.mxu0 %v3058_v1 }
 0x3b1   : > { %2857 = vmatpush3.bf16.msra.mxu1 %v3009_v13 }
 0x3b2   : > { %2882 = vmatprep.subr.bf16.mxu1 %v3058_v1 }
 0x457   : > { %v1183_v14 = vpop.f32.mrb[12].mxu1 }
 0x458   : > { %v2812_v15 = vpop.f32.mrb[13].mxu1 }
 0x459   : > { %v3028_v15 = vld [vmem:[%s3600_s15 + $0x10] sm:$0xff]  }
 0x467   : > { %v1245_v16 = vpop.f32.mrb[16].mxu1 }
 0x468   : > { %v1246_v17 = vadd.f32 %v1245_v16, %v1183_v14  ;;  %v2823_v18 = vpop.f32.mrb[17].mxu1  ;;  %v3027_v14 = vld [vmem:[%s3600_s15 + $0x8] sm:$0xff]   ;;  %v3029_v16 = vld [vmem:[%s3600_s15 + $0x18] sm:$0xff]  }
 0x469   : > { %v1248_v19 = vpop.f32.mrb[18].mxu1  ;;  %v1504_v18 = vsub.s32 2, %v3214_v7 }
 0x46a   : > { %v2824_v20 = vpop.f32.mrb[19].mxu1  ;;  %v3031_v19 = vld [vmem:[%s3600_s15 + $0x28] sm:$0xff]  }
 0x46b   : > { %v1505_v20 = vrot.slane %v1492_v55, %v1504_v18 }
 0x46f   : > { %v1390_v21 = vpop.f32.mrb[14].mxu1 }
 0x470   : > { %v1394_v22 = vadd.f32 %v1390_v21, %v1246_v17  ;;  %v2841_v23 = vpop.f32.mrb[15].mxu1  ;;  %v3030_v17 = vld [vmem:[%s3600_s15 + $0x20] sm:$0xff]   ;;  %v3032_v21 = vld [vmem:[%s3600_s15 + $0x30] sm:$0xff]  }
 0x471   : > { %v3033_v23 = vld [vmem:[%s3600_s15 + $0x38] sm:$0xff]  }
 0x472   : > { %v1402_v25 = vadd.f32 %v2613_v24, %v1394_v22 }
 0x474   : > { %v1403_v28 = vmax.f32 %v1402_v25, 0.0 }
 0x477   : > { %v1461_v27 = vpop.f32.mrb[20].mxu1 }
 0x478   : > { %v1462_v29 = vadd.f32 %v2614_v26, %v1461_v27  ;;  %v2848_v30 = vpop.f32.mrb[21].mxu1  ;;  %v2641_v26 = vld [vmem:[%s3599_s14] ss:$0 sm:$0xff] }
 0x479   : > { %v1464_v31 = vpop.f32.mrb[22].mxu1  ;;  %v2632_v27 = vld [vmem:[%s3597_s12] ss:$0 sm:$0xff] }
 0x47a   : > { %v1467_v32 = vadd.f32 %v1462_v29, %v1403_v28  ;;  %v2849_v33 = vpop.f32.mrb[23].mxu1 }
 0x47c   : > { %v1468_v35 = vmax.f32 %v1467_v32, 0.0 }
 0x47e   : > { %v1474_v36 = vmul.f32 %v3390_v34, %v1468_v35 }
 0x480   : > { %v1475_v39 = vpack.c.bf16 %v1474_v36, %v1474_v36 }
 0x482   : > { %2630 = vmatmul.mubr.msk.bf16.vlgmr.msra.gmra.mrb[12].mxu0 %vm1073_vm5, %v1475_v39  ;;  %2859 = vmatmul.mubr.msk.bf16.vlgmr.msra.gmra.mrb[24].mxu1 %vm1073_vm5, %v1475_v39 }
 0x483   : > { %2863 = vmatpush3.bf16.msra.mxu0 %v3010_v37  ;;  %2883 = vmatpush3.bf16.msra.mxu1 %v3011_v38 }
 0x484   : > { %2864 = vmatprep.subr.bf16.mxu0 %v3058_v1  ;;  %2884 = vmatprep.subr.bf16.mxu1 %v3058_v1 }
 0x485   : > { %2878 = vmatprep.mubr.msk.bf16.mxu0 %vm3059_vm0, %v3058_v1  ;;  %2898 = vmatprep.mubr.msk.bf16.mxu1 %vm3059_vm0, %v3058_v1 }
 0x487   : > { %2865 = vmatpush3.bf16.msra.mxu0 %v3012_v40  ;;  %2885 = vmatpush3.bf16.msra.mxu1 %v3013_v41  ;;  %v2650_v41 = vld [vmem:[%s3601_s16] ss:$0 sm:$0xff] }
 0x488   : > { %2866 = vmatprep.subr.bf16.mxu0 %v3058_v1  ;;  %2886 = vmatprep.subr.bf16.mxu1 %v3058_v1 }
 0x48b   : > { %2867 = vmatpush3.bf16.msra.mxu0 %v3014_v42  ;;  %2887 = vmatpush3.bf16.msra.mxu1 %v3015_v43 }
 0x48c   : > { %2868 = vmatprep.subr.bf16.mxu0 %v3058_v1  ;;  %2888 = vmatprep.subr.bf16.mxu1 %v3058_v1 }
 0x48f   : > { %2869 = vmatpush3.bf16.msra.mxu0 %v3016_v44  ;;  %2889 = vmatpush3.bf16.msra.mxu1 %v3017_v45 }
 0x490   : > { %2870 = vmatprep.subr.bf16.mxu0 %v3058_v1  ;;  %2890 = vmatprep.subr.bf16.mxu1 %v3058_v1 }
 0x493   : > { %2871 = vmatpush3.bf16.msra.mxu0 %v3018_v46  ;;  %2891 = vmatpush3.bf16.msra.mxu1 %v3019_v47 }
 0x494   : > { %2872 = vmatprep.subr.bf16.mxu0 %v3058_v1  ;;  %2892 = vmatprep.subr.bf16.mxu1 %v3058_v1 }
 0x497   : > { %2873 = vmatpush3.bf16.msra.mxu0 %v3020_v48  ;;  %2893 = vmatpush3.bf16.msra.mxu1 %v3021_v49 }
 0x498   : > { %2874 = vmatprep.subr.bf16.mxu0 %v3058_v1  ;;  %2894 = vmatprep.subr.bf16.mxu1 %v3058_v1 }
 0x49b   : > { %2875 = vmatpush3.bf16.msra.mxu0 %v3022_v50  ;;  %2895 = vmatpush3.bf16.msra.mxu1 %v3023_v51 }
 0x49c   : > { %2876 = vmatprep.subr.bf16.mxu0 %v3058_v1  ;;  %2896 = vmatprep.subr.bf16.mxu1 %v3058_v1 }
 0x49f   : > { %2877 = vmatpush3.bf16.msra.mxu0 %v3024_v52  ;;  %2897 = vmatpush3.bf16.msra.mxu1 %v3025_v53  ;;  %v2663_v53 = vld [vmem:[%s678_s23] ss:$0 sm:$0xff] }
 0x4a0   : > { %2902 = vmatprep.subr.bf16.mxu0 %v3058_v1  ;;  %2922 = vmatprep.subr.mxu1 %v3058_v1  ;;  %v2153_v55 = vmul.f32 %v2663_v53, %v3390_v34 }
 0x555   : > { %v1610_v59 = vpop.f32.mrb[12].mxu0  ;;  %v1651_v60 = vpop.f32.mrb[24].mxu1 }
 0x556   : > { %v1611_v61 = vadd.f32 %v1610_v59, %v1497_v57  ;;  %v1612_v62 = vpop.f32.mrb[13].mxu0  ;;  %v2860_v63 = vpop.f32.mrb[25].mxu1  ;;  %v1652_v22 = vadd.f32 %v1651_v60, %v1505_v20  ;;  %v3036_v20 = vld [vmem:[%s3604_s19] sm:$0xff]  }
 0x557   : > { %v1613_v0 = vadd.f32 %v1612_v62, %v1501_v58  ;;  %v1614_v2 = vpop.f32.mrb[14].mxu0  ;;  %v1654_v4 = vpop.f32.mrb[26].mxu1  ;;  %v2664_v58 = vsel %vm2159_vm6, 1.0, %v3058_v1 }
 0x558   : > { %v1657_v5 = vmax.f32 %v1611_v61, 0.0  ;;  %v1615_v8 = vpop.f32.mrb[15].mxu0  ;;  %v2861_v9 = vpop.f32.mrb[27].mxu1  ;;  %v1659_v24 = vmax.f32 %v1652_v22, 0.0  ;;  %v3038_v22 = vld [vmem:[%s3604_s19 + $0x10] sm:$0xff]  }
 0x559   : > { %v1658_v10 = vmax.f32 %v1613_v0, 0.0 }
 0x55a   : > { %v1660_v12 = vpack.c.bf16 %v1657_v5, %v1657_v5  ;;  %v1662_v25 = vpack.c.bf16 %v1659_v24, %v1659_v24 }
 0x55b   : > { %v1661_v13 = vpack.c.bf16 %v1658_v10, %v1658_v10 }
 0x55c   : > { %2879 = vmatmul.mubr.bf16.vlgmr.msra.gmra.mrb[16].mxu0 %v1660_v12 }
 0x55d   : > { %2903 = vmatpush3.bf16.msra.mxu0 %v3026_v11  ;;  %2899 = vmatmul.mubr.bf16.vlgmr.msra.gmra.mrb[28].mxu1 %v1661_v13 }
 0x55e   : > { %2904 = vmatprep.subr.bf16.mxu0 %v3058_v1  ;;  %2918 = vmatprep.mubr.msk.bf16.mxu0 %vm3059_vm0, %v3058_v1 }
 0x55f   : > { %2924 = vmatprep.mubr.msk.f32.mxu1 %vm3059_vm0, %v3058_v1 }
 0x561   : > { %2905 = vmatpush3.bf16.msra.mxu0 %v3027_v14  ;;  %v3034_v14 = vld [vmem:[%s3602_s17] sm:$0xff]  }
 0x562   : > { %2906 = vmatprep.subr.bf16.mxu0 %v3058_v1 }
 0x565   : > { %2907 = vmatpush3.bf16.msra.mxu0 %v3028_v15 }
 0x566   : > { %2908 = vmatprep.subr.bf16.mxu0 %v3058_v1 }
 0x569   : > { %2909 = vmatpush3.bf16.msra.mxu0 %v3029_v16  ;;  %v3035_v16 = vld [vmem:[%s3602_s17 + $0x8] sm:$0xff]  }
 0x56a   : > { %2910 = vmatprep.subr.bf16.mxu0 %v3058_v1 }
 0x56d   : > { %2911 = vmatpush3.bf16.msra.mxu0 %v3030_v17 }
 0x56e   : > { %2912 = vmatprep.subr.bf16.mxu0 %v3058_v1 }
 0x571   : > { %2913 = vmatpush3.bf16.msra.mxu0 %v3031_v19 }
 0x572   : > { %2914 = vmatprep.subr.bf16.mxu0 %v3058_v1 }
 0x575   : > { %2915 = vmatpush3.bf16.msra.mxu0 %v3032_v21  ;;  %v3037_v21 = vld [vmem:[%s3604_s19 + $0x8] sm:$0xff]  }
 0x576   : > { %2916 = vmatprep.subr.bf16.mxu0 %v3058_v1 }
 0x579   : > { %2917 = vmatpush3.bf16.msra.mxu0 %v3033_v23  ;;  %v2666_v23 = vld [vmem:[%s3603_s18] ss:$0 sm:$0xff] }
 0x57a   : > { %2950 = vmatprep.subr.bf16.mxu0 %v3058_v1 }
 0x57c   : > { %2919 = vmatmul.mubr.bf16.vlgmr.msra.gmra.mrb[20].mxu0 %v1662_v25 }
 0x57d   : > { %2958 = vmatprep.mubr.msk.bf16.mxu0 %vm3059_vm0, %v3058_v1  ;;  %2951 = vmatpush3.bf16.msra.mxu0 %v3036_v20 }
 0x57e   : > { %2952 = vmatprep.subr.bf16.mxu0 %v3058_v1 }
 0x581   : > { %2953 = vmatpush3.bf16.msra.mxu0 %v3037_v21 }
 0x582   : > { %2954 = vmatprep.subr.bf16.mxu0 %v3058_v1 }
 0x585   : > { %2955 = vmatpush3.bf16.msra.mxu0 %v3038_v22 }
 0x586   : > { %2956 = vmatprep.subr.bf16.mxu0 %v3058_v1 }
 0x62f   : > { %v1768_v28 = vpop.f32.mrb[16].mxu0 }
 0x630   : > { %v2880_v29 = vpop.f32.mrb[17].mxu0  ;;  %v1880_v30 = vpop.f32.mrb[28].mxu1  ;;  %v1769_v35 = vadd.f32 %v2632_v27, %v1768_v28 }
 0x631   : > { %v1881_v31 = vadd.f32 %v2641_v26, %v1880_v30  ;;  %v1771_v32 = vpop.f32.mrb[18].mxu0  ;;  %v2900_v33 = vpop.f32.mrb[29].mxu1  ;;  %v3039_v30 = vld [vmem:[%s3604_s19 + $0x18] sm:$0xff]  }
 0x632   : > { %v2881_v36 = vpop.f32.mrb[19].mxu0  ;;  %v1883_v37 = vpop.f32.mrb[30].mxu1  ;;  %2957 = vmatpush3.bf16.msra.mxu0 %v3039_v30  ;;  %v2671_v33 = vld [vmem:[%s3605_s20] ss:$0 sm:$0xff] }
 0x633   : > { %3040 = vtanh.f32 %v1881_v31  ;;  %v2901_v38 = vpop.f32.mrb[31].mxu1 }
 0x634   : > { %3042 = vtanh.f32 %v1769_v35 }
 0x63d   : > { %v3041_v39 = vpop.eup %3040 }
 0x63e   : > { %2923 = vmatpush3.xpose.msk.msra.mxu1 %vm761_vm3, %v3041_v39  ;;  %v3043_v40 = vpop.eup %3042 }
 0x63f   : > { %2927 = vmatprep.subr.mxu1 %v3058_v1 }
 0x641   : > { %2925 = vmatmul.mubr.msk.f32.vlgmr.msra.gmra.mrb[32].mxu1 %vm761_vm3, %v3043_v40 }
 0x642   : > { %2928 = vmatpush3.xpose.msk.msra.mxu1 %vm761_vm3, %v3043_v40  ;;  %2929 = vmatprep.mubr.msk.f32.mxu1 %vm3059_vm0, %v3058_v1 }
 0x643   : > { %2932 = vmatprep.subr.mxu1 %v3058_v1 }
 0x645   : > { %2930 = vmatmul.mubr.msk.f32.vlgmr.msra.gmra.mrb[34].mxu1 %vm761_vm3, %v3041_v39 }
 0x646   : > { %2934 = vmatprep.mubr.msk.f32.mxu1 %vm3059_vm0, %v3058_v1 }
 0x64f   : > { %v1992_v42 = vpop.f32.mrb[20].mxu0 }
 0x650   : > { %v1993_v43 = vadd.f32 %v2650_v41, %v1992_v42  ;;  %v2920_v44 = vpop.f32.mrb[21].mxu0 }
 0x651   : > { %v1995_v45 = vpop.f32.mrb[22].mxu0 }
 0x652   : > { %v1998_v46 = vmul.f32 %v1993_v43, %v3390_v34  ;;  %v2921_v47 = vpop.f32.mrb[23].mxu0 }
 0x654   : > { %2933 = vmatpush3.msra.mxu1 %v1998_v46 }
 0x655   : > { %2937 = vmatprep.subr.bf16.mxu1 %v3058_v1 }
 0x714   : > { %v2071_v48 = vpop.f32.mrb[32].mxu1 }
 0x715   : > { %v2926_v49 = vpop.f32.mrb[33].mxu1 }
 0x718   : > { %v2141_v50 = vpop.f32.mrb[34].mxu1 }
 0x719   : > { %v2145_v51 = vsub.f32 %v2071_v48, %v2141_v50  ;;  %v2931_v52 = vpop.f32.mrb[35].mxu1 }
 0x71b   : > { %3044 = vtanh.f32 %v2145_v51 }
 0x725   : > { %v3045_v54 = vpop.eup %3044 }
 0x726   : > { %v2156_v56 = vsub.f32 0.0, %v3045_v54  ;;  %v2154_v57 = vmax.f32 %v3045_v54, 0.0 }
 0x728   : > { %v2157_v59 = vmax.f32 %v2156_v56, 0.0  ;;  %v2155_v60 = vmul.f32 %v2154_v57, %v2153_v55 }
 0x72a   : > { %v2158_v61 = vmul.f32 %v2157_v59, %v2153_v55  ;;  %v2162_v62 = vadd.f32 %v2664_v58, %v2155_v60 }
 0x72c   : > { %v2163_v63 = vadd.f32 %v2664_v58, %v2158_v61  ;;  %v2168_v2 = vsel %vm761_vm3, %v2162_v62, 0.0 }
 0x72d   : > { %v2169_v4 = vrot.slane %v2168_v2, 4 }
 0x72e   : > { %v2164_v0 = vsel %vm761_vm3, %v2163_v63, 0.0 }
 0x72f   : > { %2165 = vadd.xlane.f32.xlu0 %v2164_v0  ;;  %v2170_v5 = vadd.f32 %v2169_v4, %v2168_v2 }
 0x731   : > { %v2171_v6 = vrot.slane %v2170_v5, 2 }
 0x733   : > { %v2172_v7 = vadd.f32 %v2171_v6, %v2170_v5 }
 0x735   : > { %v2173_v8 = vrot.slane %v2172_v7, 1 }
 0x737   : > { %v2174_v9 = vadd.f32 %v2173_v8, %v2172_v7 }
 0x7bc   : > { %v2166_v10 = vpop.xlane.xlu0 %2165 }
 0x7bd   : > { %3046 = vrsqrt.f32 %v2166_v10 }
 0x7be   : > { %3048 = vrsqrt.f32 %v2174_v9 }
 0x7c7   : > { %v3047_v11 = vpop.eup %3046 }
 0x7c8   : > { %v2176_v12 = vmul.f32 %v3047_v11, %v2163_v63  ;;  %v3049_v13 = vpop.eup %3048 }
 0x7ca   : > { %v2177_v15 = vmul.f32 %v3049_v13, %v2176_v12 }
 0x7cc   : > { %2935 = vmatmul.mubr.msk.f32.vlgmr.msra.gmra.mrb[36].mxu1 %vm761_vm3, %v2177_v15 }
 0x7cd   : > { %2938 = vmatpush3.bf16.msra.mxu1 %v3034_v14  ;;  %2941 = vmatprep.mubr.msk.bf16.mxu1 %vm3059_vm0, %v3058_v1 }
 0x7ce   : > { %2939 = vmatprep.subr.bf16.mxu1 %v3058_v1 }
 0x7d1   : > { %2940 = vmatpush3.bf16.msra.mxu1 %v3035_v16 }
 0x7d2   : > { %2945 = vmatprep.subr.mxu1 %v3058_v1 }
 0x89f   : > { %v2247_v17 = vpop.f32.mrb[36].mxu1 }
 0x8a0   : > { %v2251_v18 = vpack.c.bf16 %v2247_v17, %v2247_v17  ;;  %v2936_v19 = vpop.f32.mrb[37].mxu1 }
 0x8a2   : > { %2942 = vmatmul.mubr.msk.bf16.vlgmr.msra.gmra.mrb[40].mxu1 %vm717_vm1, %v2251_v18 }
 0x8a3   : > { %2947 = vmatprep.mubr.msk.f32.mxu1 %vm3059_vm0, %v3058_v1 }
 0x975   : > { %v2312_v24 = vpop.f32.mrb[40].mxu1 }
 0x976   : > { %v2313_v25 = vadd.f32 %v2666_v23, %v2312_v24  ;;  %v2943_v26 = vpop.f32.mrb[41].mxu1 }
 0x977   : > { %v2315_v27 = vpop.f32.mrb[42].mxu1 }
 0x978   : > { %v2318_v28 = vmax.f32 %v2313_v25, 0.0  ;;  %v2944_v29 = vpop.f32.mrb[43].mxu1 }
 0x97a   : > { %2946 = vmatpush3.msra.mxu1 %v2318_v28 }
 0x97b   : > { %2948 = vmatmul.mubr.msk.f32.vlgmr.msra.gmra.mrb[38].mxu1 %vm761_vm3, %v2177_v15 }
 0xa4e   : > { %v2385_v1 = vpop.f32.mrb[38].mxu1 }
 0xa4f   : > { %v2389_v31 = vpack.c.bf16 %v2385_v1, %v2385_v1  ;;  %v2949_v32 = vpop.f32.mrb[39].mxu1 }
 0xa51   : > { %2959 = vmatmul.mubr.msk.bf16.vlgmr.msra.gmra.mrb[24].mxu0 %vm1073_vm5, %v2389_v31 }
 0xb24   : > { %v2466_v35 = vpop.f32.mrb[24].mxu0 }
 0xb25   : > { %v2467_v36 = vadd.f32 %v2671_v33, %v2466_v35  ;;  %v2960_v37 = vpop.f32.mrb[25].mxu0 }
 0xb26   : > { %v2469_v38 = vpop.f32.mrb[26].mxu0 }
 0xb27   : > { %v2472_v39 = vmax.f32 %v2467_v36, 0.0  ;;  %v2961_v40 = vpop.f32.mrb[27].mxu0 }
 0xb29   : > { %v2473_v41 = vmul.f32 %v2472_v39, %v3390_v34 }
 0xb2b   : > { %v2474_v42 = vadd.f32 %v2473_v41, %v3202_v3 }
 0xb2d   : > { %2475 = vst.msk [vmem:[%s682_s4] sm:$0xff] %vm717_vm1, %v2474_v42 }
 0xb2e PF: > { %s31_s2 = sadd.s32 1, %s3056_s2  }
 0xb2f   : > { %p28_p4 = scmp.ge.s32.totalorder %s31_s2, 4  }
 0xb31   :  { %30 = sbr.rel (!%p28_p4) target bundleno = 7 (0x7), region = 144 }

</bundles_post_ra>
